<compile_context>
chip_gen: v5e
topology: v5e:2x2
jax: 0.10.0
libtpu: 0.0.40
codegen_flags: <defaults>
</compile_context>

<pallas_src>
import math
import re

import jax
import jax.numpy as jnp
from jax.experimental import pallas as pl
from jax.experimental.pallas import tpu as pltpu


def _cdiv(a, b):
    return -(-a // b)


def _tpu_generation():
    """Best-effort TPU generation from device_kind (e.g. 'TPU v6e' -> 6)."""
    try:
        kind = jax.devices()[0].device_kind.lower()
    except Exception:
        return 0
    m = re.search(r"(\d+)", kind)
    return int(m.group(1)) if m else 0


def _vmem_params(gen):
    """(tile VMEM budget, CompilerParams vmem_limit_bytes) per generation."""
    if gen >= 7:        # v7x: only 64 MiB physical VMEM per TensorCore
        return 12 << 20, 32 << 20
    if gen >= 5:        # v5e / v6e: 128 MiB physical
        return 20 << 20, 64 << 20
    return 8 << 20, None


def _pick_node_tile(n, c, k, dtype, gen, vmem_budget_bytes, max_tn=2048):
    """Large, VMEM-budgeted node tile that leaves the pipeline work to prefetch."""
    itemsize = jnp.dtype(dtype).itemsize
    sub = 8 if itemsize >= 4 else 16
    # Double-buffered (K input + 1 output) tiles dominate the VMEM footprint.
    cap = max(sub, vmem_budget_bytes // (2 * (k + 1) * c * itemsize))
    tn = min(max_tn, cap, n)
    # v7x has 2 TensorCores: keep >=2 grid steps *per core* so each core's
    # BlockSpec pipeline can prefetch; elsewhere keep >=2 steps total.
    min_steps = 4 if gen >= 7 else 2
    if n >= min_steps * sub:
        tn = min(tn, _cdiv(n, min_steps))
    tn = max(sub, (tn // sub) * sub)
    # v7x: prefer an even grid count so both TensorCores get equal work.
    if gen >= 7:
        g = _cdiv(n, tn)
        if 1 < g < 32 and g % 2 == 1:
            cand = _cdiv(_cdiv(n, g + 1), sub) * sub
            if cand >= sub and _cdiv(n, cand) % 2 == 0:
                tn = cand
    return tn


def _make_attention_kernel(num_views, fold, mac_dtype):
    """Kernel operands: (w_fold, [bcast if fold>1], x_0..x_{K-1}, out)."""

    def kernel(*refs):
        idx = 0
        w_ref = refs[idx]; idx += 1
        b_ref = None
        if fold > 1:
            b_ref = refs[idx]; idx += 1
        x_refs = refs[idx:idx + num_views]
        o_ref = refs[idx + num_views]

        x_dtype = x_refs[0].dtype
        wf = w_ref[...]                                   # (Cf, fold) f32 scorer weight
        w_mm = wf if x_dtype == jnp.float32 else wf.astype(x_dtype)

        # Pass 1 (MXU, otherwise idle): per-view, per-logical-row scores.
        #   scores_k[n, j] = <x_k[n, j*C:(j+1)*C], w>
        scores = [jnp.dot(x_ref[...], w_mm, preferred_element_type=jnp.float32)
                  for x_ref in x_refs]                    # each (tn, fold) f32

        # Numerically-stable softmax over the K views.  The shared scalar Linear
        # bias cancels exactly here and is omitted.
        m = scores[0]
        for s in scores[1:]:
            m = jnp.maximum(m, s)
        exps = [jnp.exp(s - m) for s in scores]
        denom = exps[0]
        for e in exps[1:]:
            denom = denom + e
        inv = pl.reciprocal(denom, approx=True)           # EUP slot, off the VALU

        # Pass 2: weighted sum over views (re-reads VMEM tiles, not HBM).
        # TODO(synk): on v5e, verify from the bundle dump whether the running
        # accumulator spills to VMEM at large tn; if so, chunk pass 2 over rows
        # so each output vreg sees exactly one store.
        out = None
        for k in range(num_views):
            a = exps[k] * inv                             # (tn, fold) f32
            if fold > 1:
                # Broadcast each of the `fold` per-row weights across its C
                # lanes via a tiny 0/1 MXU matmul -> (tn, fold*C), keeping the
                # output store lane-dense for C < 128.
                a = jnp.dot(a, b_ref[...], preferred_element_type=jnp.float32)
            a = a.astype(mac_dtype)
            term = x_refs[k][...].astype(mac_dtype) * a
            out = term if out is None else out + term
        o_ref[...] = out.astype(o_ref.dtype)

    return kernel


def attention_forward(views, weight, bias, *, tn=None):
    """views: list of K arrays (N, C); weight: (C,); bias: scalar (ignored — it
    cancels exactly in the softmax over views)."""
    del bias
    K = len(views)
    N, C = views[0].shape
    dtype = views[0].dtype
    for v in views:
        assert v.shape == (N, C) and v.dtype == dtype

    gen = _tpu_generation()
    vmem_budget, vmem_limit = _vmem_params(gen)

    # Lane-dense folding: merge `fold` consecutive rows into the lane dim so the
    # output's last dim is a multiple of 128 (unmasked stores).  The reshape is
    # layout-preserving (row-major), hence free.
    fold = 128 // math.gcd(C, 128)
    if not (fold > 1 and fold <= 64 and N % fold == 0):
        fold = 1  # TODO(synk): C not foldable (or N % fold != 0) keeps masked stores for C<128
    Cf, Nf = C * fold, N // fold
    xs = views if fold == 1 else [v.reshape(Nf, Cf) for v in views]

    # Scorer weight stays f32 at the operand level (no wrapper-side downcast).
    w_col = weight.reshape(C, 1).astype(jnp.float32)
    if fold == 1:
        w_fold = w_col                                                  # (C, 1)
    else:
        eye = jnp.eye(fold, dtype=jnp.float32)
        w_fold = jnp.kron(eye, w_col)                                   # (Cf, fold)
        bcast = jnp.kron(eye, jnp.ones((1, C), dtype=jnp.float32))      # (fold, Cf)

    if tn is None:
        tn = _pick_node_tile(Nf, Cf, K, dtype, gen, vmem_budget)
    grid = pl.cdiv(Nf, tn)   # ragged last tile allowed (padded load / masked store)

    # bf16 multiply-accumulate only where the VALU supports it (v6e/v7x).
    mac_dtype = jnp.bfloat16 if (dtype == jnp.bfloat16 and gen >= 6) else jnp.float32

    view_spec = pl.BlockSpec((tn, Cf), lambda i: (i, 0))
    in_specs = [pl.BlockSpec(w_fold.shape, lambda i: (0, 0))]
    operands = [w_fold]
    if fold > 1:
        in_specs.append(pl.BlockSpec(bcast.shape, lambda i: (0, 0)))
        operands.append(bcast)
    in_specs += [view_spec] * K
    operands += list(xs)

    out = pl.pallas_call(
        _make_attention_kernel(K, fold, mac_dtype),
        out_shape=jax.ShapeDtypeStruct((Nf, Cf), dtype),
        grid_spec=pltpu.PrefetchScalarGridSpec(
            num_scalar_prefetch=0,
            grid=(grid,),
            in_specs=in_specs,
            out_specs=pl.BlockSpec((tn, Cf), lambda i: (i, 0)),
        ),
        compiler_params=pltpu.CompilerParams(
            dimension_semantics=("parallel",),
            vmem_limit_bytes=vmem_limit),
    )(*operands)
    return out if fold == 1 else out.reshape(N, C)


def attention_reference(views, weight, bias):
    stacked = jnp.stack(views, axis=1)                 # (N, K, C) -- PyTorch layout
    scores = jnp.einsum("nkc,c->nk", stacked, weight) + bias
    attn = jax.nn.softmax(scores, axis=1)              # softmax over dim=1 (views)
    return jnp.sum(stacked * attn[..., None], axis=1)


if __name__ == "__main__":
    key = jax.random.PRNGKey(0)

    def run_case(N, K, C):
        kk = jax.random.fold_in(key, N * 1000 + K * 100 + C)
        k_views, k_w, k_b = jax.random.split(kk, 3)
        views = [
            jax.random.normal(jax.random.fold_in(k_views, i), (N, C), dtype=jnp.float32)
            for i in range(K)
        ]
        bound = 1.0 / jnp.sqrt(jnp.float32(C))
        weight = jax.random.uniform(k_w, (C,), minval=-bound, maxval=bound,
                                    dtype=jnp.float32)
        bias = jax.random.uniform(k_b, (), minval=-bound, maxval=bound,
                                  dtype=jnp.float32)

        out = jax.block_until_ready(attention_forward(views, weight, bias))
        ref = attention_reference(views, weight, bias)
        assert out.shape == (N, C)
        err = jnp.max(jnp.abs(out - ref))
        # Tolerance covers the approximate EUP reciprocal in the softmax denom.
        assert jnp.allclose(out, ref, atol=3e-3, rtol=3e-3), \
            f"N={N} K={K} C={C}: max abs err {err}"

    run_case(1024, 3, 128)   # lane-dense C (typical UDAGCN: GCN + PPMI views)
    run_case(256, 2, 32)     # small C -> folded lane-dense path (fold = 4)
    print("KERNEL_OK")
</pallas_src>

<mosaic_0001>
module attributes {stable_mosaic.version = 11 : i64} {
  func.func @kernel(%arg0: i32, %arg1: memref<128x1xf32, #tpu.memory_space<vmem>>, %arg2: memref<512x128xf32, #tpu.memory_space<vmem>>, %arg3: memref<512x128xf32, #tpu.memory_space<vmem>>, %arg4: memref<512x128xf32, #tpu.memory_space<vmem>>, %arg5: memref<512x128xf32, #tpu.memory_space<vmem>>) attributes {dimension_semantics = [#tpu.dimension_semantics<parallel>], iteration_bounds = array<i64: 2>, scalar_prefetch = 0 : i64, scratch_operands = 0 : i64, tpu.core_type = #tpu.core_type<tc>, window_params = [{pipeline_mode = #tpu.pipeline_mode<synchronous>, transform_indices = @transform_0, window_bounds = array<i64: 128, 1>}, {transform_indices = @transform_1, window_bounds = array<i64: 512, 128>}, {transform_indices = @transform_2, window_bounds = array<i64: 512, 128>}, {transform_indices = @transform_3, window_bounds = array<i64: 512, 128>}, {transform_indices = @transform_4, window_bounds = array<i64: 512, 128>}]} {
    %c0 = arith.constant 0 : index
    %c0_0 = arith.constant 0 : index
    %0 = vector.load %arg1[%c0, %c0_0] : memref<128x1xf32, #tpu.memory_space<vmem>>, vector<128x1xf32>
    %c0_1 = arith.constant 0 : index
    %c0_2 = arith.constant 0 : index
    %1 = vector.load %arg2[%c0_1, %c0_2] : memref<512x128xf32, #tpu.memory_space<vmem>>, vector<512x128xf32>
    %cst = arith.constant dense<0.000000e+00> : vector<512x1xf32>
    %2 = tpu.matmul %1, %0, %cst {dimension_numbers = #tpu.dot_dimension_numbers<[1], [0], [0], [1], [0, 0, 1, 1], [], []>} : vector<512x128xf32>, vector<128x1xf32>, vector<512x1xf32> -> vector<512x1xf32>
    %c0_3 = arith.constant 0 : index
    %c0_4 = arith.constant 0 : index
    %3 = vector.load %arg3[%c0_3, %c0_4] : memref<512x128xf32, #tpu.memory_space<vmem>>, vector<512x128xf32>
    %cst_5 = arith.constant dense<0.000000e+00> : vector<512x1xf32>
    %4 = tpu.matmul %3, %0, %cst_5 {dimension_numbers = #tpu.dot_dimension_numbers<[1], [0], [0], [1], [0, 0, 1, 1], [], []>} : vector<512x128xf32>, vector<128x1xf32>, vector<512x1xf32> -> vector<512x1xf32>
    %c0_6 = arith.constant 0 : index
    %c0_7 = arith.constant 0 : index
    %5 = vector.load %arg4[%c0_6, %c0_7] : memref<512x128xf32, #tpu.memory_space<vmem>>, vector<512x128xf32>
    %cst_8 = arith.constant dense<0.000000e+00> : vector<512x1xf32>
    %6 = tpu.matmul %5, %0, %cst_8 {dimension_numbers = #tpu.dot_dimension_numbers<[1], [0], [0], [1], [0, 0, 1, 1], [], []>} : vector<512x128xf32>, vector<128x1xf32>, vector<512x1xf32> -> vector<512x1xf32>
    %7 = arith.maximumf %2, %4 : vector<512x1xf32>
    %8 = arith.maximumf %7, %6 : vector<512x1xf32>
    %9 = arith.subf %2, %8 : vector<512x1xf32>
    %10 = math.exp %9 : vector<512x1xf32>
    %11 = arith.subf %4, %8 : vector<512x1xf32>
    %12 = math.exp %11 : vector<512x1xf32>
    %13 = arith.subf %6, %8 : vector<512x1xf32>
    %14 = math.exp %13 : vector<512x1xf32>
    %15 = arith.addf %10, %12 : vector<512x1xf32>
    %16 = arith.addf %15, %14 : vector<512x1xf32>
    %17 = tpu.reciprocal %16 {approx = true} : vector<512x1xf32> -> vector<512x1xf32>
    %18 = arith.mulf %10, %17 : vector<512x1xf32>
    %c0_9 = arith.constant 0 : index
    %c0_10 = arith.constant 0 : index
    %19 = vector.load %arg2[%c0_9, %c0_10] : memref<512x128xf32, #tpu.memory_space<vmem>>, vector<512x128xf32>
    %20 = vector.broadcast %18 : vector<512x1xf32> to vector<512x128xf32>
    %21 = arith.mulf %19, %20 : vector<512x128xf32>
    %22 = arith.mulf %12, %17 : vector<512x1xf32>
    %c0_11 = arith.constant 0 : index
    %c0_12 = arith.constant 0 : index
    %23 = vector.load %arg3[%c0_11, %c0_12] : memref<512x128xf32, #tpu.memory_space<vmem>>, vector<512x128xf32>
    %24 = vector.broadcast %22 : vector<512x1xf32> to vector<512x128xf32>
    %25 = arith.mulf %23, %24 : vector<512x128xf32>
    %26 = arith.addf %21, %25 : vector<512x128xf32>
    %27 = arith.mulf %14, %17 : vector<512x1xf32>
    %c0_13 = arith.constant 0 : index
    %c0_14 = arith.constant 0 : index
    %28 = vector.load %arg4[%c0_13, %c0_14] : memref<512x128xf32, #tpu.memory_space<vmem>>, vector<512x128xf32>
    %29 = vector.broadcast %27 : vector<512x1xf32> to vector<512x128xf32>
    %30 = arith.mulf %28, %29 : vector<512x128xf32>
    %31 = arith.addf %26, %30 : vector<512x128xf32>
    %c0_15 = arith.constant 0 : index
    %c0_16 = arith.constant 0 : index
    %32 = vector.load %arg5[%c0_15, %c0_16] : memref<512x128xf32, #tpu.memory_space<vmem>>, vector<512x128xf32>
    tpu.vector_store %arg5[%c0_15, %c0_16], %31 {strides = array<i32>} : memref<512x128xf32, #tpu.memory_space<vmem>>, vector<512x128xf32>,
    return
  }
  func.func @transform_0(%arg0: i32) -> (i32, i32) {
    %c0_i32 = arith.constant 0 : i32
    %c0_i32_0 = arith.constant 0 : i32
    %c0_i32_1 = arith.constant 0 : i32
    return %c0_i32, %c0_i32_0 : i32, i32
  }
  func.func @transform_1(%arg0: i32) -> (i32, i32) {
    %c0_i32 = arith.constant 0 : i32
    %c0_i32_0 = arith.constant 0 : i32
    return %arg0, %c0_i32 : i32, i32
  }
  func.func @transform_2(%arg0: i32) -> (i32, i32) {
    %c0_i32 = arith.constant 0 : i32
    %c0_i32_0 = arith.constant 0 : i32
    return %arg0, %c0_i32 : i32, i32
  }
  func.func @transform_3(%arg0: i32) -> (i32, i32) {
    %c0_i32 = arith.constant 0 : i32
    %c0_i32_0 = arith.constant 0 : i32
    return %arg0, %c0_i32 : i32, i32
  }
  func.func @transform_4(%arg0: i32) -> (i32, i32) {
    %c0_i32 = arith.constant 0 : i32
    %c0_i32_0 = arith.constant 0 : i32
    return %arg0, %c0_i32 : i32, i32
  }
}

</mosaic_0001>

<bundles_post_ra>
// kernel: tpu_custom_call.1
= control target key start
LH: loop header
LB: loop body
LE: loop exit
PB: predicated region body
PF: predicated region fallthrough
CT: control target
= control target key end

     0   :  { %s6973_s0 = inlined_call_operand.vmem [shape: f32[128,1], index: 0, kind: input, shape index: {}]   ;;  %s6974_s1 = inlined_call_operand.hbm [shape: f32[1024,128], index: 1, kind: input, shape index: {}]   ;;  %s6975_s2 = inlined_call_operand.hbm [shape: f32[1024,128], index: 2, kind: input, shape index: {}]   ;;  %s6976_s3 = inlined_call_operand.hbm [shape: f32[1024,128], index: 3, kind: input, shape index: {}]   ;;  %s6977_s4 = inlined_call_operand.hbm [shape: f32[1024,128], index: 4, kind: output, shape index: {}]  }
   0x1   :  { %6986 = sst [smem:[#allocation19_spill]] %s6974_s1 }
   0x2   :  { %6987 = sst [smem:[#allocation20_spill]] %s6975_s2 }
   0x3   :  { %9 = vsyncpa [#allocation3], 0 }
   0x4   :  { %11 = vsyncpa [#allocation3 + $0x1], 0 }
   0x5   :  { %12 = vsyncpa [#allocation6], 0 }
   0x6   :  { %14 = vsyncpa [#allocation6 + $0x1], 0 }
   0x7   :  { %15 = vsyncpa [#allocation4], 0 }
   0x8   :  { %17 = vsyncpa [#allocation4 + $0x1], 0  ;;  %s4736_s15 = smov 0   ;;  %s4738_s16 = smov 0  }
   0x9   :  { %s4740_s17 = smov 0   ;;  %s4742_s18 = smov 0  }
   0xa LB: > { %6988 = sst [smem:[#allocation12_spill]] %s4700_s17  ;;  %s4757_s19 = sadd.s32 4294967295, %s4704_s18   ;;  %s4704_s18 = sphi %s4742_s18, %s7012_s18   ;;  %s4700_s17 = sphi %s4740_s17, %s7009_s17   ;;  %s4696_s16 = sphi %s4738_s16, %s7011_s16   ;;  %s4692_s15 = sphi %s4736_s15, %s7010_s15  }
   0xb   : > { %s3702_s20 = sadd.s32 4294967294, %s4704_s18   ;;  %s4761_s21 = sadd.s32 1, %s4704_s18  }
   0xc   : > { %s51_s22 = sadd.s32 1, %s4700_s17  ;;  %s48_s23 = ssub.s32 %s4704_s18, %s4761_s21 }
   0xd   : > { %p58_p0 = scmp.ne.s32.totalorder %s4700_s17, %s4696_s16  ;;  %p49_p1 = scmp.eq.s32.totalorder %s48_s23, 0 }
   0xe   : > { %p59_p2 = scmp.eq.s32.totalorder %s4704_s18, 0  ;;  %p64_p3 = scmp.ne.s32.totalorder %s4696_s16, %s4692_s15 }
   0xf   : > { %p65_p4 = scmp.eq.s32.totalorder %s4757_s19, 0  ;;  %p140_p7 = scmp.eq.s32.totalorder %s4757_s19, 1 }
  0x10   : > { %s4773_s24 = scalar_select %p49_p1, %s4700_s17, %s51_s22  }
  0x11   : > { %p60_p5 = por %p59_p2, %p58_p0  ;;  %p4775_p6 = por %p65_p4, %p64_p3 }
  0x12   : > { %6989 = sst [smem:[#allocation13_spill]] %s4773_s24  ;;  %p146_p8 = scmp.eq.s32.totalorder %s3702_s20, 1 }
  0x13   : > { %p3704_p9 = scmp.ge.s32.totalorder %s4704_s18, 2  ;;  %p3798_p10 = scmp.lt.s32.totalorder %s4704_s18, 2 }
  0x14   : > { %p4782_p11 = por %p140_p7, %p58_p0  ;;  %p4786_p12 = por %p146_p8, %p64_p3 }
  0x15   : > { %s169_s28 = sand.u32 1, %s4700_s17   ;;  %s4792_s29 = sshll.u32 %s4704_s18, 9 }
  0x16   : > { %s4796_s30 = sshll.u32 %s169_s28, 9  ;;  %p4798_p13 = pnand %p3798_p10, %p60_p5 }
  0x17   : > { %s191_s6 = sand.u32 1, %s4704_s18   ;;  %s6994_s2 = sld [smem:[#allocation20_spill]] }
  0x18   : > { %s195_s10 = scalar_lea.vmem [#allocation5], %s4796_s30  ;;  %p3714_p0 = scmp.ge.s32.totalorder %s4704_s18, 1 }
  0x19   : > { %s203_s11 = sshll.u32 %s195_s10, 4  ;;  %s4809_s13 = scalar_lea.sflag [#allocation6], %s191_s6  ;;  %s204_s11 = int_to_ptr.vmem [resolvable:$true] %s203_s11 }
  0x1a   : > { %p4548_p2 = pneg %p4798_p13 }
  0x1d   : > { %s200_s9 = scalar_lea.hbm %s6994_s2, %s4792_s29  ;;  %s4551_s7 = scalar_lea.hbm %s6994_s2, 1024 }
  0x1e   : > { %s201_s12 = sshll.u32 %s200_s9, 4  ;;  %s202_s12 = int_to_ptr.hbm [resolvable:$true] %s201_s12 }
  0x1f   : > { %s4544_s14 = sshra.s32 %s202_s12, 4  ;;  %s4545_s14 = int_to_ptr.hbm [resolvable:$true] %s4544_s14 }
  0x20   : > { %s4546_s20 = scalar_lea.hbm %s4545_s14, 512  ;;  %p4552_p5 = scmp.lt.s32.totalorder %s4545_s14, %s6994_s2 }
  0x21   : > { %p4547_p1 = scmp.ne.s32.totalorder %s4545_s14, %s4546_s20  ;;  %p4553_p7 = scmp.lt.s32.totalorder %s4551_s7, %s4546_s20 }
  0x23   : > { %p4549_p3 = pnand %p4548_p2, %p4547_p1  ;;  %p4554_p8 = por %p4553_p7, %p4552_p5 }
  0x25   : > { %p4550_p4 = pneg %p4549_p3 }
  0x27   : > { %p4555_p10 = pnand %p4554_p8, %p4550_p4 }
  0x29   : > { %4558 = shalt.err (!%p4555_p10)
}
  0x2a   : > { %s6978_s6 = smov 128   ;;  %s4707_s10 = smov 8  }
  0x2b   : > { %3790 = dma.hbm_to_vmem [thread:$0]  (!%p4798_p13), %s202_s12, 8192, %s204_s11, %s4809_s13, %s6978_s6, %s6978_s6, %s4707_s10  }
  0x2c   : > { %p233_p1 = scmp.lt.s32.totalorder %s4704_s18, 3  ;;  %s6995_s1 = sld [smem:[#allocation19_spill]] }
  0x2d   : > { %s173_s8 = scalar_lea.vmem [#allocation2], %s4796_s30  ;;  %s170_s2 = scalar_lea.sflag [#allocation3], %s169_s28 }
  0x2e   : > { %p4835_p3 = pnand %p3714_p0, %p233_p1  ;;  %s181_s9 = sshll.u32 %s173_s8, 4  ;;  %s182_s9 = int_to_ptr.vmem [resolvable:$true] %s181_s9 }
  0x32   : > { %s178_s22 = scalar_lea.hbm %s6995_s1, %s4792_s29  ;;  %s4581_s20 = scalar_lea.hbm %s6995_s1, 1024 }
  0x33   : > { %s179_s7 = sshll.u32 %s178_s22, 4  ;;  %s180_s7 = int_to_ptr.hbm [resolvable:$true] %s179_s7 }
  0x34   : > { %s4574_s24 = sshra.s32 %s180_s7, 4  ;;  %s4575_s24 = int_to_ptr.hbm [resolvable:$true] %s4574_s24 }
  0x35   : > { %s4576_s11 = scalar_lea.hbm %s4575_s24, 512  ;;  %p4582_p0 = scmp.lt.s32.totalorder %s4575_s24, %s6995_s1 }
  0x36   : > { %p4577_p4 = scmp.ne.s32.totalorder %s4575_s24, %s4576_s11  ;;  %p4583_p8 = scmp.lt.s32.totalorder %s4581_s20, %s4576_s11 }
  0x38   : > { %p4579_p5 = pnand %p4577_p4, %p4548_p2  ;;  %p4584_p10 = por %p4583_p8, %p4582_p0 }
  0x3a   : > { %p4580_p7 = pneg %p4579_p5 }
  0x3c   : > { %p4585_p1 = pnand %p4584_p10, %p4580_p7 }
  0x3e   : > { %4588 = shalt.err (!%p4585_p1)
}
  0x3f   : > { %s6997_s28 = smov 128   ;;  %s222_s14 = scalar_lea.hbm %s6976_s3, %s4792_s29 }
  0x40   : > { %3787 = dma.hbm_to_vmem [thread:$0]  (!%p4798_p13), %s180_s7, 8192, %s182_s9, %s170_s2, %s6997_s28, %s6997_s28, %s4707_s10  }
  0x41   : > { %s217_s17 = scalar_lea.vmem [#allocation7], %s4796_s30  ;;  %s223_s24 = sshll.u32 %s222_s14, 4  ;;  %s224_s24 = int_to_ptr.hbm [resolvable:$true] %s223_s24 }
  0x42   : > { %s225_s6 = sshll.u32 %s217_s17, 4  ;;  %s4604_s11 = sshra.s32 %s224_s24, 4  ;;  %s226_s6 = int_to_ptr.vmem [resolvable:$true] %s225_s6  ;;  %s4605_s11 = int_to_ptr.hbm [resolvable:$true] %s4604_s11 }
  0x43   : > { %s4606_s20 = scalar_lea.hbm %s4605_s11, 512  ;;  %s4611_s2 = scalar_lea.hbm %s6976_s3, 1024 }
  0x44   : > { %p4607_p4 = scmp.ne.s32.totalorder %s4605_s11, %s4606_s20  ;;  %p4612_p0 = scmp.lt.s32.totalorder %s4605_s11, %s6976_s3 }
  0x45   : > { %p4613_p8 = scmp.lt.s32.totalorder %s4611_s2, %s4606_s20 }
  0x46   : > { %p4609_p5 = pnand %p4607_p4, %p4548_p2 }
  0x47   : > { %p4614_p10 = por %p4613_p8, %p4612_p0 }
  0x48   : > { %p4610_p7 = pneg %p4609_p5 }
  0x4a   : > { %p4615_p1 = pnand %p4614_p10, %p4610_p7 }
  0x4c   : > { %4618 = shalt.err (!%p4615_p1)
}
  0x4d   : > { %3793 = dma.hbm_to_vmem [thread:$0]  (!%p4798_p13), %s224_s24, 8192, %s226_s6, %s4809_s13, %s6997_s28, %s6997_s28, %s4707_s10  }
  0x4e   : > { %237 = sbr.rel (%p4835_p3) target bundleno = 916 (0x394), region = 36 }
  0x53   : > { %s4879_s1 = sand.u32 1, %s4696_s16  }
  0x54   : > { %s4882_s17 = sshll.u32 %s4879_s1, 9  ;;  %s240_s29 = scalar_lea.sflag [#allocation3], %s4879_s1 }
  0x55   : > { %s4886_s30 = scalar_lea.vmem [#allocation2], %s4882_s17 }
  0x56   : > { %4679 = dma.done.wait (%p4775_p6), %s240_s29, 8192  }
  0x57   : > { %4681 = vsyncadd (%p4775_p6), %s240_s29, 4294959104  ;;  %s249_s5 = sand.u32 1, %s4757_s19   ;;  %s4894_s10 = scalar_lea.vmem [#allocation5], %s4882_s17 }
  0x58   : > { %s250_s13 = scalar_lea.sflag [#allocation6], %s249_s5 }
  0x59   : > { %4683 = dma.done.wait (%p4775_p6), %s250_s13, 16384  }
  0x5a   : > { %4685 = vsyncadd (%p4775_p6), %s250_s13, 4294950912  ;;  %v4903_v0 = vld [vmem:[%s6973_s0 + $0x78] sm:$0xff]  ;;  %v4908_v1 = vld [vmem:[%s6973_s0 + $0x70] sm:$0xff]  ;;  %s5040_s5 = scalar_lea.vmem [#allocation7], %s4882_s17  ;;  %s5404_s13 = scalar_lea.vmem [#allocation8], %s4882_s17 }
  0x5b   : > { %3728 = vmatpush.msra.mxu3 %v4903_v0  ;;  %929 = vmatpush.msra.mxu2 %v4903_v0  ;;  %v4916_v2 = vld [vmem:[%s6973_s0 + $0x68] sm:$0xff]  ;;  %v4925_v3 = vld [vmem:[%s6973_s0 + $0x60] sm:$0xff]  ;;  %v4934_v4 = vld [vmem:[%s6973_s0 + $0x58] sm:$0xff]  ;;  %s3727_s17 = sshll.u32 %s4757_s19, 9  ;;  %s3583_s19 = sshll.u32 %s5404_s13, 4  ;;  %s3584_s19 = int_to_ptr.vmem [resolvable:$true] %s3583_s19 }
  0x5c   : > { %383 = vmatpush.msra.mxu0 %v4903_v0  ;;  %656 = vmatpush.msra.mxu1 %v4903_v0  ;;  %v4943_v5 = vld [vmem:[%s6973_s0 + $0x50] sm:$0xff]  ;;  %v4952_v6 = vld [vmem:[%s6973_s0 + $0x48] sm:$0xff]  ;;  %v4961_v7 = vld [vmem:[%s6973_s0 + $0x40] sm:$0xff]  ;;  %s3582_s8 = scalar_lea.hbm %s6977_s4, %s3727_s17  ;;  %s4654_s24 = scalar_lea.hbm %s6977_s4, 1024 }
  0x5d   : > { %3729 = vmatpush.msra.mxu3 %v4908_v1  ;;  %930 = vmatpush.msra.mxu2 %v4908_v1  ;;  %v4970_v8 = vld [vmem:[%s6973_s0 + $0x38] sm:$0xff]  ;;  %v4979_v9 = vld [vmem:[%s6973_s0 + $0x30] sm:$0xff]  ;;  %v4988_v10 = vld [vmem:[%s6973_s0 + $0x28] sm:$0xff]  ;;  %s3585_s12 = sshll.u32 %s3582_s8, 4  ;;  %s3586_s12 = int_to_ptr.hbm [resolvable:$true] %s3585_s12 }
  0x5e   : > { %384 = vmatpush.msra.mxu0 %v4908_v1  ;;  %657 = vmatpush.msra.mxu1 %v4908_v1  ;;  %v4997_v11 = vld [vmem:[%s6973_s0 + $0x20] sm:$0xff]  ;;  %v5006_v12 = vld [vmem:[%s6973_s0 + $0x18] sm:$0xff]  ;;  %v5015_v13 = vld [vmem:[%s6973_s0 + $0x10] sm:$0xff]  ;;  %s4648_s14 = sshra.s32 %s3586_s12, 4  ;;  %s4649_s14 = int_to_ptr.hbm [resolvable:$true] %s4648_s14 }
  0x5f   : > { %3730 = vmatpush.msra.mxu3 %v4916_v2  ;;  %931 = vmatpush.msra.mxu2 %v4916_v2  ;;  %v5024_v14 = vld [vmem:[%s6973_s0 + $0x8] sm:$0xff]  ;;  %v5033_v15 = vld [vmem:[%s6973_s0] sm:$0xff]  ;;  %v369_v24 = vld [vmem:[%s4886_s30 + $0x190] sm:$0xff]  ;;  %s4650_s6 = scalar_lea.hbm %s4649_s14, 512  ;;  %p4655_p3 = scmp.lt.s32.totalorder %s4649_s14, %s6977_s4 }
  0x60   : > { %385 = vmatpush.msra.mxu0 %v4916_v2  ;;  %658 = vmatpush.msra.mxu1 %v4916_v2  ;;  %v367_v16 = vld [vmem:[%s4886_s30 + $0x180] sm:$0xff]  ;;  %v368_v20 = vld [vmem:[%s4886_s30 + $0x188] sm:$0xff]  ;;  %v867_v25 = vld [vmem:[%s5040_s5 + $0x10] sm:$0xff]  ;;  %p4651_p6 = scmp.ne.s32.totalorder %s4649_s14, %s4650_s6  ;;  %p4656_p4 = scmp.lt.s32.totalorder %s4654_s24, %s4650_s6 }
  0x61   : > { %3731 = vmatpush.msra.mxu3 %v4925_v3  ;;  %932 = vmatpush.msra.mxu2 %v4925_v3  ;;  %v865_v17 = vld [vmem:[%s5040_s5] sm:$0xff]  ;;  %v866_v21 = vld [vmem:[%s5040_s5 + $0x8] sm:$0xff]  ;;  %v321_v26 = vld [vmem:[%s4886_s30 + $0x10] sm:$0xff] }
  0x62   : > { %386 = vmatpush.msra.mxu0 %v4925_v3  ;;  %659 = vmatpush.msra.mxu1 %v4925_v3  ;;  %v319_v18 = vld [vmem:[%s4886_s30] sm:$0xff]  ;;  %v320_v22 = vld [vmem:[%s4886_s30 + $0x8] sm:$0xff]  ;;  %v594_v27 = vld [vmem:[%s4894_s10 + $0x10] sm:$0xff]  ;;  %p4652_p13 = pnand %p4651_p6, %p4782_p11  ;;  %p4657_p5 = por %p4656_p4, %p4655_p3 }
  0x63   : > { %3732 = vmatpush.msra.mxu3 %v4934_v4  ;;  %933 = vmatpush.msra.mxu2 %v4934_v4  ;;  %v592_v19 = vld [vmem:[%s4894_s10] sm:$0xff]  ;;  %v593_v23 = vld [vmem:[%s4894_s10 + $0x8] sm:$0xff]  ;;  %v370_v28 = vld [vmem:[%s4886_s30 + $0x198] sm:$0xff] }
  0x64   : > { %387 = vmatpush.msra.mxu0 %v4934_v4  ;;  %660 = vmatpush.msra.mxu1 %v4934_v4  ;;  %v868_v29 = vld [vmem:[%s5040_s5 + $0x18] sm:$0xff]  ;;  %v371_v32 = vld [vmem:[%s4886_s30 + $0x1a0] sm:$0xff]  ;;  %v372_v36 = vld [vmem:[%s4886_s30 + $0x1a8] sm:$0xff]  ;;  %p4653_p2 = pneg %p4652_p13 }
  0x65   : > { %3733 = vmatpush.msra.mxu3 %v4943_v5  ;;  %934 = vmatpush.msra.mxu2 %v4943_v5  ;;  %v322_v30 = vld [vmem:[%s4886_s30 + $0x18] sm:$0xff]  ;;  %v869_v33 = vld [vmem:[%s5040_s5 + $0x20] sm:$0xff]  ;;  %v870_v37 = vld [vmem:[%s5040_s5 + $0x28] sm:$0xff] }
  0x66   : > { %388 = vmatpush.msra.mxu0 %v4943_v5  ;;  %661 = vmatpush.msra.mxu1 %v4943_v5  ;;  %v595_v31 = vld [vmem:[%s4894_s10 + $0x18] sm:$0xff]  ;;  %v323_v34 = vld [vmem:[%s4886_s30 + $0x20] sm:$0xff]  ;;  %v324_v38 = vld [vmem:[%s4886_s30 + $0x28] sm:$0xff]  ;;  %p4658_p7 = pnand %p4657_p5, %p4653_p2 }
  0x67   : > { %3734 = vmatpush.msra.mxu3 %v4952_v6  ;;  %935 = vmatpush.msra.mxu2 %v4952_v6  ;;  %v596_v35 = vld [vmem:[%s4894_s10 + $0x20] sm:$0xff]  ;;  %v597_v39 = vld [vmem:[%s4894_s10 + $0x28] sm:$0xff]  ;;  %v373_v40 = vld [vmem:[%s4886_s30 + $0x1b0] sm:$0xff] }
  0x68   : > { %389 = vmatpush.msra.mxu0 %v4952_v6  ;;  %662 = vmatpush.msra.mxu1 %v4952_v6  ;;  %v871_v41 = vld [vmem:[%s5040_s5 + $0x30] sm:$0xff]  ;;  %v374_v44 = vld [vmem:[%s4886_s30 + $0x1b8] sm:$0xff]  ;;  %v375_v48 = vld [vmem:[%s4886_s30 + $0x1c0] sm:$0xff] }
  0x69   : > { %3735 = vmatpush.msra.mxu3 %v4961_v7  ;;  %936 = vmatpush.msra.mxu2 %v4961_v7  ;;  %v325_v42 = vld [vmem:[%s4886_s30 + $0x30] sm:$0xff]  ;;  %v872_v45 = vld [vmem:[%s5040_s5 + $0x38] sm:$0xff]  ;;  %v873_v49 = vld [vmem:[%s5040_s5 + $0x40] sm:$0xff] }
  0x6a   : > { %390 = vmatpush.msra.mxu0 %v4961_v7  ;;  %663 = vmatpush.msra.mxu1 %v4961_v7  ;;  %v598_v43 = vld [vmem:[%s4894_s10 + $0x30] sm:$0xff]  ;;  %v326_v46 = vld [vmem:[%s4886_s30 + $0x38] sm:$0xff]  ;;  %v327_v50 = vld [vmem:[%s4886_s30 + $0x40] sm:$0xff] }
  0x6b   : > { %3736 = vmatpush.msra.mxu3 %v4970_v8  ;;  %937 = vmatpush.msra.mxu2 %v4970_v8  ;;  %v599_v47 = vld [vmem:[%s4894_s10 + $0x38] sm:$0xff]  ;;  %v600_v51 = vld [vmem:[%s4894_s10 + $0x40] sm:$0xff]  ;;  %v376_v52 = vld [vmem:[%s4886_s30 + $0x1c8] sm:$0xff] }
  0x6c   : > { %391 = vmatpush.msra.mxu0 %v4970_v8  ;;  %664 = vmatpush.msra.mxu1 %v4970_v8  ;;  %v874_v53 = vld [vmem:[%s5040_s5 + $0x48] sm:$0xff]  ;;  %v377_v56 = vld [vmem:[%s4886_s30 + $0x1d0] sm:$0xff]  ;;  %v378_v60 = vld [vmem:[%s4886_s30 + $0x1d8] sm:$0xff] }
  0x6d   : > { %3737 = vmatpush.msra.mxu3 %v4979_v9  ;;  %938 = vmatpush.msra.mxu2 %v4979_v9  ;;  %v328_v54 = vld [vmem:[%s4886_s30 + $0x48] sm:$0xff]  ;;  %v875_v57 = vld [vmem:[%s5040_s5 + $0x50] sm:$0xff]  ;;  %v876_v61 = vld [vmem:[%s5040_s5 + $0x58] sm:$0xff] }
  0x6e   : > { %392 = vmatpush.msra.mxu0 %v4979_v9  ;;  %665 = vmatpush.msra.mxu1 %v4979_v9  ;;  %v601_v55 = vld [vmem:[%s4894_s10 + $0x48] sm:$0xff]  ;;  %v329_v58 = vld [vmem:[%s4886_s30 + $0x50] sm:$0xff]  ;;  %v330_v62 = vld [vmem:[%s4886_s30 + $0x58] sm:$0xff] }
  0x6f   : > { %3738 = vmatpush.msra.mxu3 %v4988_v10  ;;  %939 = vmatpush.msra.mxu2 %v4988_v10  ;;  %v602_v59 = vld [vmem:[%s4894_s10 + $0x50] sm:$0xff]  ;;  %v603_v63 = vld [vmem:[%s4894_s10 + $0x58] sm:$0xff] }
  0x70   : > { %393 = vmatpush.msra.mxu0 %v4988_v10  ;;  %666 = vmatpush.msra.mxu1 %v4988_v10 }
  0x71   : > { %3739 = vmatpush.msra.mxu3 %v4997_v11  ;;  %940 = vmatpush.msra.mxu2 %v4997_v11 }
  0x72   : > { %394 = vmatpush.msra.mxu0 %v4997_v11  ;;  %667 = vmatpush.msra.mxu1 %v4997_v11 }
  0x73   : > { %3740 = vmatpush.msra.mxu3 %v5006_v12  ;;  %941 = vmatpush.msra.mxu2 %v5006_v12 }
  0x74   : > { %395 = vmatpush.msra.mxu0 %v5006_v12  ;;  %668 = vmatpush.msra.mxu1 %v5006_v12 }
  0x75   : > { %3741 = vmatpush.msra.mxu3 %v5015_v13  ;;  %942 = vmatpush.msra.mxu2 %v5015_v13 }
  0x76   : > { %396 = vmatpush.msra.mxu0 %v5015_v13  ;;  %669 = vmatpush.msra.mxu1 %v5015_v13 }
  0x77   : > { %3742 = vmatpush.msra.mxu3 %v5024_v14  ;;  %943 = vmatpush.msra.mxu2 %v5024_v14 }
  0x78   : > { %397 = vmatpush.msra.mxu0 %v5024_v14  ;;  %670 = vmatpush.msra.mxu1 %v5024_v14 }
  0x79   : > { %3743 = vmatpush.msra.mxu3 %v5033_v15  ;;  %944 = vmatpush.msra.mxu2 %v5033_v15 }
  0x7a   : > { %543 = vmatmul.f32.vlgmr.msra.gmra.mxu3 %v367_v16  ;;  %945 = vmatmul.f32.vlgmr.msra.gmra.mxu2 %v865_v17  ;;  %v640_v16 = vld [vmem:[%s4894_s10 + $0x180] sm:$0xff] }
  0x7b   : > { %398 = vmatpush.msra.mxu0 %v5033_v15  ;;  %671 = vmatpush.msra.mxu1 %v5033_v15  ;;  %v881_v17 = vld [vmem:[%s5040_s5 + $0x80] sm:$0xff] }
  0x7c   : > { %399 = vmatmul.f32.vlgmr.msra.gmra.mxu0 %v319_v18  ;;  %672 = vmatmul.f32.vlgmr.msra.gmra.mxu1 %v592_v19 }
  0x7d   : > { %3744 = vmatpush.msrb.mxu3 %v4903_v0 }
  0x7f   : > { %3745 = vmatpush.msrb.mxu3 %v4908_v1 }
  0x81   : > { %3746 = vmatpush.msrb.mxu3 %v4916_v2 }
  0x82   : > { %546 = vmatmul.f32.gmra.mxu3 %v368_v20  ;;  %948 = vmatmul.f32.gmra.mxu2 %v866_v21  ;;  %v335_v20 = vld [vmem:[%s4886_s30 + $0x80] sm:$0xff] }
  0x83   : > { %3747 = vmatpush.msrb.mxu3 %v4925_v3  ;;  %v608_v21 = vld [vmem:[%s4894_s10 + $0x80] sm:$0xff] }
  0x84   : > { %402 = vmatmul.f32.gmra.mxu0 %v320_v22  ;;  %675 = vmatmul.f32.gmra.mxu1 %v593_v23  ;;  %v4708_v22 = vmov 0  }
  0x85   : > { %3748 = vmatpush.msrb.mxu3 %v4934_v4  ;;  %3839 = vset.pattern.permute.xlu2 %v4708_v22 }
  0x86   : > { %3838 = vset.pattern.permute.xlu1 %v4708_v22  ;;  %3837 = vset.pattern.permute.xlu0 %v4708_v22 }
  0x87   : > { %3749 = vmatpush.msrb.mxu3 %v4943_v5 }
  0x89   : > { %3750 = vmatpush.msrb.mxu3 %v4952_v6 }
  0x8a   : > { %549 = vmatmul.f32.gmra.mxu3 %v369_v24  ;;  %951 = vmatmul.f32.gmra.mxu2 %v867_v25 }
  0x8b   : > { %3751 = vmatpush.msrb.mxu3 %v4961_v7 }
  0x8c   : > { %405 = vmatmul.f32.gmra.mxu0 %v321_v26  ;;  %678 = vmatmul.f32.gmra.mxu1 %v594_v27  ;;  %v641_v27 = vld [vmem:[%s4894_s10 + $0x188] sm:$0xff] }
  0x8d   : > { %3752 = vmatpush.msrb.mxu3 %v4970_v8 }
  0x8f   : > { %3753 = vmatpush.msrb.mxu3 %v4979_v9 }
  0x91   : > { %3754 = vmatpush.msrb.mxu3 %v4988_v10 }
  0x92   : > { %552 = vmatmul.f32.gmra.mxu3 %v370_v28  ;;  %954 = vmatmul.f32.gmra.mxu2 %v868_v29  ;;  %v882_v28 = vld [vmem:[%s5040_s5 + $0x88] sm:$0xff] }
  0x93   : > { %3755 = vmatpush.msrb.mxu3 %v4997_v11 }
  0x94   : > { %408 = vmatmul.f32.gmra.mxu0 %v322_v30  ;;  %681 = vmatmul.f32.gmra.mxu1 %v595_v31 }
  0x95   : > { %3756 = vmatpush.msrb.mxu3 %v5006_v12 }
  0x97   : > { %3757 = vmatpush.msrb.mxu3 %v5015_v13 }
  0x99   : > { %3758 = vmatpush.msrb.mxu3 %v5024_v14 }
  0x9a   : > { %555 = vmatmul.f32.gmra.mxu3 %v371_v32  ;;  %957 = vmatmul.f32.gmra.mxu2 %v869_v33 }
  0x9b   : > { %3759 = vmatpush.msrb.mxu3 %v5033_v15 }
  0x9c   : > { %411 = vmatmul.f32.gmra.mxu0 %v323_v34  ;;  %684 = vmatmul.f32.gmra.mxu1 %v596_v35  ;;  %v336_v34 = vld [vmem:[%s4886_s30 + $0x88] sm:$0xff] }
  0x9d   : > { %3760 = vmatpush.msra.mxu3 %v4903_v0  ;;  %v379_v0 = vld [vmem:[%s4886_s30 + $0x1e0] sm:$0xff]  ;;  %v609_v35 = vld [vmem:[%s4894_s10 + $0x88] sm:$0xff] }
  0x9f   : > { %3761 = vmatpush.msra.mxu3 %v4908_v1  ;;  %v877_v1 = vld [vmem:[%s5040_s5 + $0x60] sm:$0xff] }
  0xa1   : > { %3762 = vmatpush.msra.mxu3 %v4916_v2  ;;  %v331_v2 = vld [vmem:[%s4886_s30 + $0x60] sm:$0xff] }
  0xa2   : > { %558 = vmatmul.f32.gmra.mxu3 %v372_v36  ;;  %960 = vmatmul.f32.gmra.mxu2 %v870_v37 }
  0xa3   : > { %3763 = vmatpush.msra.mxu3 %v4925_v3  ;;  %v604_v3 = vld [vmem:[%s4894_s10 + $0x60] sm:$0xff] }
  0xa4   : > { %414 = vmatmul.f32.gmra.mxu0 %v324_v38  ;;  %687 = vmatmul.f32.gmra.mxu1 %v597_v39 }
  0xa5   : > { %3764 = vmatpush.msra.mxu3 %v4934_v4  ;;  %v380_v4 = vld [vmem:[%s4886_s30 + $0x1e8] sm:$0xff] }
  0xa7   : > { %3765 = vmatpush.msra.mxu3 %v4943_v5  ;;  %v878_v5 = vld [vmem:[%s5040_s5 + $0x68] sm:$0xff] }
  0xa9   : > { %3766 = vmatpush.msra.mxu3 %v4952_v6  ;;  %v332_v6 = vld [vmem:[%s4886_s30 + $0x68] sm:$0xff] }
  0xaa   : > { %561 = vmatmul.f32.gmra.mxu3 %v373_v40  ;;  %963 = vmatmul.f32.gmra.mxu2 %v871_v41 }
  0xab   : > { %3767 = vmatpush.msra.mxu3 %v4961_v7  ;;  %v605_v7 = vld [vmem:[%s4894_s10 + $0x68] sm:$0xff] }
  0xac   : > { %417 = vmatmul.f32.gmra.mxu0 %v325_v42  ;;  %690 = vmatmul.f32.gmra.mxu1 %v598_v43  ;;  %v642_v43 = vld [vmem:[%s4894_s10 + $0x190] sm:$0xff] }
  0xad   : > { %3768 = vmatpush.msra.mxu3 %v4970_v8  ;;  %v381_v8 = vld [vmem:[%s4886_s30 + $0x1f0] sm:$0xff] }
  0xaf   : > { %3769 = vmatpush.msra.mxu3 %v4979_v9  ;;  %v879_v9 = vld [vmem:[%s5040_s5 + $0x70] sm:$0xff] }
  0xb1   : > { %3770 = vmatpush.msra.mxu3 %v4988_v10  ;;  %v333_v10 = vld [vmem:[%s4886_s30 + $0x70] sm:$0xff] }
  0xb2   : > { %564 = vmatmul.f32.gmra.mxu3 %v374_v44  ;;  %966 = vmatmul.f32.gmra.mxu2 %v872_v45  ;;  %v883_v44 = vld [vmem:[%s5040_s5 + $0x90] sm:$0xff] }
  0xb3   : > { %3771 = vmatpush.msra.mxu3 %v4997_v11  ;;  %v606_v11 = vld [vmem:[%s4894_s10 + $0x70] sm:$0xff] }
  0xb4   : > { %420 = vmatmul.f32.gmra.mxu0 %v326_v46  ;;  %693 = vmatmul.f32.gmra.mxu1 %v599_v47 }
  0xb5   : > { %3772 = vmatpush.msra.mxu3 %v5006_v12  ;;  %v382_v12 = vld [vmem:[%s4886_s30 + $0x1f8] sm:$0xff] }
  0xb7   : > { %3773 = vmatpush.msra.mxu3 %v5015_v13  ;;  %v880_v13 = vld [vmem:[%s5040_s5 + $0x78] sm:$0xff] }
  0xb9   : > { %3774 = vmatpush.msra.mxu3 %v5024_v14  ;;  %v334_v14 = vld [vmem:[%s4886_s30 + $0x78] sm:$0xff] }
  0xba   : > { %567 = vmatmul.f32.gmra.mxu3 %v375_v48  ;;  %969 = vmatmul.f32.gmra.mxu2 %v873_v49 }
  0xbb   : > { %3775 = vmatpush.msra.mxu3 %v5033_v15  ;;  %v607_v15 = vld [vmem:[%s4894_s10 + $0x78] sm:$0xff] }
  0xbc   : > { %423 = vmatmul.f32.gmra.mxu0 %v327_v50  ;;  %696 = vmatmul.f32.gmra.mxu1 %v600_v51  ;;  %v337_v50 = vld [vmem:[%s4886_s30 + $0x90] sm:$0xff] }
  0xbd   : > { %v610_v51 = vld [vmem:[%s4894_s10 + $0x90] sm:$0xff] }
  0xc2   : > { %570 = vmatmul.f32.gmra.mxu3 %v376_v52  ;;  %972 = vmatmul.f32.gmra.mxu2 %v874_v53 }
  0xc4   : > { %426 = vmatmul.f32.gmra.mxu0 %v328_v54  ;;  %699 = vmatmul.f32.gmra.mxu1 %v601_v55 }
  0xca   : > { %573 = vmatmul.f32.gmra.mxu3 %v377_v56  ;;  %975 = vmatmul.f32.gmra.mxu2 %v875_v57 }
  0xcc   : > { %429 = vmatmul.f32.gmra.mxu0 %v329_v58  ;;  %702 = vmatmul.f32.gmra.mxu1 %v602_v59 }
  0xd2   : > { %576 = vmatmul.f32.gmra.mxu3 %v378_v60  ;;  %978 = vmatmul.f32.gmra.mxu2 %v876_v61 }
  0xd4   : > { %432 = vmatmul.f32.gmra.mxu0 %v330_v62  ;;  %705 = vmatmul.f32.gmra.mxu1 %v603_v63 }
  0xda   : > { %579 = vmatmul.f32.gmra.mxu3 %v379_v0  ;;  %981 = vmatmul.f32.gmra.mxu2 %v877_v1  ;;  %v643_v0 = vld [vmem:[%s4894_s10 + $0x198] sm:$0xff] }
  0xdb   : > { %v884_v1 = vld [vmem:[%s5040_s5 + $0x98] sm:$0xff] }
  0xdc   : > { %435 = vmatmul.f32.gmra.mxu0 %v331_v2  ;;  %708 = vmatmul.f32.gmra.mxu1 %v604_v3 }
  0xe2   : > { %582 = vmatmul.f32.gmra.mxu3 %v380_v4  ;;  %984 = vmatmul.f32.gmra.mxu2 %v878_v5 }
  0xe4   : > { %438 = vmatmul.f32.gmra.mxu0 %v332_v6  ;;  %711 = vmatmul.f32.gmra.mxu1 %v605_v7  ;;  %v338_v7 = vld [vmem:[%s4886_s30 + $0x98] sm:$0xff] }
  0xea   : > { %585 = vmatmul.f32.gmra.mxu3 %v381_v8  ;;  %987 = vmatmul.f32.gmra.mxu2 %v879_v9  ;;  %v611_v8 = vld [vmem:[%s4894_s10 + $0x98] sm:$0xff] }
  0xec   : > { %441 = vmatmul.f32.gmra.mxu0 %v333_v10  ;;  %714 = vmatmul.f32.gmra.mxu1 %v606_v11 }
  0xf2   : > { %588 = vmatmul.f32.gmra.mxu3 %v382_v12  ;;  %990 = vmatmul.f32.gmra.mxu2 %v880_v13 }
  0xf4   : > { %444 = vmatmul.f32.gmra.mxu0 %v334_v14  ;;  %717 = vmatmul.f32.gmra.mxu1 %v607_v15 }
  0xf9   : > { %v400_v18 = vpop.f32.mrf.mxu0  ;;  %v673_v19 = vpop.f32.mrf.mxu1 }
  0xfa   : > { %816 = vmatmul.f32.vlgmr.msrb.gmra.mxu3 %v640_v16  ;;  %993 = vmatmul.f32.gmra.mxu2 %v881_v17  ;;  %v1138_v23 = vmax.f32 %v400_v18, %v673_v19 }
  0xfc   : > { %447 = vmatmul.f32.gmra.mxu0 %v335_v20  ;;  %720 = vmatmul.f32.gmra.mxu1 %v608_v21 }
  0xfd   : > { %v5147_v24 = vpop.f32.mrf.mxu3  ;;  %v946_v25 = vpop.f32.mrf.mxu2 }
  0xfe   : > { %v1202_v26 = vmax.f32 %v1138_v23, %v946_v25 }
 0x100   : > { %v1266_v29 = vsub.f32 %v400_v18, %v1202_v26  ;;  %v1458_v30 = vsub.f32 %v673_v19, %v1202_v26  ;;  %v1650_v31 = vsub.f32 %v946_v25, %v1202_v26  ;;  %v644_v26 = vld [vmem:[%s4894_s10 + $0x1a0] sm:$0xff] }
 0x101   : > { %v403_v32 = vpop.f32.mrf.mxu0  ;;  %v676_v33 = vpop.f32.mrf.mxu1 }
 0x102   : > { %v1330_v36 = vmul.f32 1.442695, %v1266_v29  ;;  %v1522_v37 = vmul.f32 1.442695, %v1458_v30  ;;  %819 = vmatmul.f32.gmra.mxu3 %v641_v27  ;;  %996 = vmatmul.f32.gmra.mxu2 %v882_v28  ;;  %v1139_v38 = vmax.f32 %v403_v32, %v676_v33  ;;  %v1714_v39 = vmul.f32 1.442695, %v1650_v31 }
 0x103   : > { %v885_v30 = vld [vmem:[%s5040_s5 + $0xa0] sm:$0xff] }
 0x104   : > { %3840 = vpow2.f32 %v1330_v36  ;;  %450 = vmatmul.f32.gmra.mxu0 %v336_v34  ;;  %723 = vmatmul.f32.gmra.mxu1 %v609_v35  ;;  %v612_v34 = vld [vmem:[%s4894_s10 + $0xa0] sm:$0xff] }
 0x105   : > { %3842 = vpow2.f32 %v1522_v37  ;;  %v5153_v40 = vpop.f32.mrf.mxu3  ;;  %v949_v41 = vpop.f32.mrf.mxu2 }
 0x106   : > { %v1203_v42 = vmax.f32 %v1139_v38, %v949_v41  ;;  %3844 = vpow2.f32 %v1714_v39 }
 0x108   : > { %v1267_v45 = vsub.f32 %v403_v32, %v1203_v42  ;;  %v1459_v46 = vsub.f32 %v676_v33, %v1203_v42  ;;  %v1651_v47 = vsub.f32 %v949_v41, %v1203_v42  ;;  %v339_v33 = vld [vmem:[%s4886_s30 + $0xa0] sm:$0xff] }
 0x109   : > { %v406_v48 = vpop.f32.mrf.mxu0  ;;  %v679_v49 = vpop.f32.mrf.mxu1 }
 0x10a   : > { %v3841_v52 = vpop.eup %3840  ;;  %v1332_v53 = vmul.f32 1.442695, %v1267_v45  ;;  %v1524_v54 = vmul.f32 1.442695, %v1459_v46  ;;  %822 = vmatmul.f32.gmra.mxu3 %v642_v43  ;;  %999 = vmatmul.f32.gmra.mxu2 %v883_v44  ;;  %v1140_v55 = vmax.f32 %v406_v48, %v679_v49  ;;  %v1716_v57 = vmul.f32 1.442695, %v1651_v47 }
 0x10b   : > { %v3843_v56 = vpop.eup %3842 }
 0x10c   : > { %v1842_v58 = vadd.f32 %v3843_v56, %v3841_v52  ;;  %3846 = vpow2.f32 %v1332_v53  ;;  %453 = vmatmul.f32.gmra.mxu0 %v337_v50  ;;  %726 = vmatmul.f32.gmra.mxu1 %v610_v51  ;;  %v3845_v59 = vpop.eup %3844  ;;  %v645_v51 = vld [vmem:[%s4894_s10 + $0x1a8] sm:$0xff] }
 0x10d   : > { %3848 = vpow2.f32 %v1524_v54  ;;  %v5159_v60 = vpop.f32.mrf.mxu3  ;;  %v952_v61 = vpop.f32.mrf.mxu2 }
 0x10e   : > { %v1906_v62 = vadd.f32 %v3845_v59, %v1842_v58  ;;  %v1204_v63 = vmax.f32 %v1140_v55, %v952_v61  ;;  %3850 = vpow2.f32 %v1716_v57  ;;  %v886_v55 = vld [vmem:[%s5040_s5 + $0xa8] sm:$0xff] }
 0x10f   : > { %v340_v58 = vld [vmem:[%s4886_s30 + $0xa8] sm:$0xff] }
 0x110   : > { %3852 = vrcp.f32 %v1906_v62  ;;  %v1268_v2 = vsub.f32 %v406_v48, %v1204_v63  ;;  %v1460_v3 = vsub.f32 %v679_v49, %v1204_v63  ;;  %v1652_v4 = vsub.f32 %v952_v61, %v1204_v63 }
 0x111   : > { %v409_v5 = vpop.f32.mrf.mxu0  ;;  %v682_v6 = vpop.f32.mrf.mxu1 }
 0x112   : > { %v3847_v9 = vpop.eup %3846  ;;  %v1334_v10 = vmul.f32 1.442695, %v1268_v2  ;;  %v1526_v11 = vmul.f32 1.442695, %v1460_v3  ;;  %825 = vmatmul.f32.gmra.mxu3 %v643_v0  ;;  %1002 = vmatmul.f32.gmra.mxu2 %v884_v1  ;;  %v1141_v12 = vmax.f32 %v409_v5, %v682_v6  ;;  %v1718_v14 = vmul.f32 1.442695, %v1652_v4 }
 0x113   : > { %v3849_v13 = vpop.eup %3848 }
 0x114   : > { %v1843_v15 = vadd.f32 %v3849_v13, %v3847_v9  ;;  %3854 = vpow2.f32 %v1334_v10  ;;  %456 = vmatmul.f32.gmra.mxu0 %v338_v7  ;;  %729 = vmatmul.f32.gmra.mxu1 %v611_v8  ;;  %v5165_v16 = vpop.eup %3850 }
 0x115   : > { %3856 = vpow2.f32 %v1526_v11  ;;  %v5167_v17 = vpop.f32.mrf.mxu3  ;;  %v955_v18 = vpop.f32.mrf.mxu2 }
 0x116   : > { %v3853_v19 = vpop.eup %3852  ;;  %v1907_v20 = vadd.f32 %v5165_v16, %v1843_v15  ;;  %v1205_v21 = vmax.f32 %v1141_v12, %v955_v18  ;;  %3858 = vpow2.f32 %v1718_v14  ;;  %v646_v12 = vld [vmem:[%s4894_s10 + $0x1b0] sm:$0xff] }
 0x117   : > { %v2994_v22 = vmul.f32 %v3853_v19, %v3845_v59  ;;  %v2482_v23 = vmul.f32 %v3853_v19, %v3843_v56  ;;  %v2034_v25 = vmul.f32 %v3853_v19, %v3841_v52  ;;  %v613_v59 = vld [vmem:[%s4894_s10 + $0xa8] sm:$0xff] }
 0x118   : > { %3860 = vrcp.f32 %v1907_v20  ;;  %v1269_v27 = vsub.f32 %v409_v5, %v1205_v21  ;;  %v1461_v28 = vsub.f32 %v682_v6, %v1205_v21  ;;  %v1653_v29 = vsub.f32 %v955_v18, %v1205_v21  ;;  %v887_v18 = vld [vmem:[%s5040_s5 + $0xb0] sm:$0xff] }
 0x119   : > { %3060 = vperm.xlu2 %3839, %v2994_v22   ;;  %2548 = vperm.xlu1 %3838, %v2482_v23   ;;  %v412_v31 = vpop.f32.mrf.mxu0  ;;  %v685_v32 = vpop.f32.mrf.mxu1  ;;  %v341_v21 = vld [vmem:[%s4886_s30 + $0xb0] sm:$0xff] }
 0x11a   : > { %v3855_v35 = vpop.eup %3854  ;;  %v1336_v36 = vmul.f32 1.442695, %v1269_v27  ;;  %v1528_v37 = vmul.f32 1.442695, %v1461_v28  ;;  %v1720_v38 = vmul.f32 1.442695, %v1653_v29  ;;  %2100 = vperm.xlu0 %3837, %v2034_v25   ;;  %828 = vmatmul.f32.gmra.mxu3 %v644_v26  ;;  %v1142_v39 = vmax.f32 %v412_v31, %v685_v32 }
 0x11b   : > { %v5174_v41 = vpop.eup %3856  ;;  %1005 = vmatmul.f32.gmra.mxu2 %v885_v30  ;;  %v614_v22 = vld [vmem:[%s4894_s10 + $0xb0] sm:$0xff] }
 0x11c   : > { %v1844_v42 = vadd.f32 %v5174_v41, %v3855_v35  ;;  %3862 = vpow2.f32 %v1336_v36  ;;  %459 = vmatmul.f32.gmra.mxu0 %v339_v33  ;;  %732 = vmatmul.f32.gmra.mxu1 %v612_v34  ;;  %v5177_v43 = vpop.eup %3858 }
 0x11d   : > { %3864 = vpow2.f32 %v1528_v37  ;;  %v5179_v44 = vpop.f32.mrf.mxu3  ;;  %v958_v45 = vpop.f32.mrf.mxu2 }
 0x11e   : > { %v3861_v46 = vpop.eup %3860  ;;  %v1908_v47 = vadd.f32 %v5177_v43, %v1844_v42  ;;  %3866 = vpow2.f32 %v1720_v38  ;;  %v1206_v48 = vmax.f32 %v1142_v39, %v958_v45  ;;  %v647_v39 = vld [vmem:[%s4894_s10 + $0x1b8] sm:$0xff] }
 0x11f   : > { %v2483_v49 = vmul.f32 %v3861_v46, %v3849_v13  ;;  %v2035_v50 = vmul.f32 %v3861_v46, %v3847_v9  ;;  %v2995_v10 = vmul.f32 %v3861_v46, %v5165_v16 }
 0x120   : > { %3868 = vrcp.f32 %v1908_v47  ;;  %v1270_v52 = vsub.f32 %v412_v31, %v1206_v48  ;;  %v1462_v53 = vsub.f32 %v685_v32, %v1206_v48  ;;  %v1654_v54 = vsub.f32 %v958_v45, %v1206_v48  ;;  %v888_v47 = vld [vmem:[%s5040_s5 + $0xb8] sm:$0xff] }
 0x121   : > { %2553 = vperm.xlu2 %3839, %v2483_v49   ;;  %v415_v56 = vpop.f32.mrf.mxu0  ;;  %v688_v57 = vpop.f32.mrf.mxu1 }
 0x122   : > { %v5186_v61 = vpop.eup %3862  ;;  %v1338_v62 = vmul.f32 1.442695, %v1270_v52  ;;  %v1530_v63 = vmul.f32 1.442695, %v1462_v53  ;;  %v1722_v0 = vmul.f32 1.442695, %v1654_v54  ;;  %2105 = vperm.xlu0 %3837, %v2035_v50   ;;  %831 = vmatmul.f32.gmra.mxu3 %v645_v51  ;;  %v1143_v1 = vmax.f32 %v415_v56, %v688_v57 }
 0x123   : > { %v5188_v2 = vpop.eup %3864  ;;  %1008 = vmatmul.f32.gmra.mxu2 %v886_v55  ;;  %v342_v50 = vld [vmem:[%s4886_s30 + $0xb8] sm:$0xff] }
 0x124   : > { %v3867_v3 = vpop.eup %3866  ;;  %v1845_v4 = vadd.f32 %v5188_v2, %v5186_v61  ;;  %3870 = vpow2.f32 %v1338_v62  ;;  %462 = vmatmul.f32.gmra.mxu0 %v340_v58  ;;  %735 = vmatmul.f32.gmra.mxu1 %v613_v59  ;;  %v615_v51 = vld [vmem:[%s4894_s10 + $0xb8] sm:$0xff] }
 0x125   : > { %3872 = vpow2.f32 %v1530_v63  ;;  %v5192_v5 = vpop.f32.mrf.mxu3  ;;  %v961_v6 = vpop.f32.mrf.mxu2 }
 0x126   : > { %v3869_v7 = vpop.eup %3868  ;;  %v1909_v8 = vadd.f32 %v3867_v3, %v1845_v4  ;;  %3874 = vpow2.f32 %v1722_v0  ;;  %v1207_v9 = vmax.f32 %v1143_v1, %v961_v6 }
 0x127   : > { %v2036_v11 = vmul.f32 %v3869_v7, %v3855_v35  ;;  %v2484_v36 = vmul.f32 %v3869_v7, %v5174_v41  ;;  %v2996_v37 = vmul.f32 %v3869_v7, %v5177_v43 }
 0x128   : > { %3876 = vrcp.f32 %v1909_v8  ;;  %v1271_v13 = vsub.f32 %v415_v56, %v1207_v9  ;;  %v1463_v14 = vsub.f32 %v688_v57, %v1207_v9  ;;  %v1655_v15 = vsub.f32 %v961_v6, %v1207_v9  ;;  %v648_v6 = vld [vmem:[%s4894_s10 + $0x1c0] sm:$0xff] }
 0x129   : > { %2110 = vperm.xlu1 %3838, %v2036_v11   ;;  %v418_v19 = vpop.f32.mrf.mxu0  ;;  %v691_v20 = vpop.f32.mrf.mxu1 }
 0x12a   : > { %v3871_v23 = vpop.eup %3870  ;;  %v1340_v25 = vmul.f32 1.442695, %v1271_v13  ;;  %v1532_v26 = vmul.f32 1.442695, %v1463_v14  ;;  %v1724_v27 = vmul.f32 1.442695, %v1655_v15  ;;  %3065 = vperm.xlu0 %3837, %v2995_v10   ;;  %834 = vmatmul.f32.gmra.mxu3 %v646_v12  ;;  %v1144_v28 = vmax.f32 %v418_v19, %v691_v20 }
 0x12b   : > { %v5199_v16 = vpop.eup %3872  ;;  %1011 = vmatmul.f32.gmra.mxu2 %v887_v18  ;;  %v889_v10 = vld [vmem:[%s5040_s5 + $0xc0] sm:$0xff] }
 0x12c   : > { %v3875_v29 = vpop.eup %3874  ;;  %v1846_v30 = vadd.f32 %v5199_v16, %v3871_v23  ;;  %3878 = vpow2.f32 %v1340_v25  ;;  %465 = vmatmul.f32.gmra.mxu0 %v341_v21  ;;  %738 = vmatmul.f32.gmra.mxu1 %v614_v22  ;;  %v343_v13 = vld [vmem:[%s4886_s30 + $0xc0] sm:$0xff] }
 0x12d   : > { %3880 = vpow2.f32 %v1532_v26  ;;  %v5202_v31 = vpop.f32.mrf.mxu3  ;;  %v964_v32 = vpop.f32.mrf.mxu2  ;;  %v616_v14 = vld [vmem:[%s4894_s10 + $0xc0] sm:$0xff] }
 0x12e   : > { %v5204_v33 = vpop.eup %3876  ;;  %v1910_v34 = vadd.f32 %v3875_v29, %v1846_v30  ;;  %3882 = vpow2.f32 %v1724_v27  ;;  %v1208_v35 = vmax.f32 %v1144_v28, %v964_v32 }
 0x12f   : > { %v2997_v38 = vmul.f32 %v5204_v33, %v3867_v3  ;;  %v2037_v1 = vmul.f32 %v5204_v33, %v5186_v61  ;;  %v2485_v30 = vmul.f32 %v5204_v33, %v5188_v2 }
 0x130   : > { %3884 = vrcp.f32 %v1910_v34  ;;  %v1272_v42 = vsub.f32 %v418_v19, %v1208_v35  ;;  %v1464_v45 = vsub.f32 %v691_v20, %v1208_v35  ;;  %v1656_v46 = vsub.f32 %v964_v32, %v1208_v35  ;;  %v649_v35 = vld [vmem:[%s4894_s10 + $0x1c8] sm:$0xff] }
 0x131   : > { %3070 = vperm.xlu1 %3838, %v2996_v37   ;;  %3075 = vperm.xlu2 %3839, %v2997_v38   ;;  %v421_v48 = vpop.f32.mrf.mxu0  ;;  %v694_v49 = vpop.f32.mrf.mxu1 }
 0x132   : > { %v5213_v52 = vpop.eup %3878  ;;  %v1342_v53 = vmul.f32 1.442695, %v1272_v42  ;;  %v1534_v41 = vmul.f32 1.442695, %v1464_v45  ;;  %v1726_v54 = vmul.f32 1.442695, %v1656_v46  ;;  %2558 = vperm.xlu0 %3837, %v2484_v36   ;;  %837 = vmatmul.f32.gmra.mxu3 %v647_v39  ;;  %v1145_v43 = vmax.f32 %v421_v48, %v694_v49 }
 0x133   : > { %v3881_v55 = vpop.eup %3880  ;;  %1014 = vmatmul.f32.gmra.mxu2 %v888_v47  ;;  %v890_v39 = vld [vmem:[%s5040_s5 + $0xc8] sm:$0xff] }
 0x134   : > { %v5215_v56 = vpop.eup %3882  ;;  %v1847_v57 = vadd.f32 %v3881_v55, %v5213_v52  ;;  %3886 = vpow2.f32 %v1342_v53  ;;  %468 = vmatmul.f32.gmra.mxu0 %v342_v50  ;;  %741 = vmatmul.f32.gmra.mxu1 %v615_v51  ;;  %v344_v46 = vld [vmem:[%s4886_s30 + $0xc8] sm:$0xff] }
 0x135   : > { %3888 = vpow2.f32 %v1534_v41  ;;  %v5218_v58 = vpop.f32.mrf.mxu3  ;;  %v967_v59 = vpop.f32.mrf.mxu2  ;;  %v617_v47 = vld [vmem:[%s4894_s10 + $0xc8] sm:$0xff] }
 0x136   : > { %v3885_v62 = vpop.eup %3884  ;;  %v1911_v63 = vadd.f32 %v5215_v56, %v1847_v57  ;;  %3890 = vpow2.f32 %v1726_v54  ;;  %v1209_v0 = vmax.f32 %v1145_v43, %v967_v59 }
 0x137   : > { %v2998_v3 = vmul.f32 %v3885_v62, %v3875_v29  ;;  %v2038_v4 = vmul.f32 %v3885_v62, %v3871_v23  ;;  %v2486_v32 = vmul.f32 %v3885_v62, %v5199_v16 }
 0x138   : > { %3892 = vrcp.f32 %v1911_v63  ;;  %v1273_v7 = vsub.f32 %v421_v48, %v1209_v0  ;;  %v1465_v8 = vsub.f32 %v694_v49, %v1209_v0  ;;  %v1657_v9 = vsub.f32 %v967_v59, %v1209_v0  ;;  %v650_v0 = vld [vmem:[%s4894_s10 + $0x1d0] sm:$0xff] }
 0x139   : > { %2115 = vperm.xlu1 %3838, %v2037_v1   ;;  %2120 = vperm.xlu2 %3839, %v2038_v4   ;;  %v424_v11 = vpop.f32.mrf.mxu0  ;;  %v697_v12 = vpop.f32.mrf.mxu1 }
 0x13a   : > { %v3887_v15 = vpop.eup %3886  ;;  %v1344_v18 = vmul.f32 1.442695, %v1273_v7  ;;  %v1536_v19 = vmul.f32 1.442695, %v1465_v8  ;;  %v1728_v20 = vmul.f32 1.442695, %v1657_v9  ;;  %3080 = vperm.xlu0 %3837, %v2998_v3   ;;  %840 = vmatmul.f32.gmra.mxu3 %v648_v6  ;;  %v1146_v61 = vmax.f32 %v424_v11, %v697_v12 }
 0x13b   : > { %v5227_v21 = vpop.eup %3888  ;;  %1017 = vmatmul.f32.gmra.mxu2 %v889_v10  ;;  %v891_v6 = vld [vmem:[%s5040_s5 + $0xd0] sm:$0xff] }
 0x13c   : > { %v5229_v22 = vpop.eup %3890  ;;  %v1848_v23 = vadd.f32 %v5227_v21, %v3887_v15  ;;  %3894 = vpow2.f32 %v1344_v18  ;;  %471 = vmatmul.f32.gmra.mxu0 %v343_v13  ;;  %744 = vmatmul.f32.gmra.mxu1 %v616_v14  ;;  %v345_v9 = vld [vmem:[%s4886_s30 + $0xd0] sm:$0xff] }
 0x13d   : > { %3896 = vpow2.f32 %v1536_v19  ;;  %v5232_v25 = vpop.f32.mrf.mxu3  ;;  %v970_v26 = vpop.f32.mrf.mxu2  ;;  %v618_v10 = vld [vmem:[%s4894_s10 + $0xd0] sm:$0xff] }
 0x13e   : > { %v3893_v27 = vpop.eup %3892  ;;  %v1912_v28 = vadd.f32 %v5229_v22, %v1848_v23  ;;  %3898 = vpow2.f32 %v1728_v20  ;;  %v1210_v29 = vmax.f32 %v1146_v61, %v970_v26 }
 0x13f   : > { %v2487_v34 = vmul.f32 %v3893_v27, %v3881_v55  ;;  %v2999_v59 = vmul.f32 %v3893_v27, %v5215_v56  ;;  %v2039_v62 = vmul.f32 %v3893_v27, %v5213_v52 }
 0x140   : > { %3900 = vrcp.f32 %v1912_v28  ;;  %v1274_v36 = vsub.f32 %v424_v11, %v1210_v29  ;;  %v1466_v37 = vsub.f32 %v697_v12, %v1210_v29  ;;  %v1658_v38 = vsub.f32 %v970_v26, %v1210_v29 }
 0x141   : > { %2563 = vperm.xlu1 %3838, %v2485_v30   ;;  %2568 = vperm.xlu2 %3839, %v2486_v32   ;;  %v427_v42 = vpop.f32.mrf.mxu0  ;;  %v700_v45 = vpop.f32.mrf.mxu1  ;;  %v651_v30 = vld [vmem:[%s4894_s10 + $0x1d8] sm:$0xff] }
 0x142   : > { %v5242_v48 = vpop.eup %3894  ;;  %v1346_v49 = vmul.f32 1.442695, %v1274_v36  ;;  %v1538_v50 = vmul.f32 1.442695, %v1466_v37  ;;  %v1730_v2 = vmul.f32 1.442695, %v1658_v38  ;;  %2573 = vperm.xlu0 %3837, %v2487_v34   ;;  %843 = vmatmul.f32.gmra.mxu3 %v649_v35  ;;  %v1147_v16 = vmax.f32 %v427_v42, %v700_v45 }
 0x143   : > { %v5244_v33 = vpop.eup %3896  ;;  %1020 = vmatmul.f32.gmra.mxu2 %v890_v39  ;;  %v892_v36 = vld [vmem:[%s5040_s5 + $0xd8] sm:$0xff] }
 0x144   : > { %v3899_v51 = vpop.eup %3898  ;;  %v1849_v53 = vadd.f32 %v5244_v33, %v5242_v48  ;;  %3902 = vpow2.f32 %v1346_v49  ;;  %474 = vmatmul.f32.gmra.mxu0 %v344_v46  ;;  %747 = vmatmul.f32.gmra.mxu1 %v617_v47  ;;  %v346_v39 = vld [vmem:[%s4886_s30 + $0xd8] sm:$0xff] }
 0x145   : > { %3904 = vpow2.f32 %v1538_v50  ;;  %v5248_v41 = vpop.f32.mrf.mxu3  ;;  %v973_v54 = vpop.f32.mrf.mxu2 }
 0x146   : > { %v3901_v43 = vpop.eup %3900  ;;  %v1913_v55 = vadd.f32 %v3899_v51, %v1849_v53  ;;  %3906 = vpow2.f32 %v1730_v2  ;;  %v1211_v57 = vmax.f32 %v1147_v16, %v973_v54 }
 0x147   : > { %v2040_v63 = vmul.f32 %v3901_v43, %v3887_v15  ;;  %v3000_v27 = vmul.f32 %v3901_v43, %v5229_v22  ;;  %v2488_v28 = vmul.f32 %v3901_v43, %v5227_v21 }
 0x148   : > { %3908 = vrcp.f32 %v1913_v55  ;;  %v1275_v1 = vsub.f32 %v427_v42, %v1211_v57  ;;  %v1467_v3 = vsub.f32 %v700_v45, %v1211_v57  ;;  %v1659_v4 = vsub.f32 %v973_v54, %v1211_v57  ;;  %v619_v42 = vld [vmem:[%s4894_s10 + $0xd8] sm:$0xff] }
 0x149   : > { %3085 = vperm.xlu1 %3838, %v2999_v59   ;;  %2125 = vperm.xlu2 %3839, %v2039_v62   ;;  %v430_v7 = vpop.f32.mrf.mxu0  ;;  %v703_v8 = vpop.f32.mrf.mxu1  ;;  %v652_v62 = vld [vmem:[%s4894_s10 + $0x1e0] sm:$0xff] }
 0x14a   : > { %v5256_v11 = vpop.eup %3902  ;;  %v1348_v12 = vmul.f32 1.442695, %v1275_v1  ;;  %v1540_v13 = vmul.f32 1.442695, %v1467_v3  ;;  %v1732_v56 = vmul.f32 1.442695, %v1659_v4  ;;  %2130 = vperm.xlu0 %3837, %v2040_v63   ;;  %846 = vmatmul.f32.gmra.mxu3 %v650_v0  ;;  %v1148_v52 = vmax.f32 %v430_v7, %v703_v8 }
 0x14b   : > { %v3905_v14 = vpop.eup %3904  ;;  %1023 = vmatmul.f32.gmra.mxu2 %v891_v6  ;;  %v893_v3 = vld [vmem:[%s5040_s5 + $0xe0] sm:$0xff] }
 0x14c   : > { %v5258_v15 = vpop.eup %3906  ;;  %v1850_v18 = vadd.f32 %v3905_v14, %v5256_v11  ;;  %3910 = vpow2.f32 %v1348_v12  ;;  %477 = vmatmul.f32.gmra.mxu0 %v345_v9  ;;  %750 = vmatmul.f32.gmra.mxu1 %v618_v10 }
 0x14d   : > { %3912 = vpow2.f32 %v1540_v13  ;;  %v5261_v19 = vpop.f32.mrf.mxu3  ;;  %v976_v20 = vpop.f32.mrf.mxu2 }
 0x14e   : > { %v3909_v61 = vpop.eup %3908  ;;  %v1914_v23 = vadd.f32 %v5258_v15, %v1850_v18  ;;  %3914 = vpow2.f32 %v1732_v56  ;;  %v1212_v26 = vmax.f32 %v1148_v52, %v976_v20 }
 0x14f   : > { %v3001_v29 = vmul.f32 %v3909_v61, %v3899_v51  ;;  %v2489_v55 = vmul.f32 %v3909_v61, %v5244_v33  ;;  %v2041_v57 = vmul.f32 %v3909_v61, %v5242_v48 }
 0x150   : > { %3916 = vrcp.f32 %v1914_v23  ;;  %v1276_v32 = vsub.f32 %v430_v7, %v1212_v26  ;;  %v1468_v34 = vsub.f32 %v703_v8, %v1212_v26  ;;  %v1660_v35 = vsub.f32 %v976_v20, %v1212_v26  ;;  %v347_v7 = vld [vmem:[%s4886_s30 + $0xe0] sm:$0xff] }
 0x151   : > { %3090 = vperm.xlu2 %3839, %v3000_v27   ;;  %2578 = vperm.xlu1 %3838, %v2488_v28   ;;  %v433_v37 = vpop.f32.mrf.mxu0  ;;  %v706_v38 = vpop.f32.mrf.mxu1  ;;  %v620_v8 = vld [vmem:[%s4894_s10 + $0xe0] sm:$0xff] }
 0x152   : > { %v3911_v45 = vpop.eup %3910  ;;  %v1350_v46 = vmul.f32 1.442695, %v1276_v32  ;;  %v1542_v47 = vmul.f32 1.442695, %v1468_v34  ;;  %v1734_v49 = vmul.f32 1.442695, %v1660_v35  ;;  %3095 = vperm.xlu0 %3837, %v3001_v29   ;;  %849 = vmatmul.f32.gmra.mxu3 %v651_v30  ;;  %v1149_v21 = vmax.f32 %v433_v37, %v706_v38 }
 0x153   : > { %v5270_v22 = vpop.eup %3912  ;;  %1026 = vmatmul.f32.gmra.mxu2 %v892_v36  ;;  %v653_v29 = vld [vmem:[%s4894_s10 + $0x1e8] sm:$0xff] }
 0x154   : > { %v5272_v50 = vpop.eup %3914  ;;  %v1851_v2 = vadd.f32 %v5270_v22, %v3911_v45  ;;  %3918 = vpow2.f32 %v1350_v46  ;;  %480 = vmatmul.f32.gmra.mxu0 %v346_v39  ;;  %753 = vmatmul.f32.gmra.mxu1 %v619_v42  ;;  %v894_v35 = vld [vmem:[%s5040_s5 + $0xe8] sm:$0xff] }
 0x155   : > { %3920 = vpow2.f32 %v1542_v47  ;;  %v5275_v16 = vpop.f32.mrf.mxu3  ;;  %v979_v51 = vpop.f32.mrf.mxu2  ;;  %v621_v39 = vld [vmem:[%s4894_s10 + $0xe8] sm:$0xff] }
 0x156   : > { %v3917_v53 = vpop.eup %3916  ;;  %v1915_v54 = vadd.f32 %v5272_v50, %v1851_v2  ;;  %3922 = vpow2.f32 %v1734_v49  ;;  %v1213_v43 = vmax.f32 %v1149_v21, %v979_v51 }
 0x157   : > { %v2490_v59 = vmul.f32 %v3917_v53, %v3905_v14  ;;  %v3002_v26 = vmul.f32 %v3917_v53, %v5258_v15  ;;  %v2042_v27 = vmul.f32 %v3917_v53, %v5256_v11 }
 0x158   : > { %3924 = vrcp.f32 %v1915_v54  ;;  %v1277_v63 = vsub.f32 %v433_v37, %v1213_v43  ;;  %v1469_v0 = vsub.f32 %v706_v38, %v1213_v43  ;;  %v1661_v1 = vsub.f32 %v979_v51, %v1213_v43  ;;  %v348_v38 = vld [vmem:[%s4886_s30 + $0xe8] sm:$0xff] }
 0x159   : > { %2583 = vperm.xlu2 %3839, %v2489_v55   ;;  %2135 = vperm.xlu1 %3838, %v2041_v57   ;;  %v436_v4 = vpop.f32.mrf.mxu0  ;;  %v709_v6 = vpop.f32.mrf.mxu1 }
 0x15a   : > { %v5284_v9 = vpop.eup %3918  ;;  %v1352_v10 = vmul.f32 1.442695, %v1277_v63  ;;  %v1544_v12 = vmul.f32 1.442695, %v1469_v0  ;;  %v1736_v33 = vmul.f32 1.442695, %v1661_v1  ;;  %2588 = vperm.xlu0 %3837, %v2490_v59   ;;  %852 = vmatmul.f32.gmra.mxu3 %v652_v62  ;;  %v1150_v48 = vmax.f32 %v436_v4, %v709_v6 }
 0x15b   : > { %v5286_v13 = vpop.eup %3920  ;;  %1029 = vmatmul.f32.gmra.mxu2 %v893_v3  ;;  %v654_v62 = vld [vmem:[%s4894_s10 + $0x1f0] sm:$0xff] }
 0x15c   : > { %v3923_v56 = vpop.eup %3922  ;;  %v1852_v52 = vadd.f32 %v5286_v13, %v5284_v9  ;;  %3926 = vpow2.f32 %v1352_v10  ;;  %483 = vmatmul.f32.gmra.mxu0 %v347_v7  ;;  %756 = vmatmul.f32.gmra.mxu1 %v620_v8  ;;  %v895_v3 = vld [vmem:[%s5040_s5 + $0xf0] sm:$0xff] }
 0x15d   : > { %3928 = vpow2.f32 %v1544_v12  ;;  %v5290_v14 = vpop.f32.mrf.mxu3  ;;  %v982_v18 = vpop.f32.mrf.mxu2  ;;  %v349_v7 = vld [vmem:[%s4886_s30 + $0xf0] sm:$0xff] }
 0x15e   : > { %v3925_v20 = vpop.eup %3924  ;;  %v1916_v61 = vadd.f32 %v3923_v56, %v1852_v52  ;;  %3930 = vpow2.f32 %v1736_v33  ;;  %v1214_v23 = vmax.f32 %v1150_v48, %v982_v18  ;;  %v622_v8 = vld [vmem:[%s4894_s10 + $0xf0] sm:$0xff] }
 0x15f   : > { %v2043_v28 = vmul.f32 %v3925_v20, %v3911_v45  ;;  %v3003_v55 = vmul.f32 %v3925_v20, %v5272_v50  ;;  %v2491_v57 = vmul.f32 %v3925_v20, %v5270_v22 }
 0x160   : > { %3932 = vrcp.f32 %v1916_v61  ;;  %v1278_v30 = vsub.f32 %v436_v4, %v1214_v23  ;;  %v1470_v32 = vsub.f32 %v709_v6, %v1214_v23  ;;  %v1662_v34 = vsub.f32 %v982_v18, %v1214_v23 }
 0x161   : > { %3100 = vperm.xlu1 %3838, %v3002_v26   ;;  %2140 = vperm.xlu2 %3839, %v2042_v27   ;;  %v439_v36 = vpop.f32.mrf.mxu0  ;;  %v712_v37 = vpop.f32.mrf.mxu1 }
 0x162   : > { %v5298_v42 = vpop.eup %3926  ;;  %v1354_v46 = vmul.f32 1.442695, %v1278_v30  ;;  %v1546_v47 = vmul.f32 1.442695, %v1470_v32  ;;  %v1738_v15 = vmul.f32 1.442695, %v1662_v34  ;;  %2145 = vperm.xlu0 %3837, %v2043_v28   ;;  %855 = vmatmul.f32.gmra.mxu3 %v653_v29  ;;  %v1151_v11 = vmax.f32 %v439_v36, %v712_v37 }
 0x163   : > { %v3929_v45 = vpop.eup %3928  ;;  %1032 = vmatmul.f32.gmra.mxu2 %v894_v35  ;;  %v655_v30 = vld [vmem:[%s4894_s10 + $0x1f8] sm:$0xff] }
 0x164   : > { %v5300_v49 = vpop.eup %3930  ;;  %v1853_v21 = vadd.f32 %v3929_v45, %v5298_v42  ;;  %3934 = vpow2.f32 %v1354_v46  ;;  %486 = vmatmul.f32.gmra.mxu0 %v348_v38  ;;  %759 = vmatmul.f32.gmra.mxu1 %v621_v39  ;;  %v350_v39 = vld [vmem:[%s4886_s30 + $0xf8] sm:$0xff] }
 0x165   : > { %3936 = vpow2.f32 %v1546_v47  ;;  %v5303_v2 = vpop.f32.mrf.mxu3  ;;  %v985_v51 = vpop.f32.mrf.mxu2  ;;  %v623_v46 = vld [vmem:[%s4894_s10 + $0xf8] sm:$0xff] }
 0x166   : > { %6998 = vst [vmem:[#allocation14_spill] sm:$0xff] %v5303_v2  ;;  %v3933_v53 = vpop.eup %3932  ;;  %v1917_v54 = vadd.f32 %v5300_v49, %v1853_v21  ;;  %3938 = vpow2.f32 %v1738_v15  ;;  %v1215_v43 = vmax.f32 %v1151_v11, %v985_v51 }
 0x167   : > { %v3004_v59 = vmul.f32 %v3933_v53, %v3923_v56  ;;  %v2492_v27 = vmul.f32 %v3933_v53, %v5286_v13  ;;  %v2044_v28 = vmul.f32 %v3933_v53, %v5284_v9 }
 0x168   : > { %3940 = vrcp.f32 %v1917_v54  ;;  %v1279_v63 = vsub.f32 %v439_v36, %v1215_v43  ;;  %v1471_v0 = vsub.f32 %v712_v37, %v1215_v43  ;;  %v1663_v1 = vsub.f32 %v985_v51, %v1215_v43  ;;  %v896_v36 = vld [vmem:[%s5040_s5 + $0xf8] sm:$0xff] }
 0x169   : > { %3105 = vperm.xlu2 %3839, %v3003_v55   ;;  %2593 = vperm.xlu1 %3838, %v2491_v57   ;;  %v442_v4 = vpop.f32.mrf.mxu0  ;;  %v715_v6 = vpop.f32.mrf.mxu1 }
 0x16a   : > { %v3935_v10 = vpop.eup %3934  ;;  %v1356_v12 = vmul.f32 1.442695, %v1279_v63  ;;  %v1548_v33 = vmul.f32 1.442695, %v1471_v0  ;;  %v1740_v48 = vmul.f32 1.442695, %v1663_v1  ;;  %3110 = vperm.xlu0 %3837, %v3004_v59   ;;  %858 = vmatmul.f32.gmra.mxu3 %v654_v62  ;;  %v1152_v22 = vmax.f32 %v442_v4, %v715_v6 }
 0x16b   : > { %v5312_v50 = vpop.eup %3936  ;;  %1035 = vmatmul.f32.gmra.mxu2 %v895_v3  ;;  %v913_v0 = vld [vmem:[%s5040_s5 + $0x180] sm:$0xff] }
 0x16c   : > { %v5314_v56 = vpop.eup %3938  ;;  %v1854_v52 = vadd.f32 %v5312_v50, %v3935_v10  ;;  %3942 = vpow2.f32 %v1356_v12  ;;  %489 = vmatmul.f32.gmra.mxu0 %v349_v7  ;;  %762 = vmatmul.f32.gmra.mxu1 %v622_v8  ;;  %v897_v7 = vld [vmem:[%s5040_s5 + $0x100] sm:$0xff] }
 0x16d   : > { %3944 = vpow2.f32 %v1548_v33  ;;  %v5317_v18 = vpop.f32.mrf.mxu3  ;;  %v988_v20 = vpop.f32.mrf.mxu2  ;;  %v351_v33 = vld [vmem:[%s4886_s30 + $0x100] sm:$0xff] }
 0x16e   : > { %6999 = vst [vmem:[#allocation15_spill] sm:$0xff] %v5317_v18  ;;  %v3941_v61 = vpop.eup %3940  ;;  %v1918_v23 = vadd.f32 %v5314_v56, %v1854_v52  ;;  %3946 = vpow2.f32 %v1740_v48  ;;  %v1216_v26 = vmax.f32 %v1152_v22, %v988_v20  ;;  %v624_v48 = vld [vmem:[%s4894_s10 + $0x100] sm:$0xff] }
 0x16f   : > { %v2493_v29 = vmul.f32 %v3941_v61, %v3929_v45  ;;  %v3005_v59 = vmul.f32 %v3941_v61, %v5300_v49  ;;  %v2045_v62 = vmul.f32 %v3941_v61, %v5298_v42 }
 0x170   : > { %3948 = vrcp.f32 %v1918_v23  ;;  %v1280_v32 = vsub.f32 %v442_v4, %v1216_v26  ;;  %v1472_v34 = vsub.f32 %v715_v6, %v1216_v26  ;;  %v1664_v35 = vsub.f32 %v988_v20, %v1216_v26 }
 0x171   : > { %2598 = vperm.xlu2 %3839, %v2492_v27   ;;  %2150 = vperm.xlu1 %3838, %v2044_v28   ;;  %v445_v37 = vpop.f32.mrf.mxu0  ;;  %v718_v38 = vpop.f32.mrf.mxu1 }
 0x172   : > { %v5326_v47 = vpop.eup %3942  ;;  %v1358_v15 = vmul.f32 1.442695, %v1280_v32  ;;  %v1550_v11 = vmul.f32 1.442695, %v1472_v34  ;;  %v1742_v13 = vmul.f32 1.442695, %v1664_v35  ;;  %2603 = vperm.xlu0 %3837, %v2493_v29   ;;  %861 = vmatmul.f32.gmra.mxu3 %v655_v30  ;;  %v1153_v9 = vmax.f32 %v445_v37, %v718_v38 }
 0x173   : > { %v5328_v45 = vpop.eup %3944  ;;  %1038 = vmatmul.f32.gmra.mxu2 %v896_v36  ;;  %v5337_v1 = vpop.permute.xlu2 %3060  ;;  %v914_v36 = vld [vmem:[%s5040_s5 + $0x188] sm:$0xff] }
 0x174   : > { %v3947_v21 = vpop.eup %3946  ;;  %v1855_v51 = vadd.f32 %v5328_v45, %v5326_v47  ;;  %3950 = vpow2.f32 %v1358_v15  ;;  %492 = vmatmul.f32.gmra.mxu0 %v350_v39  ;;  %765 = vmatmul.f32.gmra.mxu1 %v623_v46  ;;  %v898_v46 = vld [vmem:[%s5040_s5 + $0x108] sm:$0xff] }
 0x175   : > { %3952 = vpow2.f32 %v1550_v11  ;;  %v5332_v53 = vpop.f32.mrf.mxu3  ;;  %v991_v54 = vpop.f32.mrf.mxu2 }
 0x176   : > { %7000 = vst [vmem:[#allocation16_spill] sm:$0xff] %v5332_v53  ;;  %v3949_v43 = vpop.eup %3948  ;;  %v1919_v55 = vadd.f32 %v3947_v21, %v1855_v51  ;;  %3954 = vpow2.f32 %v1742_v13  ;;  %v1217_v57 = vmax.f32 %v1153_v9, %v991_v54  ;;  %v352_v13 = vld [vmem:[%s4886_s30 + $0x108] sm:$0xff] }
 0x177   : > { %v2046_v63 = vmul.f32 %v3949_v43, %v3935_v10  ;;  %v3006_v32 = vmul.f32 %v3949_v43, %v5314_v56  ;;  %v2494_v34 = vmul.f32 %v3949_v43, %v5312_v50  ;;  %v625_v9 = vld [vmem:[%s4894_s10 + $0x108] sm:$0xff] }
 0x178   : > { %3956 = vrcp.f32 %v1919_v55  ;;  %v1281_v3 = vsub.f32 %v445_v37, %v1217_v57  ;;  %v1473_v4 = vsub.f32 %v718_v38, %v1217_v57  ;;  %v1665_v6 = vsub.f32 %v991_v54, %v1217_v57 }
 0x179   : > { %3115 = vperm.xlu1 %3838, %v3005_v59   ;;  %2155 = vperm.xlu2 %3839, %v2045_v62   ;;  %v448_v8 = vpop.f32.mrf.mxu0  ;;  %v721_v12 = vpop.f32.mrf.mxu1 }
 0x17a   : > { %v5342_v22 = vpop.eup %3950  ;;  %v1360_v49 = vmul.f32 1.442695, %v1281_v3  ;;  %v1552_v52 = vmul.f32 1.442695, %v1473_v4  ;;  %v1744_v42 = vmul.f32 1.442695, %v1665_v6  ;;  %2160 = vperm.xlu0 %3837, %v2046_v63   ;;  %1089 = vmatmul.f32.vlgmr.msra.gmra.mxu3 %v913_v0  ;;  %v1154_v10 = vmax.f32 %v448_v8, %v721_v12 }
 0x17b   : > { %v3953_v20 = vpop.eup %3952  ;;  %1041 = vmatmul.f32.gmra.mxu2 %v897_v7  ;;  %v5360_v43 = vpop.permute.xlu2 %2553 }
 0x17c   : > { %v5344_v61 = vpop.eup %3954  ;;  %v1856_v23 = vadd.f32 %v3953_v20, %v5342_v22  ;;  %3958 = vpow2.f32 %v1360_v49  ;;  %495 = vmatmul.f32.gmra.mxu0 %v351_v33  ;;  %768 = vmatmul.f32.gmra.mxu1 %v624_v48 }
 0x17d   : > { %3960 = vpow2.f32 %v1552_v52  ;;  %v5347_v26 = vpop.f32.mrf.mxu3  ;;  %v994_v27 = vpop.f32.mrf.mxu2  ;;  %v899_v52 = vld [vmem:[%s5040_s5 + $0x110] sm:$0xff] }
 0x17e   : > { %v3957_v28 = vpop.eup %3956  ;;  %v1920_v29 = vadd.f32 %v5344_v61, %v1856_v23  ;;  %3962 = vpow2.f32 %v1744_v42  ;;  %v1218_v30 = vmax.f32 %v1154_v10, %v994_v27  ;;  %v353_v23 = vld [vmem:[%s4886_s30 + $0x110] sm:$0xff] }
 0x17f   : > { %v3007_v35 = vmul.f32 %v3957_v28, %v3947_v21  ;;  %v2495_v6 = vmul.f32 %v3957_v28, %v5328_v45  ;;  %v2047_v7 = vmul.f32 %v3957_v28, %v5326_v47 }
 0x180   : > { %3964 = vrcp.f32 %v1920_v29  ;;  %v1282_v37 = vsub.f32 %v448_v8, %v1218_v30  ;;  %v1474_v38 = vsub.f32 %v721_v12, %v1218_v30  ;;  %v1666_v39 = vsub.f32 %v994_v27, %v1218_v30  ;;  %v915_v12 = vld [vmem:[%s5040_s5 + $0x190] sm:$0xff] }
 0x181   : > { %3120 = vperm.xlu2 %3839, %v3006_v32   ;;  %2608 = vperm.xlu1 %3838, %v2494_v34   ;;  %v451_v15 = vpop.f32.mrf.mxu0  ;;  %v724_v11 = vpop.f32.mrf.mxu1  ;;  %v626_v27 = vld [vmem:[%s4894_s10 + $0x110] sm:$0xff] }
 0x182   : > { %v5356_v51 = vpop.eup %3958  ;;  %v1362_v54 = vmul.f32 1.442695, %v1282_v37  ;;  %v1554_v55 = vmul.f32 1.442695, %v1474_v38  ;;  %v1746_v56 = vmul.f32 1.442695, %v1666_v39  ;;  %3125 = vperm.xlu0 %3837, %v3007_v35   ;;  %1092 = vmatmul.f32.gmra.mxu3 %v914_v36  ;;  %v1155_v50 = vmax.f32 %v451_v15, %v724_v11 }
 0x183   : > { %v5358_v21 = vpop.eup %3960  ;;  %1044 = vmatmul.f32.gmra.mxu2 %v898_v46  ;;  %v4352_v37 = vld [vmem:[%s4894_s10] sm:$0xff] }
 0x184   : > { %v5362_v57 = vpop.eup %3962  ;;  %v1857_v59 = vadd.f32 %v5358_v21, %v5356_v51  ;;  %3966 = vpow2.f32 %v1362_v54  ;;  %498 = vmatmul.f32.gmra.mxu0 %v352_v13  ;;  %771 = vmatmul.f32.gmra.mxu1 %v625_v9  ;;  %v4353_v46 = vld [vmem:[%s4886_s30] sm:$0xff] }
 0x185   : > { %3968 = vpow2.f32 %v1554_v55  ;;  %v5366_v62 = vpop.f32.mrf.mxu3  ;;  %v997_v63 = vpop.f32.mrf.mxu2  ;;  %v4354_v54 = vld [vmem:[%s5040_s5] sm:$0xff] }
 0x186   : > { %v3965_v0 = vpop.eup %3964  ;;  %v1921_v3 = vadd.f32 %v5362_v57, %v1857_v59  ;;  %3970 = vpow2.f32 %v1746_v56  ;;  %v1219_v4 = vmax.f32 %v1155_v50, %v997_v63  ;;  %v3378_v55 = vmul.f32 %v4354_v54, %v5337_v1 }
 0x187   : > { %v2496_v8 = vmul.f32 %v3965_v0, %v3953_v20 }
 0x188   : > { %3972 = vrcp.f32 %v1921_v3  ;;  %v1283_v33 = vsub.f32 %v451_v15, %v1219_v4  ;;  %v1475_v48 = vsub.f32 %v724_v11, %v1219_v4  ;;  %v1667_v49 = vsub.f32 %v997_v63, %v1219_v4 }
 0x189   : > { %2613 = vperm.xlu2 %3839, %v2495_v6   ;;  %2165 = vperm.xlu1 %3838, %v2047_v7   ;;  %v454_v42 = vpop.f32.mrf.mxu0  ;;  %v727_v10 = vpop.f32.mrf.mxu1  ;;  %v3008_v63 = vmul.f32 %v3965_v0, %v5344_v61  ;;  %v2048_v3 = vmul.f32 %v3965_v0, %v5342_v22  ;;  %v916_v6 = vld [vmem:[%s5040_s5 + $0x198] sm:$0xff] }
 0x18a   : > { %v5375_v29 = vpop.eup %3966  ;;  %v1364_v30 = vmul.f32 1.442695, %v1283_v33  ;;  %v1556_v45 = vmul.f32 1.442695, %v1475_v48  ;;  %v1748_v32 = vmul.f32 1.442695, %v1667_v49  ;;  %2618 = vperm.xlu0 %3837, %v2496_v8   ;;  %1095 = vmatmul.f32.gmra.mxu3 %v915_v12  ;;  %v1156_v47 = vmax.f32 %v454_v42, %v727_v10 }
 0x18b   : > { %v5377_v20 = vpop.eup %3968  ;;  %v2549_v28 = vpop.permute.xlu1 %2548  ;;  %1047 = vmatmul.f32.gmra.mxu2 %v899_v52  ;;  %v900_v33 = vld [vmem:[%s5040_s5 + $0x118] sm:$0xff] }
 0x18c   : > { %v5379_v34 = vpop.permute.xlu2 %3075  ;;  %v5381_v35 = vpop.eup %3970  ;;  %v1858_v36 = vadd.f32 %v5377_v20, %v5375_v29  ;;  %3974 = vpow2.f32 %v1364_v30  ;;  %v2866_v38 = vmul.f32 %v4352_v37, %v2549_v28  ;;  %501 = vmatmul.f32.gmra.mxu0 %v353_v23  ;;  %774 = vmatmul.f32.gmra.mxu1 %v626_v27  ;;  %v354_v52 = vld [vmem:[%s4886_s30 + $0x118] sm:$0xff] }
 0x18d   : > { %v2101_v39 = vpop.permute.xlu0 %2100  ;;  %3976 = vpow2.f32 %v1556_v45  ;;  %v5387_v11 = vpop.f32.mrf.mxu3  ;;  %v627_v23 = vld [vmem:[%s4894_s10 + $0x118] sm:$0xff] }
 0x18e   : > { %v2418_v15 = vmul.f32 %v4353_v46, %v2101_v39  ;;  %v1000_v13 = vpop.f32.mrf.mxu2  ;;  %v3973_v9 = vpop.eup %3972  ;;  %v1922_v56 = vadd.f32 %v5381_v35, %v1858_v36  ;;  %3978 = vpow2.f32 %v1748_v32 }
 0x18f   : > { %v1220_v50 = vmax.f32 %v1156_v47, %v1000_v13  ;;  %v2049_v4 = vmul.f32 %v3973_v9, %v5356_v51  ;;  %v3009_v39 = vmul.f32 %v3973_v9, %v5362_v57  ;;  %v2497_v46 = vmul.f32 %v3973_v9, %v5358_v21  ;;  %v628_v57 = vld [vmem:[%s4894_s10 + $0x120] sm:$0xff] }
 0x190   : > { %v2930_v59 = vadd.f32 %v2866_v38, %v2418_v15  ;;  %3980 = vrcp.f32 %v1922_v56 }
 0x191   : > { %v1284_v7 = vsub.f32 %v454_v42, %v1220_v50  ;;  %v1476_v8 = vsub.f32 %v727_v10, %v1220_v50  ;;  %v1668_v12 = vsub.f32 %v1000_v13, %v1220_v50  ;;  %3130 = vperm.xlu1 %3838, %v3008_v63   ;;  %2170 = vperm.xlu2 %3839, %v2048_v3   ;;  %v457_v48 = vpop.f32.mrf.mxu0  ;;  %v730_v49 = vpop.f32.mrf.mxu1  ;;  %v917_v13 = vld [vmem:[%s5040_s5 + $0x1a0] sm:$0xff] }
 0x192   : > { %v3442_v1 = vadd.f32 %v3378_v55, %v2930_v59  ;;  %v5399_v27 = vpop.eup %3974  ;;  %2175 = vperm.xlu0 %3837, %v2049_v4   ;;  %1098 = vmatmul.f32.gmra.mxu3 %v916_v6  ;;  %v1157_v51 = vmax.f32 %v457_v48, %v730_v49  ;;  %v901_v50 = vld [vmem:[%s5040_s5 + $0x120] sm:$0xff]  ;;  %v4355_v59 = vld [vmem:[%s4886_s30 + $0x8] sm:$0xff] }
 0x193   : > { %v1366_v61 = vmul.f32 1.442695, %v1284_v7  ;;  %v1558_v22 = vmul.f32 1.442695, %v1476_v8  ;;  %v1750_v0 = vmul.f32 1.442695, %v1668_v12  ;;  %v5401_v42 = vpop.eup %3976  ;;  %1050 = vmatmul.f32.gmra.mxu2 %v900_v33 }
 0x194   : > { %3506 = vst [vmem:[%s5404_s13] sm:$0xff] %v3442_v1  ;;  %v5407_v10 = vpop.permute.xlu2 %2120  ;;  %v5409_v30 = vpop.eup %3978  ;;  %v1859_v45 = vadd.f32 %v5401_v42, %v5399_v27  ;;  %504 = vmatmul.f32.gmra.mxu0 %v354_v52  ;;  %777 = vmatmul.f32.gmra.mxu1 %v627_v23  ;;  %v355_v6 = vld [vmem:[%s4886_s30 + $0x120] sm:$0xff]  ;;  %v4356_v12 = vld [vmem:[%s4894_s10 + $0x8] sm:$0xff] }
 0x195   : > { %3982 = vpow2.f32 %v1366_v61  ;;  %v2106_v32 = vpop.permute.xlu0 %2105  ;;  %v5413_v47 = vpop.f32.mrf.mxu3  ;;  %v2867_v33 = vmul.f32 %v4356_v12, %v5360_v43  ;;  %v4358_v12 = vld [vmem:[%s4886_s30 + $0x10] sm:$0xff] }
 0x196   : > { %3984 = vpow2.f32 %v1558_v22  ;;  %v1003_v28 = vpop.f32.mrf.mxu2  ;;  %v3981_v36 = vpop.eup %3980  ;;  %v1923_v37 = vadd.f32 %v5409_v30, %v1859_v45  ;;  %v2419_v63 = vmul.f32 %v4355_v59, %v2106_v32 }
 0x197   : > { %3986 = vpow2.f32 %v1750_v0  ;;  %v1221_v38 = vmax.f32 %v1157_v51, %v1003_v28  ;;  %v3010_v15 = vmul.f32 %v3981_v36, %v5381_v35  ;;  %v4357_v0 = vld [vmem:[%s5040_s5 + $0x8] sm:$0xff] }
 0x198   : > { %3988 = vrcp.f32 %v1923_v37  ;;  %v2931_v22 = vadd.f32 %v2867_v33, %v2419_v63  ;;  %v2498_v37 = vmul.f32 %v3981_v36, %v5377_v20 }
 0x199   : > { %v1285_v54 = vsub.f32 %v457_v48, %v1221_v38  ;;  %v1477_v55 = vsub.f32 %v730_v49, %v1221_v38  ;;  %v1669_v56 = vsub.f32 %v1003_v28, %v1221_v38  ;;  %3135 = vperm.xlu2 %3839, %v3009_v39   ;;  %2623 = vperm.xlu1 %3838, %v2497_v46   ;;  %v460_v3 = vpop.f32.mrf.mxu0  ;;  %v733_v4 = vpop.f32.mrf.mxu1 }
 0x19a   : > { %3140 = vperm.xlu0 %3837, %v3010_v15   ;;  %1101 = vmatmul.f32.gmra.mxu3 %v917_v13  ;;  %v1158_v49 = vmax.f32 %v460_v3, %v733_v4  ;;  %v2050_v46 = vmul.f32 %v3981_v36, %v5375_v29  ;;  %v918_v13 = vld [vmem:[%s5040_s5 + $0x1a8] sm:$0xff] }
 0x19b   : > { %v5424_v7 = vpop.eup %3982  ;;  %v1368_v21 = vmul.f32 1.442695, %v1285_v54  ;;  %v1560_v9 = vmul.f32 1.442695, %v1477_v55  ;;  %v1752_v35 = vmul.f32 1.442695, %v1669_v56  ;;  %v2111_v1 = vpop.permute.xlu1 %2110  ;;  %1053 = vmatmul.f32.gmra.mxu2 %v901_v50 }
 0x19c   : > { %v5426_v8 = vpop.eup %3984  ;;  %v5430_v48 = vpop.permute.xlu2 %2568  ;;  %507 = vmatmul.f32.gmra.mxu0 %v355_v6  ;;  %780 = vmatmul.f32.gmra.mxu1 %v628_v57  ;;  %v2420_v33 = vmul.f32 %v4358_v12, %v2111_v1 }
 0x19d   : > { %v5432_v52 = vpop.eup %3986  ;;  %v1860_v23 = vadd.f32 %v5426_v8, %v5424_v7  ;;  %3990 = vpow2.f32 %v1368_v21  ;;  %v3066_v61 = vpop.permute.xlu0 %3065 }
 0x19e   : > { %3992 = vpow2.f32 %v1560_v9  ;;  %v3379_v43 = vmul.f32 %v4357_v0, %v3066_v61  ;;  %v5437_v51 = vpop.f32.mrf.mxu3  ;;  %v3989_v45 = vpop.eup %3988 }
 0x19f   : > { %v1924_v32 = vadd.f32 %v5432_v52, %v1860_v23  ;;  %3994 = vpow2.f32 %v1752_v35  ;;  %v1006_v28 = vpop.f32.mrf.mxu2  ;;  %v2499_v15 = vmul.f32 %v3989_v45, %v5401_v42  ;;  %v902_v35 = vld [vmem:[%s5040_s5 + $0x128] sm:$0xff] }
 0x1a0   : > { %v3443_v38 = vadd.f32 %v3379_v43, %v2931_v22  ;;  %v1222_v39 = vmax.f32 %v1158_v49, %v1006_v28  ;;  %v4359_v49 = vld [vmem:[%s4894_s10 + $0x10] sm:$0xff] }
 0x1a1   : > { %3996 = vrcp.f32 %v1924_v32  ;;  %2628 = vperm.xlu2 %3839, %v2498_v37   ;;  %2180 = vperm.xlu1 %3838, %v2050_v46   ;;  %v463_v50 = vpop.f32.mrf.mxu0  ;;  %v736_v59 = vpop.f32.mrf.mxu1  ;;  %v4360_v43 = vld [vmem:[%s5040_s5 + $0x10] sm:$0xff]  ;;  %v3011_v37 = vmul.f32 %v3989_v45, %v5409_v30  ;;  %v4361_v46 = vld [vmem:[%s4894_s10 + $0x20] sm:$0xff] }
 0x1a2   : > { %3507 = vst [vmem:[%s5404_s13 + $0x8] sm:$0xff] %v3443_v38  ;;  %v1286_v54 = vsub.f32 %v460_v3, %v1222_v39  ;;  %v1478_v55 = vsub.f32 %v733_v4, %v1222_v39  ;;  %v1670_v56 = vsub.f32 %v1006_v28, %v1222_v39  ;;  %2633 = vperm.xlu0 %3837, %v2499_v15  }
 0x1a3   : > { %v5445_v63 = vpop.eup %3990  ;;  %1104 = vmatmul.f32.gmra.mxu3 %v918_v13  ;;  %v3071_v6 = vpop.permute.xlu1 %3070  ;;  %v1159_v4 = vmax.f32 %v463_v50, %v736_v59  ;;  %1056 = vmatmul.f32.gmra.mxu2 %v902_v35  ;;  %v2870_v15 = vmul.f32 %v4361_v46, %v5430_v48  ;;  %v2051_v13 = vmul.f32 %v3989_v45, %v5399_v27 }
 0x1a4   : > { %v5447_v29 = vpop.eup %3992  ;;  %v1370_v20 = vmul.f32 1.442695, %v1286_v54  ;;  %v1562_v42 = vmul.f32 1.442695, %v1478_v55  ;;  %v1754_v36 = vmul.f32 1.442695, %v1670_v56  ;;  %v5449_v3 = vpop.permute.xlu2 %2125  ;;  %v3380_v32 = vmul.f32 %v4360_v43, %v3071_v6 }
 0x1a5   : > { %v5451_v57 = vpop.eup %3994  ;;  %v1861_v21 = vadd.f32 %v5447_v29, %v5445_v63  ;;  %v2559_v9 = vpop.permute.xlu0 %2558  ;;  %v919_v54 = vld [vmem:[%s5040_s5 + $0x1b0] sm:$0xff]  ;;  %v356_v55 = vld [vmem:[%s4886_s30 + $0x128] sm:$0xff] }
 0x1a6   : > { %3998 = vpow2.f32 %v1370_v20  ;;  %v2868_v23 = vmul.f32 %v4359_v49, %v2559_v9  ;;  %v5458_v61 = vpop.f32.mrf.mxu3  ;;  %510 = vmatmul.f32.gmra.mxu0 %v356_v55 }
 0x1a7   : > { %v3997_v22 = vpop.eup %3996  ;;  %v1925_v0 = vadd.f32 %v5451_v57, %v1861_v21  ;;  %4000 = vpow2.f32 %v1562_v42  ;;  %v1009_v28 = vpop.f32.mrf.mxu2  ;;  %v4362_v21 = vld [vmem:[%s4886_s30 + $0x20] sm:$0xff] }
 0x1a8   : > { %4002 = vpow2.f32 %v1754_v36  ;;  %v2932_v1 = vadd.f32 %v2868_v23, %v2420_v33  ;;  %v1223_v38 = vmax.f32 %v1159_v4, %v1009_v28  ;;  %v2052_v39 = vmul.f32 %v3997_v22, %v5424_v7  ;;  %v629_v4 = vld [vmem:[%s4894_s10 + $0x128] sm:$0xff] }
 0x1a9   : > { %4004 = vrcp.f32 %v1925_v0  ;;  %3145 = vperm.xlu1 %3838, %v3011_v37   ;;  %v466_v36 = vpop.f32.mrf.mxu0  ;;  %v739_v6 = vpop.f32.mrf.mxu1  ;;  %2185 = vperm.xlu2 %3839, %v2051_v13   ;;  %v2422_v48 = vmul.f32 %v4362_v21, %v5407_v10  ;;  %v4363_v0 = vld [vmem:[%s5040_s5 + $0x20] sm:$0xff] }
 0x1aa   : > { %v3444_v56 = vadd.f32 %v3380_v32, %v2932_v1  ;;  %v1287_v20 = vsub.f32 %v463_v50, %v1223_v38  ;;  %v1479_v42 = vsub.f32 %v736_v59, %v1223_v38  ;;  %v1671_v30 = vsub.f32 %v1009_v28, %v1223_v38  ;;  %2190 = vperm.xlu0 %3837, %v2052_v39  }
 0x1ab   : > { %1107 = vmatmul.f32.gmra.mxu3 %v919_v54  ;;  %v2116_v9 = vpop.permute.xlu1 %2115  ;;  %v1160_v59 = vmax.f32 %v466_v36, %v739_v6  ;;  %783 = vmatmul.f32.gmra.mxu1 %v629_v4  ;;  %v2934_v23 = vadd.f32 %v2870_v15, %v2422_v48  ;;  %v2500_v1 = vmul.f32 %v3997_v22, %v5426_v8  ;;  %v920_v54 = vld [vmem:[%s5040_s5 + $0x1b8] sm:$0xff] }
 0x1ac   : > { %v5470_v7 = vpop.eup %3998  ;;  %3508 = vst [vmem:[%s5404_s13 + $0x10] sm:$0xff] %v3444_v56  ;;  %v1372_v27 = vmul.f32 1.442695, %v1287_v20  ;;  %v1564_v45 = vmul.f32 1.442695, %v1479_v42  ;;  %v5475_v50 = vpop.permute.xlu2 %3090  ;;  %v3012_v15 = vmul.f32 %v3997_v22, %v5432_v52  ;;  %v4364_v48 = vld [vmem:[%s4886_s30 + $0x18] sm:$0xff] }
 0x1ad   : > { %v5477_v35 = vpop.eup %4000  ;;  %v1756_v12 = vmul.f32 1.442695, %v1671_v30  ;;  %v3081_v33 = vpop.permute.xlu0 %3080 }
 0x1ae   : > { %v5479_v49 = vpop.eup %4002  ;;  %v1862_v10 = vadd.f32 %v5477_v35, %v5470_v7  ;;  %4006 = vpow2.f32 %v1372_v27  ;;  %v3382_v43 = vmul.f32 %v4363_v0, %v3081_v33  ;;  %v5484_v32 = vpop.f32.mrf.mxu3  ;;  %v2421_v27 = vmul.f32 %v4364_v48, %v2116_v9  ;;  %v4366_v0 = vld [vmem:[%s5040_s5 + $0x18] sm:$0xff] }
 0x1af   : > { %v4005_v28 = vpop.eup %4004  ;;  %4008 = vpow2.f32 %v1564_v45  ;;  %v1012_v37 = vpop.f32.mrf.mxu2  ;;  %v4365_v45 = vld [vmem:[%s4894_s10 + $0x18] sm:$0xff] }
 0x1b0   : > { %v1926_v38 = vadd.f32 %v5479_v49, %v1862_v10  ;;  %4010 = vpow2.f32 %v1756_v12  ;;  %v3446_v39 = vadd.f32 %v3382_v43, %v2934_v23  ;;  %v1224_v46 = vmax.f32 %v1160_v59, %v1012_v37 }
 0x1b1   : > { %v3013_v13 = vmul.f32 %v4005_v28, %v5451_v57  ;;  %2638 = vperm.xlu1 %3838, %v2500_v1   ;;  %v469_v42 = vpop.f32.mrf.mxu0  ;;  %v742_v8 = vpop.f32.mrf.mxu1  ;;  %3150 = vperm.xlu2 %3839, %v3012_v15   ;;  %v3381_v43 = vmul.f32 %v4366_v0, %v5379_v34  ;;  %v921_v34 = vld [vmem:[%s5040_s5 + $0x1c0] sm:$0xff]  ;;  %v903_v0 = vld [vmem:[%s5040_s5 + $0x130] sm:$0xff] }
 0x1b2   : > { %4012 = vrcp.f32 %v1926_v38  ;;  %3510 = vst [vmem:[%s5404_s13 + $0x20] sm:$0xff] %v3446_v39  ;;  %v1288_v55 = vsub.f32 %v466_v36, %v1224_v46  ;;  %v1480_v56 = vsub.f32 %v739_v6, %v1224_v46  ;;  %v1672_v20 = vsub.f32 %v1012_v37, %v1224_v46  ;;  %1059 = vmatmul.f32.gmra.mxu2 %v903_v0 }
 0x1b3   : > { %3155 = vperm.xlu0 %3837, %v3013_v13   ;;  %1110 = vmatmul.f32.gmra.mxu3 %v920_v54  ;;  %v2564_v57 = vpop.permute.xlu1 %2563  ;;  %v1161_v36 = vmax.f32 %v469_v42, %v742_v8  ;;  %v2053_v46 = vmul.f32 %v4005_v28, %v5445_v63  ;;  %v4367_v13 = vld [vmem:[%s4894_s10 + $0x28] sm:$0xff] }
 0x1b4   : > { %v5492_v30 = vpop.eup %4006  ;;  %v1374_v4 = vmul.f32 1.442695, %v1288_v55  ;;  %v1566_v21 = vmul.f32 1.442695, %v1480_v56  ;;  %v1758_v52 = vmul.f32 1.442695, %v1672_v20  ;;  %v5494_v22 = vpop.permute.xlu2 %2583  ;;  %v2869_v59 = vmul.f32 %v4365_v45, %v2564_v57 }
 0x1b5   : > { %v5496_v6 = vpop.eup %4008  ;;  %v2574_v12 = vpop.permute.xlu0 %2573  ;;  %v2501_v55 = vmul.f32 %v4005_v28, %v5447_v29 }
 0x1b6   : > { %v5500_v33 = vpop.eup %4010  ;;  %v1863_v23 = vadd.f32 %v5496_v6, %v5492_v30  ;;  %4014 = vpow2.f32 %v1374_v4  ;;  %v5504_v10 = vpop.f32.mrf.mxu3  ;;  %v2933_v37 = vadd.f32 %v2869_v59, %v2421_v27  ;;  %v2871_v54 = vmul.f32 %v4367_v13, %v2574_v12  ;;  %v4369_v12 = vld [vmem:[%s5040_s5 + $0x28] sm:$0xff] }
 0x1b7   : > { %4016 = vpow2.f32 %v1566_v21  ;;  %v1015_v1 = vpop.f32.mrf.mxu2 }
 0x1b8   : > { %v4013_v9 = vpop.eup %4012  ;;  %v1927_v38 = vadd.f32 %v5500_v33, %v1863_v23  ;;  %4018 = vpow2.f32 %v1758_v52  ;;  %v1225_v39 = vmax.f32 %v1161_v36, %v1015_v1  ;;  %v3445_v15 = vadd.f32 %v3381_v43, %v2933_v37  ;;  %v4368_v36 = vld [vmem:[%s4886_s30 + $0x28] sm:$0xff] }
 0x1b9   : > { %v2502_v56 = vmul.f32 %v4013_v9, %v5477_v35  ;;  %2195 = vperm.xlu1 %3838, %v2053_v46   ;;  %v472_v57 = vpop.f32.mrf.mxu0  ;;  %v745_v52 = vpop.f32.mrf.mxu1  ;;  %v2423_v63 = vmul.f32 %v4368_v36, %v5449_v3  ;;  %2643 = vperm.xlu2 %3839, %v2501_v55   ;;  %v2054_v55 = vmul.f32 %v4013_v9, %v5470_v7 }
 0x1ba   : > { %4020 = vrcp.f32 %v1927_v38  ;;  %v1289_v20 = vsub.f32 %v469_v42, %v1225_v39  ;;  %v1481_v4 = vsub.f32 %v742_v8, %v1225_v39  ;;  %v1673_v21 = vsub.f32 %v1015_v1, %v1225_v39  ;;  %3509 = vst [vmem:[%s5404_s13 + $0x18] sm:$0xff] %v3445_v15 }
 0x1bb   : > { %2648 = vperm.xlu0 %3837, %v2502_v56   ;;  %1113 = vmatmul.f32.gmra.mxu3 %v921_v34  ;;  %v3086_v42 = vpop.permute.xlu1 %3085  ;;  %v1162_v27 = vmax.f32 %v472_v57, %v745_v52  ;;  %v2935_v59 = vadd.f32 %v2871_v54, %v2423_v63  ;;  %v3014_v54 = vmul.f32 %v4013_v9, %v5479_v49  ;;  %v922_v34 = vld [vmem:[%s5040_s5 + $0x1c8] sm:$0xff] }
 0x1bc   : > { %v5517_v48 = vpop.eup %4014  ;;  %v1376_v29 = vmul.f32 1.442695, %v1289_v20  ;;  %v1568_v35 = vmul.f32 1.442695, %v1481_v4  ;;  %v1760_v28 = vmul.f32 1.442695, %v1673_v21  ;;  %v5519_v8 = vpop.permute.xlu2 %2140  ;;  %v3383_v23 = vmul.f32 %v4369_v12, %v3086_v42 }
 0x1bd   : > { %v5521_v45 = vpop.eup %4016  ;;  %v2131_v3 = vpop.permute.xlu0 %2130  ;;  %v357_v20 = vld [vmem:[%s4886_s30 + $0x130] sm:$0xff] }
 0x1be   : > { %v4019_v43 = vpop.eup %4018  ;;  %v1864_v37 = vadd.f32 %v5521_v45, %v5517_v48  ;;  %4022 = vpow2.f32 %v1376_v29  ;;  %v5527_v1 = vpop.f32.mrf.mxu3  ;;  %v3447_v38 = vadd.f32 %v3383_v23, %v2935_v59  ;;  %v630_v4 = vld [vmem:[%s4894_s10 + $0x130] sm:$0xff]  ;;  %513 = vmatmul.f32.gmra.mxu0 %v357_v20 }
 0x1bf   : > { %4024 = vpow2.f32 %v1568_v35  ;;  %v1018_v39 = vpop.f32.mrf.mxu2  ;;  %786 = vmatmul.f32.gmra.mxu1 %v630_v4  ;;  %v4371_v12 = vld [vmem:[%s4894_s10 + $0x30] sm:$0xff] }
 0x1c0   : > { %v4021_v46 = vpop.eup %4020  ;;  %v1928_v15 = vadd.f32 %v4019_v43, %v1864_v37  ;;  %4026 = vpow2.f32 %v1760_v28  ;;  %v1226_v13 = vmax.f32 %v1162_v27, %v1018_v39  ;;  %3511 = vst [vmem:[%s5404_s13 + $0x28] sm:$0xff] %v3447_v38  ;;  %v4370_v27 = vld [vmem:[%s4886_s30 + $0x30] sm:$0xff]  ;;  %v904_v37 = vld [vmem:[%s5040_s5 + $0x138] sm:$0xff] }
 0x1c1   : > { %v2055_v56 = vmul.f32 %v4021_v46, %v5492_v30  ;;  %3160 = vperm.xlu1 %3838, %v3014_v54   ;;  %v475_v29 = vpop.f32.mrf.mxu0  ;;  %v748_v35 = vpop.f32.mrf.mxu1  ;;  %2200 = vperm.xlu2 %3839, %v2054_v55   ;;  %v2424_v59 = vmul.f32 %v4370_v27, %v2131_v3  ;;  %v2503_v4 = vmul.f32 %v4021_v46, %v5496_v6  ;;  %v631_v27 = vld [vmem:[%s4894_s10 + $0x138] sm:$0xff] }
 0x1c2   : > { %4028 = vrcp.f32 %v1928_v15  ;;  %v1290_v21 = vsub.f32 %v472_v57, %v1226_v13  ;;  %v1482_v36 = vsub.f32 %v745_v52, %v1226_v13  ;;  %v1674_v63 = vsub.f32 %v1018_v39, %v1226_v13  ;;  %1062 = vmatmul.f32.gmra.mxu2 %v904_v37  ;;  %v4372_v13 = vld [vmem:[%s5040_s5 + $0x30] sm:$0xff]  ;;  %v4373_v37 = vld [vmem:[%s4894_s10 + $0x38] sm:$0xff] }
 0x1c3   : > { %2205 = vperm.xlu0 %3837, %v2055_v56   ;;  %1116 = vmatmul.f32.gmra.mxu3 %v922_v34  ;;  %v2579_v28 = vpop.permute.xlu1 %2578  ;;  %v1163_v52 = vmax.f32 %v475_v29, %v748_v35  ;;  %v3384_v54 = vmul.f32 %v4372_v13, %v5475_v50  ;;  %v4374_v13 = vld [vmem:[%s4886_s30 + $0x38] sm:$0xff] }
 0x1c4   : > { %v5536_v49 = vpop.eup %4022  ;;  %v1378_v7 = vmul.f32 1.442695, %v1290_v21  ;;  %v1570_v30 = vmul.f32 1.442695, %v1482_v36  ;;  %v1762_v9 = vmul.f32 1.442695, %v1674_v63  ;;  %v5538_v57 = vpop.permute.xlu2 %3105  ;;  %v2872_v23 = vmul.f32 %v4371_v12, %v2579_v28 }
 0x1c5   : > { %v5540_v42 = vpop.eup %4024  ;;  %v3096_v0 = vpop.permute.xlu0 %3095  ;;  %v3015_v36 = vmul.f32 %v4021_v46, %v5500_v33  ;;  %v358_v28 = vld [vmem:[%s4886_s30 + $0x138] sm:$0xff] }
 0x1c6   : > { %v5545_v38 = vpop.eup %4026  ;;  %v1865_v39 = vadd.f32 %v5540_v42, %v5536_v49  ;;  %4030 = vpow2.f32 %v1378_v7  ;;  %v5549_v15 = vpop.f32.mrf.mxu3  ;;  %v2936_v3 = vadd.f32 %v2872_v23, %v2424_v59  ;;  %v923_v7 = vld [vmem:[%s5040_s5 + $0x1d0] sm:$0xff]  ;;  %516 = vmatmul.f32.gmra.mxu0 %v358_v28 }
 0x1c7   : > { %4032 = vpow2.f32 %v1570_v30  ;;  %v1021_v55 = vpop.f32.mrf.mxu2  ;;  %789 = vmatmul.f32.gmra.mxu1 %v631_v27 }
 0x1c8   : > { %v4029_v56 = vpop.eup %4028  ;;  %v1929_v34 = vadd.f32 %v5545_v38, %v1865_v39  ;;  %4034 = vpow2.f32 %v1762_v9  ;;  %v1227_v20 = vmax.f32 %v1163_v52, %v1021_v55  ;;  %v3448_v21 = vadd.f32 %v3384_v54, %v2936_v3 }
 0x1c9   : > { %v3016_v63 = vmul.f32 %v4029_v56, %v4019_v43  ;;  %2653 = vperm.xlu1 %3838, %v2503_v4   ;;  %v478_v12 = vpop.f32.mrf.mxu0  ;;  %v751_v23 = vpop.f32.mrf.mxu1  ;;  %3165 = vperm.xlu2 %3839, %v3015_v36   ;;  %v2873_v39 = vmul.f32 %v4373_v37, %v5494_v22  ;;  %v4375_v4 = vld [vmem:[%s5040_s5 + $0x38] sm:$0xff]  ;;  %v2056_v27 = vmul.f32 %v4029_v56, %v5517_v48 }
 0x1ca   : > { %4036 = vrcp.f32 %v1929_v34  ;;  %v1291_v50 = vsub.f32 %v475_v29, %v1227_v20  ;;  %v1483_v30 = vsub.f32 %v748_v35, %v1227_v20  ;;  %v1675_v59 = vsub.f32 %v1021_v55, %v1227_v20  ;;  %3512 = vst [vmem:[%s5404_s13 + $0x30] sm:$0xff] %v3448_v21 }
 0x1cb   : > { %3170 = vperm.xlu0 %3837, %v3016_v63   ;;  %1119 = vmatmul.f32.gmra.mxu3 %v923_v7  ;;  %v2136_v9 = vpop.permute.xlu1 %2135  ;;  %v1164_v35 = vmax.f32 %v478_v12, %v751_v23  ;;  %v3385_v21 = vmul.f32 %v4375_v4, %v3096_v0  ;;  %v924_v0 = vld [vmem:[%s5040_s5 + $0x1d8] sm:$0xff] }
 0x1cc   : > { %v5560_v6 = vpop.eup %4030  ;;  %v1380_v33 = vmul.f32 1.442695, %v1291_v50  ;;  %v1572_v43 = vmul.f32 1.442695, %v1483_v30  ;;  %v1764_v46 = vmul.f32 1.442695, %v1675_v59  ;;  %v5562_v29 = vpop.permute.xlu2 %2598  ;;  %v2425_v54 = vmul.f32 %v4374_v13, %v2136_v9 }
 0x1cd   : > { %v5564_v52 = vpop.eup %4032  ;;  %v2589_v3 = vpop.permute.xlu0 %2588  ;;  %v4376_v30 = vld [vmem:[%s4894_s10 + $0x40] sm:$0xff] }
 0x1ce   : > { %v5569_v55 = vpop.eup %4034  ;;  %v1866_v34 = vadd.f32 %v5564_v52, %v5560_v6  ;;  %4038 = vpow2.f32 %v1380_v33  ;;  %v5573_v20 = vpop.f32.mrf.mxu3  ;;  %v2937_v36 = vadd.f32 %v2873_v39, %v2425_v54  ;;  %v2874_v59 = vmul.f32 %v4376_v30, %v2589_v3 }
 0x1cf   : > { %4040 = vpow2.f32 %v1572_v43  ;;  %v1024_v63 = vpop.f32.mrf.mxu2  ;;  %v2504_v33 = vmul.f32 %v4029_v56, %v5521_v45 }
 0x1d0   : > { %v4037_v7 = vpop.eup %4036  ;;  %v1930_v22 = vadd.f32 %v5569_v55, %v1866_v34  ;;  %4042 = vpow2.f32 %v1764_v46  ;;  %v1228_v28 = vmax.f32 %v1164_v35, %v1024_v63  ;;  %v3449_v50 = vadd.f32 %v3385_v21, %v2937_v36  ;;  %v4377_v35 = vld [vmem:[%s4886_s30 + $0x40] sm:$0xff] }
 0x1d1   : > { %v2505_v9 = vmul.f32 %v4037_v7, %v5540_v42  ;;  %2210 = vperm.xlu1 %3838, %v2056_v27   ;;  %v481_v13 = vpop.f32.mrf.mxu0  ;;  %v754_v46 = vpop.f32.mrf.mxu1  ;;  %v2426_v48 = vmul.f32 %v4377_v35, %v5519_v8  ;;  %2658 = vperm.xlu2 %3839, %v2504_v33   ;;  %v4378_v21 = vld [vmem:[%s5040_s5 + $0x40] sm:$0xff] }
 0x1d2   : > { %4044 = vrcp.f32 %v1930_v22  ;;  %v1292_v43 = vsub.f32 %v478_v12, %v1228_v28  ;;  %v1484_v37 = vsub.f32 %v751_v23, %v1228_v28  ;;  %v1676_v39 = vsub.f32 %v1024_v63, %v1228_v28  ;;  %3513 = vst [vmem:[%s5404_s13 + $0x38] sm:$0xff] %v3449_v50  ;;  %v905_v63 = vld [vmem:[%s5040_s5 + $0x140] sm:$0xff] }
 0x1d3   : > { %2663 = vperm.xlu0 %3837, %v2505_v9   ;;  %1122 = vmatmul.f32.gmra.mxu3 %v924_v0  ;;  %v3101_v12 = vpop.permute.xlu1 %3100  ;;  %v1165_v3 = vmax.f32 %v481_v13, %v754_v46  ;;  %v2938_v4 = vadd.f32 %v2874_v59, %v2426_v48  ;;  %v3017_v0 = vmul.f32 %v4037_v7, %v5545_v38  ;;  %v359_v35 = vld [vmem:[%s4886_s30 + $0x140] sm:$0xff] }
 0x1d4   : > { %v5585_v54 = vpop.eup %4038  ;;  %v1382_v45 = vmul.f32 1.442695, %v1292_v43  ;;  %v1574_v42 = vmul.f32 1.442695, %v1484_v37  ;;  %v1766_v56 = vmul.f32 1.442695, %v1676_v39  ;;  %v5587_v23 = vpop.permute.xlu2 %2155  ;;  %v3386_v36 = vmul.f32 %v4378_v21, %v3101_v12  ;;  %1065 = vmatmul.f32.gmra.mxu2 %v905_v63  ;;  %519 = vmatmul.f32.gmra.mxu0 %v359_v35 }
 0x1d5   : > { %v5589_v34 = vpop.eup %4040  ;;  %v2146_v8 = vpop.permute.xlu0 %2145  ;;  %v2057_v43 = vmul.f32 %v4037_v7, %v5536_v49  ;;  %v925_v39 = vld [vmem:[%s5040_s5 + $0x1e0] sm:$0xff] }
 0x1d6   : > { %v4043_v22 = vpop.eup %4042  ;;  %v1867_v28 = vadd.f32 %v5589_v34, %v5585_v54  ;;  %4046 = vpow2.f32 %v1382_v45  ;;  %v5595_v27 = vpop.f32.mrf.mxu3  ;;  %v3450_v50 = vadd.f32 %v3386_v36, %v2938_v4  ;;  %v632_v48 = vld [vmem:[%s4894_s10 + $0x140] sm:$0xff]  ;;  %v4379_v36 = vld [vmem:[%s4886_s30 + $0x48] sm:$0xff] }
 0x1d7   : > { %4048 = vpow2.f32 %v1574_v42  ;;  %v1027_v30 = vpop.f32.mrf.mxu2  ;;  %792 = vmatmul.f32.gmra.mxu1 %v632_v48  ;;  %v2427_v63 = vmul.f32 %v4379_v36, %v2146_v8  ;;  %v926_v36 = vld [vmem:[%s5040_s5 + $0x1e8] sm:$0xff] }
 0x1d8   : > { %v4045_v59 = vpop.eup %4044  ;;  %v1931_v33 = vadd.f32 %v4043_v22, %v1867_v28  ;;  %4050 = vpow2.f32 %v1766_v56  ;;  %v1229_v9 = vmax.f32 %v1165_v3, %v1027_v30  ;;  %3514 = vst [vmem:[%s5404_s13 + $0x40] sm:$0xff] %v3450_v50  ;;  %v4380_v28 = vld [vmem:[%s4894_s10 + $0x48] sm:$0xff] }
 0x1d9   : > { %v2058_v37 = vmul.f32 %v4045_v59, %v5560_v6  ;;  %3175 = vperm.xlu1 %3838, %v3017_v0   ;;  %v484_v4 = vpop.f32.mrf.mxu0  ;;  %v757_v21 = vpop.f32.mrf.mxu1  ;;  %2215 = vperm.xlu2 %3839, %v2057_v43   ;;  %v4381_v43 = vld [vmem:[%s5040_s5 + $0x48] sm:$0xff] }
 0x1da   : > { %4052 = vrcp.f32 %v1931_v33  ;;  %v1293_v45 = vsub.f32 %v481_v13, %v1229_v9  ;;  %v1485_v12 = vsub.f32 %v754_v46, %v1229_v9  ;;  %v1677_v42 = vsub.f32 %v1027_v30, %v1229_v9 }
 0x1db   : > { %2220 = vperm.xlu0 %3837, %v2058_v37   ;;  %1125 = vmatmul.f32.gmra.mxu3 %v925_v39  ;;  %v2594_v56 = vpop.permute.xlu1 %2593  ;;  %v1166_v13 = vmax.f32 %v484_v4, %v757_v21  ;;  %v3387_v37 = vmul.f32 %v4381_v43, %v5538_v57  ;;  %v4383_v43 = vld [vmem:[%s4886_s30 + $0x50] sm:$0xff] }
 0x1dc   : > { %v5604_v38 = vpop.eup %4046  ;;  %v1384_v49 = vmul.f32 1.442695, %v1293_v45  ;;  %v1576_v7 = vmul.f32 1.442695, %v1485_v12  ;;  %v1768_v6 = vmul.f32 1.442695, %v1677_v42  ;;  %v5606_v3 = vpop.permute.xlu2 %3120  ;;  %v2875_v50 = vmul.f32 %v4380_v28, %v2594_v56 }
 0x1dd   : > { %v5608_v46 = vpop.eup %4048  ;;  %v3111_v30 = vpop.permute.xlu0 %3110  ;;  %v2506_v12 = vmul.f32 %v4045_v59, %v5564_v52  ;;  %v3018_v56 = vmul.f32 %v4045_v59, %v5569_v55 }
 0x1de   : > { %v5612_v33 = vpop.eup %4050  ;;  %v1868_v9 = vadd.f32 %v5608_v46, %v5604_v38  ;;  %4054 = vpow2.f32 %v1384_v49  ;;  %v5616_v0 = vpop.f32.mrf.mxu3  ;;  %v2939_v39 = vadd.f32 %v2875_v50, %v2427_v63  ;;  %v4382_v50 = vld [vmem:[%s4894_s10 + $0x50] sm:$0xff] }
 0x1df   : > { %4056 = vpow2.f32 %v1576_v7  ;;  %v1030_v35 = vpop.f32.mrf.mxu2 }
 0x1e0   : > { %v4053_v48 = vpop.eup %4052  ;;  %v1932_v8 = vadd.f32 %v5612_v33, %v1868_v9  ;;  %4058 = vpow2.f32 %v1768_v6  ;;  %v1230_v45 = vmax.f32 %v1166_v13, %v1030_v35  ;;  %v3451_v42 = vadd.f32 %v3387_v37, %v2939_v39 }
 0x1e1   : > { %v3019_v49 = vmul.f32 %v4053_v48, %v4043_v22  ;;  %2668 = vperm.xlu1 %3838, %v2506_v12   ;;  %v487_v7 = vpop.f32.mrf.mxu0  ;;  %v760_v63 = vpop.f32.mrf.mxu1  ;;  %3180 = vperm.xlu2 %3839, %v3018_v56   ;;  %v2876_v9 = vmul.f32 %v4382_v50, %v5562_v29  ;;  %v2507_v50 = vmul.f32 %v4053_v48, %v5589_v34 }
 0x1e2   : > { %4060 = vrcp.f32 %v1932_v8  ;;  %v1294_v28 = vsub.f32 %v484_v4, %v1230_v45  ;;  %v1486_v53 = vsub.f32 %v757_v21, %v1230_v45  ;;  %v1678_v57 = vsub.f32 %v1030_v35, %v1230_v45  ;;  %3515 = vst [vmem:[%s5404_s13 + $0x48] sm:$0xff] %v3451_v42  ;;  %v4384_v45 = vld [vmem:[%s5040_s5 + $0x50] sm:$0xff] }
 0x1e3   : > { %3185 = vperm.xlu0 %3837, %v3019_v49   ;;  %1128 = vmatmul.f32.gmra.mxu3 %v926_v36  ;;  %v2151_v22 = vpop.permute.xlu1 %2150  ;;  %v1167_v4 = vmax.f32 %v487_v7, %v760_v63  ;;  %v3388_v12 = vmul.f32 %v4384_v45, %v3111_v30  ;;  %v927_v30 = vld [vmem:[%s5040_s5 + $0x1f0] sm:$0xff] }
 0x1e4   : > { %v5625_v6 = vpop.eup %4054  ;;  %v1386_v52 = vmul.f32 1.442695, %v1294_v28  ;;  %v1578_v13 = vmul.f32 1.442695, %v1486_v53  ;;  %v1770_v55 = vmul.f32 1.442695, %v1678_v57  ;;  %v5627_v59 = vpop.permute.xlu2 %2613  ;;  %v2428_v37 = vmul.f32 %v4383_v43, %v2151_v22 }
 0x1e5   : > { %v5629_v21 = vpop.eup %4056  ;;  %v2604_v39 = vpop.permute.xlu0 %2603  ;;  %v2059_v28 = vmul.f32 %v4053_v48, %v5585_v54  ;;  %v4385_v22 = vld [vmem:[%s4894_s10 + $0x58] sm:$0xff] }
 0x1e6   : > { %v5634_v35 = vpop.eup %4058  ;;  %v1869_v53 = vadd.f32 %v5629_v21, %v5625_v6  ;;  %4062 = vpow2.f32 %v1386_v52  ;;  %v5638_v8 = vpop.f32.mrf.mxu3  ;;  %v2940_v42 = vadd.f32 %v2876_v9, %v2428_v37  ;;  %v2877_v52 = vmul.f32 %v4385_v22, %v2604_v39 }
 0x1e7   : > { %4064 = vpow2.f32 %v1578_v13  ;;  %v1033_v56 = vpop.f32.mrf.mxu2 }
 0x1e8   : > { %v4061_v49 = vpop.eup %4060  ;;  %v1933_v29 = vadd.f32 %v5634_v35, %v1869_v53  ;;  %4066 = vpow2.f32 %v1770_v55  ;;  %v1231_v36 = vmax.f32 %v1167_v4, %v1033_v56  ;;  %v3452_v57 = vadd.f32 %v3388_v12, %v2940_v42  ;;  %v4386_v4 = vld [vmem:[%s4886_s30 + $0x58] sm:$0xff] }
 0x1e9   : > { %v2508_v43 = vmul.f32 %v4061_v49, %v5608_v46  ;;  %2225 = vperm.xlu1 %3838, %v2059_v28   ;;  %v490_v53 = vpop.f32.mrf.mxu0  ;;  %v763_v55 = vpop.f32.mrf.mxu1  ;;  %v2429_v54 = vmul.f32 %v4386_v4, %v5587_v23  ;;  %2673 = vperm.xlu2 %3839, %v2507_v50   ;;  %v928_v4 = vld [vmem:[%s5040_s5 + $0x1f8] sm:$0xff] }
 0x1ea   : > { %4068 = vrcp.f32 %v1933_v29  ;;  %v1295_v13 = vsub.f32 %v487_v7, %v1231_v36  ;;  %v1487_v9 = vsub.f32 %v760_v63, %v1231_v36  ;;  %v1679_v37 = vsub.f32 %v1033_v56, %v1231_v36  ;;  %3516 = vst [vmem:[%s5404_s13 + $0x50] sm:$0xff] %v3452_v57  ;;  %v4387_v56 = vld [vmem:[%s5040_s5 + $0x58] sm:$0xff] }
 0x1eb   : > { %2678 = vperm.xlu0 %3837, %v2508_v43   ;;  %1131 = vmatmul.f32.gmra.mxu3 %v927_v30  ;;  %v3116_v45 = vpop.permute.xlu1 %3115  ;;  %v1168_v63 = vmax.f32 %v490_v53, %v763_v55  ;;  %v2941_v42 = vadd.f32 %v2877_v52, %v2429_v54  ;;  %v906_v54 = vld [vmem:[%s5040_s5 + $0x148] sm:$0xff] }
 0x1ec   : > { %v5650_v39 = vpop.eup %4062  ;;  %v1388_v34 = vmul.f32 1.442695, %v1295_v13  ;;  %v1580_v48 = vmul.f32 1.442695, %v1487_v9  ;;  %v1772_v46 = vmul.f32 1.442695, %v1679_v37  ;;  %v5652_v7 = vpop.permute.xlu2 %2170  ;;  %v3389_v29 = vmul.f32 %v4387_v56, %v3116_v45  ;;  %1068 = vmatmul.f32.gmra.mxu2 %v906_v54 }
 0x1ed   : > { %v5654_v12 = vpop.eup %4064  ;;  %v2161_v23 = vpop.permute.xlu0 %2160  ;;  %v3020_v13 = vmul.f32 %v4061_v49, %v5612_v33  ;;  %v2060_v9 = vmul.f32 %v4061_v49, %v5604_v38  ;;  %v4390_v54 = vld [vmem:[%s5040_s5 + $0x60] sm:$0xff] }
 0x1ee   : > { %v4067_v36 = vpop.eup %4066  ;;  %v1870_v28 = vadd.f32 %v5654_v12, %v5650_v39  ;;  %4070 = vpow2.f32 %v1388_v34  ;;  %v5659_v57 = vpop.f32.mrf.mxu3  ;;  %v3453_v22 = vadd.f32 %v3389_v29, %v2941_v42  ;;  %v4388_v29 = vld [vmem:[%s4886_s30 + $0x60] sm:$0xff] }
 0x1ef   : > { %7001 = vst [vmem:[#allocation17_spill] sm:$0xff] %v5659_v57  ;;  %4072 = vpow2.f32 %v1580_v48  ;;  %v1036_v50 = vpop.f32.mrf.mxu2 }
 0x1f0   : > { %v4069_v43 = vpop.eup %4068  ;;  %v1934_v30 = vadd.f32 %v4067_v36, %v1870_v28  ;;  %4074 = vpow2.f32 %v1772_v46  ;;  %v1232_v52 = vmax.f32 %v1168_v63, %v1036_v50  ;;  %3517 = vst [vmem:[%s5404_s13 + $0x58] sm:$0xff] %v3453_v22  ;;  %v2430_v28 = vmul.f32 %v4388_v29, %v2161_v23  ;;  %v4389_v22 = vld [vmem:[%s4894_s10 + $0x60] sm:$0xff] }
 0x1f1   : > { %v2061_v37 = vmul.f32 %v4069_v43, %v5625_v6  ;;  %3190 = vperm.xlu1 %3838, %v3020_v13   ;;  %v493_v48 = vpop.f32.mrf.mxu0  ;;  %v766_v42 = vpop.f32.mrf.mxu1  ;;  %2230 = vperm.xlu2 %3839, %v2060_v9   ;;  %v633_v13 = vld [vmem:[%s4894_s10 + $0x148] sm:$0xff] }
 0x1f2   : > { %4076 = vrcp.f32 %v1934_v30  ;;  %v1296_v34 = vsub.f32 %v490_v53, %v1232_v52  ;;  %v1488_v45 = vsub.f32 %v763_v55, %v1232_v52  ;;  %v1680_v56 = vsub.f32 %v1036_v50, %v1232_v52  ;;  %v360_v52 = vld [vmem:[%s4886_s30 + $0x148] sm:$0xff]  ;;  %795 = vmatmul.f32.gmra.mxu1 %v633_v13 }
 0x1f3   : > { %2235 = vperm.xlu0 %3837, %v2061_v37   ;;  %1134 = vmatmul.f32.gmra.mxu3 %v928_v4  ;;  %v2609_v46 = vpop.permute.xlu1 %2608  ;;  %v1169_v55 = vmax.f32 %v493_v48, %v766_v42 }
 0x1f4   : > { %v5667_v33 = vpop.eup %4070  ;;  %v1390_v38 = vmul.f32 1.442695, %v1296_v34  ;;  %v1582_v6 = vmul.f32 1.442695, %v1488_v45  ;;  %v1774_v49 = vmul.f32 1.442695, %v1680_v56  ;;  %v5669_v53 = vpop.permute.xlu2 %3135  ;;  %v2878_v50 = vmul.f32 %v4389_v22, %v2609_v46  ;;  %522 = vmatmul.f32.gmra.mxu0 %v360_v52 }
 0x1f5   : > { %v5671_v63 = vpop.eup %4072  ;;  %v3126_v30 = vpop.permute.xlu0 %3125  ;;  %v3390_v34 = vmul.f32 %v4390_v54, %v5606_v3  ;;  %v2509_v22 = vmul.f32 %v4069_v43, %v5629_v21 }
 0x1f6   : > { %v5677_v9 = vpop.eup %4074  ;;  %v1871_v37 = vadd.f32 %v5671_v63, %v5667_v33  ;;  %4078 = vpow2.f32 %v1390_v38  ;;  %v5681_v4 = vpop.f32.mrf.mxu3  ;;  %v2942_v23 = vadd.f32 %v2878_v50, %v2430_v28  ;;  %v907_v50 = vld [vmem:[%s5040_s5 + $0x150] sm:$0xff] }
 0x1f7   : > { %7002 = vst [vmem:[#allocation18_spill] sm:$0xff] %v5681_v4  ;;  %4080 = vpow2.f32 %v1582_v6  ;;  %v1039_v45 = vpop.f32.mrf.mxu2  ;;  %v3021_v4 = vmul.f32 %v4069_v43, %v5634_v35  ;;  %1071 = vmatmul.f32.gmra.mxu2 %v907_v50 }
 0x1f8   : > { %v4077_v56 = vpop.eup %4076  ;;  %v1935_v46 = vadd.f32 %v5677_v9, %v1871_v37  ;;  %4082 = vpow2.f32 %v1774_v49  ;;  %v1233_v29 = vmax.f32 %v1169_v55, %v1039_v45  ;;  %v3454_v38 = vadd.f32 %v3390_v34, %v2942_v23  ;;  %v4392_v34 = vld [vmem:[%s4886_s30 + $0x68] sm:$0xff] }
 0x1f9   : > { %v3022_v52 = vmul.f32 %v4077_v56, %v4067_v36  ;;  %2683 = vperm.xlu1 %3838, %v2509_v22   ;;  %v5688_v6 = vpop.f32.mrf.mxu0  ;;  %v5690_v28 = vpop.f32.mrf.mxu1  ;;  %3195 = vperm.xlu2 %3839, %v3021_v4   ;;  %v1186_v37 = vmax.f32 %v5147_v24, %v5347_v26  ;;  %v4391_v4 = vld [vmem:[%s4894_s10 + $0x68] sm:$0xff] }
 0x1fa   : > { %4084 = vrcp.f32 %v1935_v46  ;;  %v1297_v13 = vsub.f32 %v493_v48, %v1233_v29  ;;  %v1489_v18 = vsub.f32 %v766_v42, %v1233_v29  ;;  %v1681_v3 = vsub.f32 %v1039_v45, %v1233_v29  ;;  %3518 = vst [vmem:[%s5404_s13 + $0x60] sm:$0xff] %v3454_v38  ;;  %v4393_v29 = vld [vmem:[%s5040_s5 + $0x68] sm:$0xff] }
 0x1fb   : > { %3200 = vperm.xlu0 %3837, %v3022_v52   ;;  %v2166_v43 = vpop.permute.xlu1 %2165  ;;  %v1170_v42 = vmax.f32 %v5688_v6, %v5690_v28  ;;  %v2879_v54 = vmul.f32 %v4391_v4, %v5627_v59  ;;  %v3391_v22 = vmul.f32 %v4393_v29, %v3126_v30  ;;  %v2510_v52 = vmul.f32 %v4077_v56, %v5654_v12  ;;  %v4394_v30 = vld [vmem:[%s4894_s10 + $0x70] sm:$0xff] }
 0x1fc   : > { %v5694_v21 = vpop.eup %4078  ;;  %v1392_v49 = vmul.f32 1.442695, %v1297_v13  ;;  %v1584_v35 = vmul.f32 1.442695, %v1489_v18  ;;  %v1776_v36 = vmul.f32 1.442695, %v1681_v3  ;;  %v5696_v48 = vpop.permute.xlu2 %2628  ;;  %v2431_v18 = vmul.f32 %v4392_v34, %v2166_v43 }
 0x1fd   : > { %v5700_v55 = vpop.eup %4080  ;;  %v2619_v23 = vpop.permute.xlu0 %2618  ;;  %v361_v13 = vld [vmem:[%s4886_s30 + $0x150] sm:$0xff]  ;;  %v2062_v4 = vmul.f32 %v4077_v56, %v5650_v39 }
 0x1fe   : > { %v5707_v45 = vpop.eup %4082  ;;  %v1872_v46 = vadd.f32 %v5700_v55, %v5694_v21  ;;  %4086 = vpow2.f32 %v1392_v49  ;;  %v1090_v38 = vpop.f32.mrf.mxu3  ;;  %v634_v3 = vld [vmem:[%s4894_s10 + $0x150] sm:$0xff]  ;;  %v2943_v50 = vadd.f32 %v2879_v54, %v2431_v18  ;;  %525 = vmatmul.f32.gmra.mxu0 %v361_v13  ;;  %v2880_v49 = vmul.f32 %v4394_v30, %v2619_v23 }
 0x1ff   : > { %4088 = vpow2.f32 %v1584_v35  ;;  %v1250_v59 = vmax.f32 %v1186_v37, %v1090_v38  ;;  %v1042_v43 = vpop.f32.mrf.mxu2  ;;  %798 = vmatmul.f32.gmra.mxu1 %v634_v3  ;;  %v4395_v37 = vld [vmem:[%s4886_s30 + $0x70] sm:$0xff] }
 0x200   : > { %v4085_v34 = vpop.eup %4084  ;;  %v1936_v57 = vadd.f32 %v5707_v45, %v1872_v46  ;;  %4090 = vpow2.f32 %v1776_v36  ;;  %v1234_v29 = vmax.f32 %v1170_v42, %v1042_v43  ;;  %v3455_v12 = vadd.f32 %v3391_v22, %v2943_v50  ;;  %v4396_v50 = vld [vmem:[%s5040_s5 + $0x70] sm:$0xff] }
 0x201   : > { %v1314_v2 = vsub.f32 %v5147_v24, %v1250_v59  ;;  %v1506_v35 = vsub.f32 %v5347_v26, %v1250_v59  ;;  %v1698_v54 = vsub.f32 %v1090_v38, %v1250_v59  ;;  %v2432_v18 = vmul.f32 %v4395_v37, %v5652_v7  ;;  %2240 = vperm.xlu1 %3838, %v2062_v4   ;;  %v499_v36 = vpop.f32.mrf.mxu0  ;;  %v5724_v46 = vpop.f32.mrf.mxu1 }
 0x202   : > { %4092 = vrcp.f32 %v1936_v57  ;;  %v1298_v39 = vsub.f32 %v5688_v6, %v1234_v29  ;;  %v1490_v56 = vsub.f32 %v5690_v28, %v1234_v29  ;;  %3519 = vst [vmem:[%s5404_s13 + $0x68] sm:$0xff] %v3455_v12  ;;  %v1682_v24 = vsub.f32 %v1042_v43, %v1234_v29  ;;  %2688 = vperm.xlu2 %3839, %v2510_v52  }
 0x203   : > { %v1426_v42 = vmul.f32 1.442695, %v1314_v2  ;;  %v1618_v23 = vmul.f32 1.442695, %v1506_v35  ;;  %v2511_v26 = vmul.f32 %v4085_v34, %v5671_v63  ;;  %v1810_v7 = vmul.f32 1.442695, %v1698_v54  ;;  %v3131_v38 = vpop.permute.xlu1 %3130 }
 0x204   : > { %v5728_v22 = vpop.eup %4086  ;;  %v1394_v57 = vmul.f32 1.442695, %v1298_v39  ;;  %v1171_v6 = vmax.f32 %v499_v36, %v5724_v46  ;;  %v2944_v13 = vadd.f32 %v2880_v49, %v2432_v18  ;;  %v1586_v3 = vmul.f32 1.442695, %v1490_v56  ;;  %v5734_v43 = vpop.permute.xlu2 %2185 }
 0x205   : > { %v5731_v28 = vpop.eup %4088  ;;  %4094 = vpow2.f32 %v1426_v42  ;;  %2693 = vperm.xlu0 %3837, %v2511_v26   ;;  %v3392_v2 = vmul.f32 %v4396_v50, %v3131_v38  ;;  %v2176_v59 = vpop.permute.xlu0 %2175  ;;  %v1187_v63 = vmax.f32 %v5153_v40, %v5366_v62  ;;  %v1778_v49 = vmul.f32 1.442695, %v1682_v24  ;;  %v4397_v38 = vld [vmem:[%s4886_s30 + $0x78] sm:$0xff] }
 0x206   : > { %v5736_v52 = vpop.eup %4090  ;;  %v1873_v4 = vadd.f32 %v5731_v28, %v5728_v22  ;;  %4096 = vpow2.f32 %v1618_v23  ;;  %v5742_v30 = vpop.f32.mrf.mxu3  ;;  %v3023_v35 = vmul.f32 %v4085_v34, %v5677_v9  ;;  %v2063_v56 = vmul.f32 %v4085_v34, %v5667_v33  ;;  %v908_v9 = vld [vmem:[%s5040_s5 + $0x158] sm:$0xff] }
 0x207   : > { %4098 = vpow2.f32 %v1810_v7  ;;  %v3456_v29 = vadd.f32 %v3392_v2, %v2944_v13  ;;  %v1045_v12 = vpop.f32.mrf.mxu2  ;;  %v5747_v18 = vmax.f32 %v1187_v63, %v5742_v30  ;;  %1074 = vmatmul.f32.gmra.mxu2 %v908_v9  ;;  %v1188_v63 = vmax.f32 %v5159_v60, %v5387_v11 }
 0x208   : > { %v4093_v54 = vpop.eup %4092  ;;  %v1937_v37 = vadd.f32 %v5736_v52, %v1873_v4  ;;  %4100 = vpow2.f32 %v1394_v57  ;;  %v1235_v39 = vmax.f32 %v1171_v6, %v1045_v12  ;;  %v2433_v6 = vmul.f32 %v4397_v38, %v2176_v59  ;;  %v4399_v59 = vld [vmem:[%s5040_s5 + $0x78] sm:$0xff] }
 0x209   : > { %4102 = vpow2.f32 %v1586_v3  ;;  %3520 = vst [vmem:[%s5404_s13 + $0x70] sm:$0xff] %v3456_v29  ;;  %3205 = vperm.xlu1 %3838, %v3023_v35   ;;  %v1315_v7 = vsub.f32 %v5153_v40, %v5747_v18  ;;  %v2064_v33 = vmul.f32 %v4093_v54, %v5694_v21  ;;  %v1507_v13 = vsub.f32 %v5366_v62, %v5747_v18  ;;  %v4398_v3 = vld [vmem:[%s4894_s10 + $0x78] sm:$0xff]  ;;  %v5781_v9 = vpop.f32.mrf.mxu0 }
 0x20a   : > { %4104 = vrcp.f32 %v1937_v37  ;;  %v1299_v42 = vsub.f32 %v499_v36, %v1235_v39  ;;  %v1491_v23 = vsub.f32 %v5724_v46, %v1235_v39  ;;  %2245 = vperm.xlu2 %3839, %v2063_v56   ;;  %v362_v29 = vld [vmem:[%s4886_s30 + $0x158] sm:$0xff]  ;;  %v3393_v62 = vmul.f32 %v4399_v59, %v5669_v53 }
 0x20b   : > { %v5753_v24 = vpop.eup %4094  ;;  %4106 = vpow2.f32 %v1778_v49  ;;  %v2624_v34 = vpop.permute.xlu1 %2623  ;;  %v1683_v49 = vsub.f32 %v1045_v12, %v1235_v39  ;;  %v635_v35 = vld [vmem:[%s4894_s10 + $0x158] sm:$0xff]  ;;  %528 = vmatmul.f32.gmra.mxu0 %v362_v29  ;;  %v1428_v39 = vmul.f32 1.442695, %v1315_v7  ;;  %v1620_v53 = vmul.f32 1.442695, %v1507_v13 }
 0x20c   : > { %v5755_v26 = vpop.eup %4096  ;;  %v1396_v57 = vmul.f32 1.442695, %v1299_v42  ;;  %v2881_v50 = vmul.f32 %v4398_v3, %v2624_v34  ;;  %v5768_v2 = vpop.permute.xlu2 %3150  ;;  %v1588_v4 = vmul.f32 1.442695, %v1491_v23  ;;  %801 = vmatmul.f32.gmra.mxu1 %v635_v35  ;;  %v2512_v23 = vmul.f32 %v4093_v54, %v5700_v55 }
 0x20d   : > { %v5760_v36 = vpop.eup %4098  ;;  %v1890_v46 = vadd.f32 %v5755_v26, %v5753_v24  ;;  %v3141_v40 = vpop.permute.xlu0 %3140  ;;  %2250 = vperm.xlu0 %3837, %v2064_v33   ;;  %v3024_v3 = vmul.f32 %v4093_v54, %v5707_v45  ;;  %v1699_v45 = vsub.f32 %v5742_v30, %v5747_v18 }
 0x20e   : > { %v5770_v21 = vpop.eup %4100  ;;  %v2945_v42 = vadd.f32 %v2881_v50, %v2433_v6  ;;  %v5783_v34 = vpop.f32.mrf.mxu1  ;;  %4108 = vpow2.f32 %v1396_v57  ;;  %v1780_v50 = vmul.f32 1.442695, %v1683_v49  ;;  %v4401_v49 = vld [vmem:[%s4886_s30 + $0x80] sm:$0xff] }
 0x20f   : > { %v5776_v37 = vpop.eup %4102  ;;  %v1954_v56 = vadd.f32 %v5760_v36, %v1890_v46  ;;  %v5790_v6 = vpop.f32.mrf.mxu3  ;;  %v1172_v7 = vmax.f32 %v5781_v9, %v5783_v34 }
 0x210   : > { %v4105_v38 = vpop.eup %4104  ;;  %v1874_v12 = vadd.f32 %v5776_v37, %v5770_v21  ;;  %v3457_v46 = vadd.f32 %v3393_v62, %v2945_v42  ;;  %v5797_v55 = vpop.f32.mrf.mxu2  ;;  %v5803_v54 = vmax.f32 %v1188_v63, %v5790_v6  ;;  %v4402_v63 = vld [vmem:[%s5040_s5 + $0x80] sm:$0xff] }
 0x211   : > { %v5788_v33 = vpop.eup %4106  ;;  %4110 = vrcp.f32 %v1954_v56  ;;  %2698 = vperm.xlu1 %3838, %v2512_v23   ;;  %v3025_v29 = vmul.f32 %v4105_v38, %v5736_v52  ;;  %v5813_v30 = vmax.f32 %v1172_v7, %v5797_v55  ;;  %v3394_v42 = vmul.f32 %v4402_v63, %v3141_v40 }
 0x212   : > { %4112 = vpow2.f32 %v1588_v4  ;;  %3521 = vst [vmem:[%s5404_s13 + $0x78] sm:$0xff] %v3457_v46  ;;  %3210 = vperm.xlu2 %3839, %v3024_v3   ;;  %v1938_v57 = vadd.f32 %v5788_v33, %v1874_v12  ;;  %v4400_v4 = vld [vmem:[%s4894_s10 + $0x80] sm:$0xff]  ;;  %v1316_v23 = vsub.f32 %v5159_v60, %v5803_v54  ;;  %v1508_v46 = vsub.f32 %v5387_v11, %v5803_v54  ;;  %v4404_v60 = vld [vmem:[%s4886_s30 + $0x88] sm:$0xff] }
 0x213   : > { %4114 = vpow2.f32 %v1428_v39  ;;  %v2181_v13 = vpop.permute.xlu1 %2180  ;;  %v2882_v52 = vmul.f32 %v4400_v4, %v5696_v48  ;;  %v1812_v39 = vmul.f32 1.442695, %v1699_v45  ;;  %v2513_v40 = vmul.f32 %v4105_v38, %v5731_v28 }
 0x214   : > { %4116 = vpow2.f32 %v1620_v53  ;;  %v2434_v35 = vmul.f32 %v4401_v49, %v2181_v13  ;;  %v5808_v62 = vpop.permute.xlu2 %2643  ;;  %v5810_v56 = vpop.eup %4108  ;;  %v2065_v53 = vmul.f32 %v4105_v38, %v5728_v22  ;;  %v2435_v22 = vmul.f32 %v4404_v60, %v5734_v43 }
 0x215   : > { %v2634_v59 = vpop.permute.xlu0 %2633  ;;  %4118 = vpow2.f32 %v1780_v50  ;;  %3215 = vperm.xlu0 %3837, %v3025_v29   ;;  %v4403_v50 = vld [vmem:[%s4894_s10 + $0x88] sm:$0xff]  ;;  %v1430_v38 = vmul.f32 1.442695, %v1316_v23 }
 0x216   : > { %v2946_v48 = vadd.f32 %v2882_v52, %v2434_v35  ;;  %4120 = vrcp.f32 %v1938_v57  ;;  %v2883_v29 = vmul.f32 %v4403_v50, %v2634_v59  ;;  %v1300_v57 = vsub.f32 %v5781_v9, %v5813_v30  ;;  %v4405_v35 = vld [vmem:[%s5040_s5 + $0x88] sm:$0xff] }
 0x217   : > { %v5815_v18 = vpop.eup %4110  ;;  %4122 = vpow2.f32 %v1812_v39  ;;  %v1492_v9 = vsub.f32 %v5783_v34, %v5813_v30  ;;  %v1622_v52 = vmul.f32 1.442695, %v1508_v46  ;;  %v1684_v46 = vsub.f32 %v5797_v55, %v5813_v30  ;;  %v5856_v50 = vpop.f32.mrf.mxu3 }
 0x218   : > { %v5818_v12 = vpop.eup %4112  ;;  %v3458_v3 = vadd.f32 %v3394_v42, %v2946_v48  ;;  %v2082_v13 = vmul.f32 %v5815_v18, %v5753_v24  ;;  %v2947_v49 = vadd.f32 %v2883_v29, %v2435_v22  ;;  %v1700_v24 = vsub.f32 %v5790_v6, %v5803_v54  ;;  %v5867_v30 = vpop.f32.mrf.mxu1 }
 0x219   : > { %v5827_v7 = vpop.eup %4114  ;;  %2255 = vperm.xlu1 %3838, %v2065_v53   ;;  %v1875_v11 = vadd.f32 %v5818_v12, %v5810_v56  ;;  %v1398_v48 = vmul.f32 1.442695, %v1300_v57  ;;  %4124 = vpow2.f32 %v1430_v38  ;;  %v1590_v53 = vmul.f32 1.442695, %v1492_v9  ;;  %v4407_v38 = vld [vmem:[%s4894_s10 + $0x90] sm:$0xff] }
 0x21a   : > { %v5831_v45 = vpop.eup %4116  ;;  %3522 = vst [vmem:[%s5404_s13 + $0x80] sm:$0xff] %v3458_v3  ;;  %2703 = vperm.xlu2 %3839, %v2513_v40   ;;  %v2530_v3 = vmul.f32 %v5815_v18, %v5755_v26  ;;  %4126 = vpow2.f32 %v1622_v52  ;;  %v1189_v29 = vmax.f32 %v5167_v17, %v5413_v47  ;;  %v1814_v40 = vmul.f32 1.442695, %v1700_v24  ;;  %v5865_v26 = vpop.f32.mrf.mxu0 }
 0x21b   : > { %v5840_v28 = vpop.eup %4118  ;;  %v3146_v4 = vpop.permute.xlu1 %3145  ;;  %v1891_v39 = vadd.f32 %v5831_v45, %v5827_v7  ;;  %4128 = vpow2.f32 %v1398_v48  ;;  %v1782_v57 = vmul.f32 1.442695, %v1684_v46 }
 0x21c   : > { %v3395_v43 = vmul.f32 %v4405_v35, %v3146_v4  ;;  %v5845_v63 = vpop.permute.xlu2 %2200  ;;  %v4121_v42 = vpop.eup %4120  ;;  %v1939_v34 = vadd.f32 %v5840_v28, %v1875_v11  ;;  %v4406_v11 = vld [vmem:[%s4886_s30 + $0x90] sm:$0xff] }
 0x21d   : > { %v2191_v59 = vpop.permute.xlu0 %2190  ;;  %2340 = vperm.xlu0 %3837, %v2082_v13   ;;  %v2066_v6 = vmul.f32 %v4121_v42, %v5770_v21  ;;  %v5860_v54 = vpop.eup %4122  ;;  %v5870_v21 = vmax.f32 %v1189_v29, %v5856_v50  ;;  %v2514_v60 = vmul.f32 %v4121_v42, %v5776_v37  ;;  %v363_v29 = vld [vmem:[%s4886_s30 + $0x160] sm:$0xff] }
 0x21e   : > { %v3459_v23 = vadd.f32 %v3395_v43, %v2947_v49  ;;  %v1955_v55 = vadd.f32 %v5860_v54, %v1891_v39  ;;  %4130 = vrcp.f32 %v1939_v34  ;;  %v2436_v13 = vmul.f32 %v4406_v11, %v2191_v59  ;;  %v909_v49 = vld [vmem:[%s5040_s5 + $0x160] sm:$0xff]  ;;  %v4408_v59 = vld [vmem:[%s5040_s5 + $0x90] sm:$0xff]  ;;  %v5886_v39 = vpop.f32.mrf.mxu2  ;;  %531 = vmatmul.f32.gmra.mxu0 %v363_v29 }
 0x21f   : > { %4132 = vpow2.f32 %v1590_v53  ;;  %v5878_v35 = vpop.eup %4124  ;;  %v1173_v43 = vmax.f32 %v5865_v26, %v5867_v30  ;;  %1077 = vmatmul.f32.gmra.mxu2 %v909_v49  ;;  %v3396_v24 = vmul.f32 %v4408_v59, %v5768_v2  ;;  %v3026_v53 = vmul.f32 %v4121_v42, %v5788_v33  ;;  %v636_v2 = vld [vmem:[%s4894_s10 + $0x160] sm:$0xff] }
 0x220   : > { %3523 = vst [vmem:[%s5404_s13 + $0x88] sm:$0xff] %v3459_v23  ;;  %4134 = vpow2.f32 %v1814_v40  ;;  %v5882_v37 = vpop.eup %4126  ;;  %v1317_v23 = vsub.f32 %v5167_v17, %v5870_v21  ;;  %804 = vmatmul.f32.gmra.mxu1 %v636_v2  ;;  %v1701_v2 = vsub.f32 %v5856_v50, %v5870_v21 }
 0x221   : > { %2788 = vperm.xlu1 %3838, %v2530_v3   ;;  %4136 = vrcp.f32 %v1955_v55  ;;  %v5888_v34 = vpop.eup %4128  ;;  %v1509_v55 = vsub.f32 %v5413_v47, %v5870_v21  ;;  %v5904_v17 = vmax.f32 %v1173_v43, %v5886_v39  ;;  %v1892_v33 = vadd.f32 %v5882_v37, %v5878_v35  ;;  %v910_v43 = vld [vmem:[%s5040_s5 + $0x168] sm:$0xff] }
 0x222   : > { %2260 = vperm.xlu2 %3839, %v2066_v6   ;;  %4138 = vpow2.f32 %v1782_v57  ;;  %v3042_v6 = vmul.f32 %v5815_v18, %v5760_v36  ;;  %v1432_v18 = vmul.f32 1.442695, %v1317_v23 }
 0x223   : > { %v2639_v22 = vpop.permute.xlu1 %2638  ;;  %v1493_v29 = vsub.f32 %v5867_v30, %v5904_v17  ;;  %v637_v30 = vld [vmem:[%s4894_s10 + $0x168] sm:$0xff] }
 0x224   : > { %v2884_v9 = vmul.f32 %v4407_v38, %v2639_v22  ;;  %v5875_v52 = vpop.permute.xlu2 %3165  ;;  %v5893_v46 = vpop.eup %4130  ;;  %4140 = vpow2.f32 %v1432_v18 }
 0x225   : > { %v3156_v4 = vpop.permute.xlu0 %3155  ;;  %2708 = vperm.xlu0 %3837, %v2514_v60   ;;  %v5899_v40 = vpop.eup %4132  ;;  %v2067_v42 = vmul.f32 %v5893_v46, %v5810_v56  ;;  %v4409_v60 = vld [vmem:[%s4894_s10 + $0x98] sm:$0xff]  ;;  %v1301_v56 = vsub.f32 %v5865_v26, %v5904_v17  ;;  %v1592_v21 = vmul.f32 1.442695, %v1493_v29 }
 0x226   : > { %v2948_v48 = vadd.f32 %v2884_v9, %v2436_v13  ;;  %v5909_v36 = vpop.eup %4134  ;;  %v2885_v22 = vmul.f32 %v4409_v60, %v5808_v62  ;;  %v1876_v11 = vadd.f32 %v5899_v40, %v5888_v34  ;;  %v4410_v13 = vld [vmem:[%s4886_s30 + $0x98] sm:$0xff]  ;;  %v5927_v62 = vpop.f32.mrf.mxu1 }
 0x227   : > { %v4137_v57 = vpop.eup %4136  ;;  %1080 = vmatmul.f32.gmra.mxu2 %v910_v43  ;;  %v1956_v23 = vadd.f32 %v5909_v36, %v1892_v33  ;;  %v4412_v33 = vld [vmem:[%s4894_s10 + $0xa0] sm:$0xff]  ;;  %v1400_v18 = vmul.f32 1.442695, %v1301_v56  ;;  %v5943_v50 = vpop.f32.mrf.mxu2 }
 0x228   : > { %v3460_v3 = vadd.f32 %v3396_v24, %v2948_v48  ;;  %v5921_v59 = vpop.eup %4138  ;;  %v1624_v24 = vmul.f32 1.442695, %v1509_v55  ;;  %v5925_v48 = vpop.f32.mrf.mxu0  ;;  %v2083_v26 = vmul.f32 %v4137_v57, %v5827_v7  ;;  %v2531_v55 = vmul.f32 %v4137_v57, %v5831_v45  ;;  %v4413_v7 = vld [vmem:[%s4886_s30 + $0xa0] sm:$0xff]  ;;  %807 = vmatmul.f32.gmra.mxu1 %v637_v30 }
 0x229   : > { %3220 = vperm.xlu1 %3838, %v3026_v53   ;;  %v4411_v53 = vld [vmem:[%s5040_s5 + $0x98] sm:$0xff]  ;;  %v2438_v45 = vmul.f32 %v4413_v7, %v5845_v63  ;;  %v4414_v56 = vld [vmem:[%s5040_s5 + $0xa0] sm:$0xff]  ;;  %v4416_v7 = vld [vmem:[%s4894_s10 + $0xa8] sm:$0xff] }
 0x22a   : > { %3524 = vst [vmem:[%s5404_s13 + $0x90] sm:$0xff] %v3460_v3  ;;  %3300 = vperm.xlu2 %3839, %v3042_v6   ;;  %v3397_v3 = vmul.f32 %v4411_v53, %v3156_v4  ;;  %v1174_v4 = vmax.f32 %v5925_v48, %v5927_v62  ;;  %4142 = vpow2.f32 %v1624_v24 }
 0x22b   : > { %v2196_v47 = vpop.permute.xlu1 %2195  ;;  %4144 = vrcp.f32 %v1956_v23 }
 0x22c   : > { %v2437_v38 = vmul.f32 %v4410_v13, %v2196_v47  ;;  %v5918_v49 = vpop.permute.xlu2 %2658  ;;  %v1816_v13 = vmul.f32 1.442695, %v1701_v2  ;;  %v2515_v2 = vmul.f32 %v5893_v46, %v5818_v12 }
 0x22d   : > { %v2649_v9 = vpop.permute.xlu0 %2648  ;;  %2265 = vperm.xlu0 %3837, %v2067_v42   ;;  %v1940_v42 = vadd.f32 %v5921_v59, %v1876_v11  ;;  %v1685_v11 = vsub.f32 %v5886_v39, %v5904_v17  ;;  %v1190_v39 = vmax.f32 %v5179_v44, %v5437_v51 }
 0x22e   : > { %v2949_v6 = vadd.f32 %v2885_v22, %v2437_v38  ;;  %v2886_v60 = vmul.f32 %v4412_v33, %v2649_v9  ;;  %v364_v22 = vld [vmem:[%s4886_s30 + $0x168] sm:$0xff]  ;;  %v5950_v38 = vpop.f32.mrf.mxu3  ;;  %v3043_v9 = vmul.f32 %v4137_v57, %v5860_v54 }
 0x22f   : > { %534 = vmatmul.f32.gmra.mxu0 %v364_v22  ;;  %4146 = vrcp.f32 %v1940_v42  ;;  %v1784_v54 = vmul.f32 1.442695, %v1685_v11  ;;  %v5964_v29 = vmax.f32 %v1190_v39, %v5950_v38  ;;  %v3027_v42 = vmul.f32 %v5893_v46, %v5840_v28  ;;  %v4415_v22 = vld [vmem:[%s4886_s30 + $0xa8] sm:$0xff] }
 0x230   : > { %v3461_v47 = vadd.f32 %v3397_v3, %v2949_v6  ;;  %v2950_v24 = vadd.f32 %v2886_v60, %v2438_v45  ;;  %v1238_v3 = vmax.f32 %v1174_v4, %v5943_v50  ;;  %v5957_v6 = vpop.eup %4140  ;;  %4148 = vpow2.f32 %v1400_v18 }
 0x231   : > { %2345 = vperm.xlu1 %3838, %v2083_v26   ;;  %4150 = vpow2.f32 %v1592_v21  ;;  %v5961_v57 = vpop.eup %4142  ;;  %v1318_v4 = vsub.f32 %v5179_v44, %v5964_v29 }
 0x232   : > { %3525 = vst [vmem:[%s5404_s13 + $0x98] sm:$0xff] %v3461_v47  ;;  %2793 = vperm.xlu2 %3839, %v2531_v55   ;;  %4152 = vpow2.f32 %v1816_v13  ;;  %v5968_v26 = vpop.eup %4144  ;;  %v1302_v55 = vsub.f32 %v5925_v48, %v1238_v3  ;;  %v1494_v47 = vsub.f32 %v5927_v62, %v1238_v3  ;;  %v1893_v60 = vadd.f32 %v5961_v57, %v5957_v6 }
 0x233   : > { %v3161_v43 = vpop.permute.xlu1 %3160  ;;  %4154 = vpow2.f32 %v1784_v54  ;;  %v2532_v48 = vmul.f32 %v5968_v26, %v5882_v37  ;;  %v1510_v62 = vsub.f32 %v5437_v51, %v5964_v29  ;;  %v1686_v37 = vsub.f32 %v5943_v50, %v1238_v3 }
 0x234   : > { %v3398_v23 = vmul.f32 %v4414_v56, %v3161_v43  ;;  %v5954_v63 = vpop.permute.xlu2 %2215  ;;  %v1402_v18 = vmul.f32 1.442695, %v1302_v55  ;;  %v1594_v44 = vmul.f32 1.442695, %v1494_v47  ;;  %v4417_v43 = vld [vmem:[%s5040_s5 + $0xa8] sm:$0xff]  ;;  %v5999_v56 = vpop.f32.mrf.mxu0  ;;  %v1191_v55 = vmax.f32 %v5192_v5, %v5458_v61  ;;  %v911_v47 = vld [vmem:[%s5040_s5 + $0x170] sm:$0xff] }
 0x235   : > { %v2206_v53 = vpop.permute.xlu0 %2205  ;;  %3305 = vperm.xlu0 %3837, %v3043_v9   ;;  %v5975_v33 = vpop.eup %4146  ;;  %v1626_v54 = vmul.f32 1.442695, %v1510_v62  ;;  %1083 = vmatmul.f32.gmra.mxu2 %v911_v47 }
 0x236   : > { %v3462_v17 = vadd.f32 %v3398_v23, %v2950_v24  ;;  %v5979_v12 = vpop.eup %4148  ;;  %v2439_v30 = vmul.f32 %v4415_v22, %v2206_v53  ;;  %v3399_v24 = vmul.f32 %v4417_v43, %v5875_v52  ;;  %v6001_v23 = vpop.f32.mrf.mxu1  ;;  %v1434_v53 = vmul.f32 1.442695, %v1318_v4  ;;  %v4418_v22 = vld [vmem:[%s4894_s10 + $0xb0] sm:$0xff] }
 0x237   : > { %v5985_v46 = vpop.eup %4150  ;;  %v2068_v50 = vmul.f32 %v5975_v33, %v5888_v34  ;;  %4156 = vpow2.f32 %v1402_v18  ;;  %v1175_v34 = vmax.f32 %v5999_v56, %v6001_v23  ;;  %v6021_v4 = vpop.f32.mrf.mxu2 }
 0x238   : > { %3526 = vst [vmem:[%s5404_s13 + $0xa0] sm:$0xff] %v3462_v17  ;;  %v5993_v13 = vpop.eup %4152  ;;  %v1877_v39 = vadd.f32 %v5985_v46, %v5979_v12  ;;  %v6009_v17 = vpop.f32.mrf.mxu3  ;;  %4158 = vpow2.f32 %v1594_v44 }
 0x239   : > { %2713 = vperm.xlu1 %3838, %v2515_v2   ;;  %v1957_v9 = vadd.f32 %v5993_v13, %v1893_v60  ;;  %v6007_v3 = vpop.eup %4154  ;;  %v2084_v2 = vmul.f32 %v5968_v26, %v5878_v35  ;;  %v1702_v60 = vsub.f32 %v5950_v38, %v5964_v29  ;;  %v6024_v35 = vmax.f32 %v1191_v55, %v6009_v17  ;;  %v4419_v29 = vld [vmem:[%s4886_s30 + $0xb0] sm:$0xff] }
 0x23a   : > { %3225 = vperm.xlu2 %3839, %v3027_v42   ;;  %v1786_v42 = vmul.f32 1.442695, %v1686_v37  ;;  %v2888_v38 = vmul.f32 %v4418_v22, %v5918_v49  ;;  %v638_v55 = vld [vmem:[%s4894_s10 + $0x170] sm:$0xff] }
 0x23b   : > { %v2654_v28 = vpop.permute.xlu1 %2653  ;;  %4160 = vrcp.f32 %v1957_v9  ;;  %v1818_v49 = vmul.f32 1.442695, %v1702_v60  ;;  %810 = vmatmul.f32.gmra.mxu1 %v638_v55 }
 0x23c   : > { %v2887_v45 = vmul.f32 %v4416_v7, %v2654_v28  ;;  %v5991_v11 = vpop.permute.xlu2 %3180  ;;  %4162 = vpow2.f32 %v1434_v53  ;;  %v3028_v28 = vmul.f32 %v5975_v33, %v5921_v59  ;;  %v4420_v59 = vld [vmem:[%s5040_s5 + $0xb0] sm:$0xff] }
 0x23d   : > { %v3171_v21 = vpop.permute.xlu0 %3170  ;;  %2798 = vperm.xlu0 %3837, %v2532_v48   ;;  %v1941_v48 = vadd.f32 %v6007_v3, %v1877_v39  ;;  %4164 = vpow2.f32 %v1626_v54  ;;  %v6037_v44 = vpop.eup %4156  ;;  %v1511_v39 = vsub.f32 %v5458_v61, %v6024_v35 }
 0x23e   : > { %v2951_v51 = vadd.f32 %v2887_v45, %v2439_v30  ;;  %4166 = vpow2.f32 %v1786_v42  ;;  %v6035_v45 = vmax.f32 %v1175_v34, %v6021_v4  ;;  %v3400_v37 = vmul.f32 %v4420_v59, %v3171_v21  ;;  %v6040_v43 = vpop.eup %4158  ;;  %v4421_v21 = vld [vmem:[%s4894_s10 + $0xb8] sm:$0xff] }
 0x23f   : > { %4168 = vrcp.f32 %v1941_v48  ;;  %v1878_v34 = vadd.f32 %v6040_v43, %v6037_v44  ;;  %v1628_v48 = vmul.f32 1.442695, %v1511_v39 }
 0x240   : > { %v3463_v52 = vadd.f32 %v3399_v24, %v2951_v51  ;;  %v1319_v24 = vsub.f32 %v5192_v5, %v6024_v35  ;;  %v3044_v51 = vmul.f32 %v5968_v26, %v5909_v36  ;;  %v1303_v42 = vsub.f32 %v5999_v56, %v6035_v45  ;;  %v4422_v26 = vld [vmem:[%s4886_s30 + $0xb8] sm:$0xff] }
 0x241   : > { %2270 = vperm.xlu1 %3838, %v2068_v50   ;;  %v6046_v53 = vpop.eup %4160  ;;  %v2441_v61 = vmul.f32 %v4422_v26, %v5954_v63  ;;  %4170 = vpow2.f32 %v1818_v49  ;;  %v1495_v56 = vsub.f32 %v6001_v23, %v6035_v45  ;;  %v4423_v63 = vld [vmem:[%s5040_s5 + $0xb8] sm:$0xff] }
 0x242   : > { %3527 = vst [vmem:[%s5404_s13 + $0xa8] sm:$0xff] %v3463_v52  ;;  %2350 = vperm.xlu2 %3839, %v2084_v2   ;;  %v2516_v52 = vmul.f32 %v5975_v33, %v5899_v40  ;;  %v365_v2 = vld [vmem:[%s4886_s30 + $0x170] sm:$0xff]  ;;  %v6055_v5 = vpop.eup %4162  ;;  %v1436_v33 = vmul.f32 1.442695, %v1319_v24  ;;  %v2085_v47 = vmul.f32 %v6046_v53, %v5957_v6  ;;  %v2533_v49 = vmul.f32 %v6046_v53, %v5961_v57  ;;  %v6084_v24 = vpop.f32.mrf.mxu3 }
 0x243   : > { %v2211_v62 = vpop.permute.xlu1 %2210  ;;  %537 = vmatmul.f32.gmra.mxu0 %v365_v2  ;;  %v6059_v36 = vpop.eup %4164  ;;  %v4424_v2 = vld [vmem:[%s4886_s30 + $0xc0] sm:$0xff] }
 0x244   : > { %v2440_v30 = vmul.f32 %v4419_v29, %v2211_v62  ;;  %v6032_v7 = vpop.permute.xlu2 %2673  ;;  %v6066_v40 = vpop.eup %4166  ;;  %v1894_v23 = vadd.f32 %v6059_v36, %v6055_v5  ;;  %4172 = vpow2.f32 %v1436_v33 }
 0x245   : > { %v2664_v18 = vpop.permute.xlu0 %2663  ;;  %3230 = vperm.xlu0 %3837, %v3028_v28   ;;  %v4169_v29 = vpop.eup %4168  ;;  %v1942_v6 = vadd.f32 %v6066_v40, %v1878_v34  ;;  %4174 = vpow2.f32 %v1628_v48 }
 0x246   : > { %v2952_v9 = vadd.f32 %v2888_v38, %v2440_v30  ;;  %v2889_v54 = vmul.f32 %v4421_v21, %v2664_v18  ;;  %v1703_v30 = vsub.f32 %v6009_v17, %v6024_v35  ;;  %v1404_v18 = vmul.f32 1.442695, %v1303_v42  ;;  %v6094_v57 = vpop.f32.mrf.mxu0  ;;  %v4425_v42 = vld [vmem:[%s4894_s10 + $0xc0] sm:$0xff] }
 0x247   : > { %v2069_v17 = vmul.f32 %v4169_v29, %v5979_v12  ;;  %v6088_v35 = vpop.eup %4170 }
 0x248   : > { %v3464_v50 = vadd.f32 %v3400_v37, %v2952_v9  ;;  %v2953_v28 = vadd.f32 %v2889_v54, %v2441_v61  ;;  %v1596_v37 = vmul.f32 1.442695, %v1495_v56  ;;  %v1687_v9 = vsub.f32 %v6021_v4, %v6035_v45  ;;  %v912_v4 = vld [vmem:[%s5040_s5 + $0x178] sm:$0xff] }
 0x249   : > { %3310 = vperm.xlu1 %3838, %v3044_v51   ;;  %v1192_v51 = vmax.f32 %v5202_v31, %v5484_v32  ;;  %v1820_v39 = vmul.f32 1.442695, %v1703_v30  ;;  %4176 = vpow2.f32 %v1404_v18  ;;  %v1958_v45 = vadd.f32 %v6088_v35, %v1894_v23  ;;  %1086 = vmatmul.f32.gmra.mxu2 %v912_v4 }
 0x24a   : > { %3528 = vst [vmem:[%s5404_s13 + $0xb0] sm:$0xff] %v3464_v50  ;;  %2718 = vperm.xlu2 %3839, %v2516_v52   ;;  %4178 = vrcp.f32 %v1942_v6  ;;  %v6096_v50 = vpop.f32.mrf.mxu1  ;;  %v1788_v21 = vmul.f32 1.442695, %v1687_v9  ;;  %v2517_v54 = vmul.f32 %v4169_v29, %v5985_v46  ;;  %v6106_v33 = vpop.eup %4172  ;;  %v4426_v46 = vld [vmem:[%s5040_s5 + $0xc0] sm:$0xff]  ;;  %v3045_v23 = vmul.f32 %v6046_v53, %v5993_v13  ;;  %v366_v6 = vld [vmem:[%s4886_s30 + $0x178] sm:$0xff] }
 0x24b   : > { %v3176_v60 = vpop.permute.xlu1 %3175  ;;  %v6099_v12 = vmax.f32 %v1192_v51, %v6084_v24  ;;  %4180 = vpow2.f32 %v1596_v37  ;;  %v1176_v56 = vmax.f32 %v6094_v57, %v6096_v50  ;;  %540 = vmatmul.f32.gmra.mxu0 %v366_v6 }
 0x24c   : > { %v3401_v62 = vmul.f32 %v4423_v63, %v3176_v60  ;;  %v6073_v38 = vpop.permute.xlu2 %2230  ;;  %4182 = vpow2.f32 %v1820_v39  ;;  %v3402_v60 = vmul.f32 %v4426_v46, %v5991_v11  ;;  %v639_v11 = vld [vmem:[%s4894_s10 + $0x178] sm:$0xff]  ;;  %v4428_v39 = vld [vmem:[%s4886_s30 + $0xc8] sm:$0xff] }
 0x24d   : > { %v2221_v22 = vpop.permute.xlu0 %2220  ;;  %2355 = vperm.xlu0 %3837, %v2085_v47   ;;  %v6110_v47 = vpop.eup %4174  ;;  %4184 = vrcp.f32 %v1958_v45  ;;  %v1512_v37 = vsub.f32 %v5484_v32, %v6099_v12  ;;  %813 = vmatmul.f32.gmra.mxu1 %v639_v11 }
 0x24e   : > { %v3465_v59 = vadd.f32 %v3401_v62, %v2953_v28  ;;  %v2442_v55 = vmul.f32 %v4424_v2, %v2221_v22  ;;  %v6114_v28 = vpop.f32.mrf.mxu2  ;;  %v1320_v62 = vsub.f32 %v5202_v31, %v6099_v12  ;;  %4186 = vpow2.f32 %v1788_v21  ;;  %v6152_v2 = vpop.f32.mrf.mxu0 }
 0x24f   : > { %v6116_v63 = vpop.eup %4176  ;;  %v3029_v22 = vmul.f32 %v4169_v29, %v6007_v3  ;;  %v6132_v31 = vmax.f32 %v1176_v56, %v6114_v28  ;;  %v1895_v3 = vadd.f32 %v6110_v47, %v6106_v33 }
 0x250   : > { %3529 = vst [vmem:[%s5404_s13 + $0xb8] sm:$0xff] %v3465_v59  ;;  %v6121_v30 = vpop.eup %4178  ;;  %v1438_v53 = vmul.f32 1.442695, %v1320_v62 }
 0x251   : > { %2803 = vperm.xlu1 %3838, %v2533_v49   ;;  %v6127_v59 = vpop.eup %4180  ;;  %v2070_v29 = vmul.f32 %v6121_v30, %v6037_v44  ;;  %v4427_v49 = vld [vmem:[%s4894_s10 + $0xc8] sm:$0xff]  ;;  %v1304_v44 = vsub.f32 %v6094_v57, %v6132_v31  ;;  %v1496_v46 = vsub.f32 %v6096_v50, %v6132_v31 }
 0x252   : > { %2275 = vperm.xlu2 %3839, %v2069_v17   ;;  %v6137_v13 = vpop.eup %4182  ;;  %v2891_v17 = vmul.f32 %v4427_v49, %v6032_v7  ;;  %v1879_v51 = vadd.f32 %v6127_v59, %v6116_v63  ;;  %4188 = vpow2.f32 %v1438_v53 }
 0x253   : > { %v2669_v52 = vpop.permute.xlu1 %2668  ;;  %v4185_v32 = vpop.eup %4184  ;;  %v1959_v7 = vadd.f32 %v6137_v13, %v1895_v3  ;;  %v1406_v6 = vmul.f32 1.442695, %v1304_v44 }
 0x254   : > { %v2890_v26 = vmul.f32 %v4425_v42, %v2669_v52  ;;  %v6104_v34 = vpop.permute.xlu2 %3195  ;;  %v1630_v52 = vmul.f32 1.442695, %v1512_v37  ;;  %v4429_v42 = vld [vmem:[%s5040_s5 + $0xc8] sm:$0xff]  ;;  %v2086_v57 = vmul.f32 %v4185_v32, %v6055_v5  ;;  %v6175_v37 = vpop.f32.mrf.mxu3  ;;  %v3046_v3 = vmul.f32 %v4185_v32, %v6088_v35 }
 0x255   : > { %v3186_v61 = vpop.permute.xlu0 %3185  ;;  %2723 = vperm.xlu0 %3837, %v2517_v54   ;;  %v6148_v54 = vpop.eup %4186 }
 0x256   : > { %v2954_v48 = vadd.f32 %v2890_v26, %v2442_v55  ;;  %v6154_v55 = vpop.f32.mrf.mxu1  ;;  %v3403_v26 = vmul.f32 %v4429_v42, %v3186_v61  ;;  %v1943_v62 = vadd.f32 %v6148_v54, %v1879_v51  ;;  %4190 = vpow2.f32 %v1630_v52  ;;  %v6168_v50 = vpop.f32.mrf.mxu2 }
 0x257   : > { %v1177_v61 = vmax.f32 %v6152_v2, %v6154_v55  ;;  %4192 = vrcp.f32 %v1959_v7  ;;  %v3030_v7 = vmul.f32 %v6121_v30, %v6066_v40 }
 0x258   : > { %v3466_v18 = vadd.f32 %v3402_v60, %v2954_v48  ;;  %v1704_v60 = vsub.f32 %v6084_v24, %v6099_v12  ;;  %v2534_v48 = vmul.f32 %v4185_v32, %v6059_v36  ;;  %v4431_v24 = vld [vmem:[%s4886_s30 + $0xd0] sm:$0xff]  ;;  %v1598_v36 = vmul.f32 1.442695, %v1496_v46 }
 0x259   : > { %3235 = vperm.xlu1 %3838, %v3029_v22   ;;  %v2444_v5 = vmul.f32 %v4431_v24, %v6073_v38  ;;  %v1688_v12 = vsub.f32 %v6114_v28, %v6132_v31  ;;  %4194 = vrcp.f32 %v1943_v62  ;;  %v1241_v38 = vmax.f32 %v1177_v61, %v6168_v50  ;;  %v4434_v62 = vld [vmem:[%s4894_s10 + $0xd8] sm:$0xff] }
 0x25a   : > { %3530 = vst [vmem:[%s5404_s13 + $0xc0] sm:$0xff] %v3466_v18  ;;  %3315 = vperm.xlu2 %3839, %v3045_v23   ;;  %v4430_v18 = vld [vmem:[%s4894_s10 + $0xd0] sm:$0xff]  ;;  %v1822_v11 = vmul.f32 1.442695, %v1704_v60  ;;  %v1193_v28 = vmax.f32 %v5218_v58, %v5504_v10  ;;  %4196 = vpow2.f32 %v1406_v6  ;;  %v4433_v60 = vld [vmem:[%s4886_s30 + $0xd8] sm:$0xff] }
 0x25b   : > { %v2226_v9 = vpop.permute.xlu1 %2225  ;;  %4198 = vpow2.f32 %v1598_v36  ;;  %v1790_v35 = vmul.f32 1.442695, %v1688_v12  ;;  %v1305_v44 = vsub.f32 %v6152_v2, %v1241_v38  ;;  %v1497_v42 = vsub.f32 %v6154_v55, %v1241_v38  ;;  %v4435_v24 = vld [vmem:[%s5040_s5 + $0xd8] sm:$0xff] }
 0x25c   : > { %v2443_v4 = vmul.f32 %v4428_v39, %v2226_v9  ;;  %v6146_v21 = vpop.permute.xlu2 %2688  ;;  %v4432_v9 = vld [vmem:[%s5040_s5 + $0xd0] sm:$0xff]  ;;  %v6182_v39 = vpop.eup %4188  ;;  %4200 = vpow2.f32 %v1822_v11 }
 0x25d   : > { %v2679_v45 = vpop.permute.xlu0 %2678  ;;  %2280 = vperm.xlu0 %3837, %v2070_v29   ;;  %v6186_v32 = vpop.eup %4190  ;;  %4202 = vpow2.f32 %v1790_v35 }
 0x25e   : > { %v2955_v56 = vadd.f32 %v2891_v17, %v2443_v4  ;;  %v2892_v23 = vmul.f32 %v4430_v18, %v2679_v45  ;;  %v6189_v4 = vmax.f32 %v1193_v28, %v6175_v37  ;;  %v2518_v45 = vmul.f32 %v6121_v30, %v6040_v43  ;;  %v6193_v52 = vpop.eup %4192 }
 0x25f   : > { %v2535_v2 = vmul.f32 %v6193_v52, %v6110_v47  ;;  %v1689_v47 = vsub.f32 %v6168_v50, %v1241_v38 }
 0x260   : > { %v3467_v22 = vadd.f32 %v3403_v26, %v2955_v56  ;;  %v2956_v29 = vadd.f32 %v2892_v23, %v2444_v5  ;;  %v6200_v26 = vpop.eup %4194  ;;  %v1896_v56 = vadd.f32 %v6186_v32, %v6182_v39  ;;  %v1321_v46 = vsub.f32 %v5218_v58, %v6189_v4 }
 0x261   : > { %2360 = vperm.xlu1 %3838, %v2086_v57   ;;  %v6204_v43 = vpop.eup %4196  ;;  %v1513_v55 = vsub.f32 %v5504_v10, %v6189_v4  ;;  %v1600_v58 = vmul.f32 1.442695, %v1497_v42  ;;  %v3405_v5 = vmul.f32 %v4435_v24, %v6104_v34  ;;  %v2071_v11 = vmul.f32 %v6200_v26, %v6116_v63  ;;  %v6234_v34 = vpop.f32.mrf.mxu1 }
 0x262   : > { %3531 = vst [vmem:[%s5404_s13 + $0xc8] sm:$0xff] %v3467_v22  ;;  %2808 = vperm.xlu2 %3839, %v2534_v48   ;;  %v6210_v30 = vpop.eup %4198  ;;  %v1408_v48 = vmul.f32 1.442695, %v1305_v44  ;;  %v1440_v36 = vmul.f32 1.442695, %v1321_v46  ;;  %v1194_v63 = vmax.f32 %v5232_v25, %v5527_v1  ;;  %v1705_v38 = vsub.f32 %v6175_v37, %v6189_v4  ;;  %v4436_v44 = vld [vmem:[%s4894_s10 + $0xe0] sm:$0xff] }
 0x263   : > { %v3191_v53 = vpop.permute.xlu1 %3190  ;;  %v6218_v61 = vpop.eup %4200  ;;  %v1880_v12 = vadd.f32 %v6210_v30, %v6204_v43  ;;  %v3031_v28 = vmul.f32 %v6200_v26, %v6148_v54  ;;  %v2894_v37 = vmul.f32 %v4436_v44, %v6146_v21  ;;  %v4437_v4 = vld [vmem:[%s4886_s30 + $0xe0] sm:$0xff] }
 0x264   : > { %v3404_v49 = vmul.f32 %v4432_v9, %v3191_v53  ;;  %v6179_v51 = vpop.permute.xlu2 %2245  ;;  %v1960_v6 = vadd.f32 %v6218_v61, %v1896_v56  ;;  %v1632_v53 = vmul.f32 1.442695, %v1513_v55  ;;  %4204 = vpow2.f32 %v1408_v48  ;;  %v6232_v9 = vpop.f32.mrf.mxu0  ;;  %v4438_v46 = vld [vmem:[%s5040_s5 + $0xe0] sm:$0xff] }
 0x265   : > { %v2236_v17 = vpop.permute.xlu0 %2235  ;;  %3320 = vperm.xlu0 %3837, %v3046_v3   ;;  %v6228_v3 = vpop.eup %4202  ;;  %4206 = vpow2.f32 %v1600_v58  ;;  %v3047_v48 = vmul.f32 %v6193_v52, %v6137_v13  ;;  %v4440_v13 = vld [vmem:[%s4886_s30 + $0xe8] sm:$0xff] }
 0x266   : > { %v3468_v31 = vadd.f32 %v3404_v49, %v2956_v29  ;;  %v2445_v57 = vmul.f32 %v4433_v60, %v2236_v17  ;;  %v2087_v29 = vmul.f32 %v6193_v52, %v6106_v33  ;;  %v6236_v49 = vpop.f32.mrf.mxu3  ;;  %v1792_v17 = vmul.f32 1.442695, %v1689_v47  ;;  %v6256_v56 = vpop.f32.mrf.mxu2 }
 0x267   : > { %4208 = vrcp.f32 %v1960_v6  ;;  %v1944_v33 = vadd.f32 %v6228_v3, %v1880_v12  ;;  %v2519_v6 = vmul.f32 %v6200_v26, %v6127_v59  ;;  %v2447_v52 = vmul.f32 %v4440_v13, %v6179_v51 }
 0x268   : > { %3532 = vst [vmem:[%s5404_s13 + $0xd0] sm:$0xff] %v3468_v31  ;;  %4210 = vpow2.f32 %v1440_v36  ;;  %v1178_v31 = vmax.f32 %v6232_v9, %v6234_v34 }
 0x269   : > { %2728 = vperm.xlu1 %3838, %v2518_v45   ;;  %4212 = vpow2.f32 %v1632_v53  ;;  %v6249_v45 = vmax.f32 %v1194_v63, %v6236_v49 }
 0x26a   : > { %3240 = vperm.xlu2 %3839, %v3030_v7   ;;  %4214 = vpow2.f32 %v1792_v17  ;;  %v6258_v54 = vpop.eup %4204  ;;  %v1242_v21 = vmax.f32 %v1178_v31, %v6256_v56 }
 0x26b   : > { %v2684_v40 = vpop.permute.xlu1 %2683  ;;  %v6261_v60 = vpop.eup %4206  ;;  %4216 = vrcp.f32 %v1944_v33 }
 0x26c   : > { %v2893_v22 = vmul.f32 %v4434_v62, %v2684_v40  ;;  %v6216_v23 = vpop.permute.xlu2 %3210  ;;  %v1306_v59 = vsub.f32 %v6232_v9, %v1242_v21  ;;  %v1498_v53 = vsub.f32 %v6234_v34, %v1242_v21  ;;  %v1706_v9 = vsub.f32 %v6236_v49, %v6249_v45 }
 0x26d   : > { %v3201_v18 = vpop.permute.xlu0 %3200  ;;  %2813 = vperm.xlu0 %3837, %v2535_v2   ;;  %v6266_v62 = vpop.eup %4208  ;;  %v1690_v34 = vsub.f32 %v6256_v56, %v1242_v21  ;;  %v1195_v49 = vmax.f32 %v5248_v41, %v5549_v15 }
 0x26e   : > { %v2957_v10 = vadd.f32 %v2893_v22, %v2445_v57  ;;  %v3406_v2 = vmul.f32 %v4438_v46, %v3201_v18  ;;  %v1824_v57 = vmul.f32 1.442695, %v1705_v38  ;;  %v1322_v22 = vsub.f32 %v5232_v25, %v6249_v45  ;;  %v4439_v18 = vld [vmem:[%s4894_s10 + $0xe8] sm:$0xff]  ;;  %v6273_v24 = vpop.eup %4210  ;;  %v6301_v44 = vpop.f32.mrf.mxu3 }
 0x26f   : > { %v1881_v25 = vadd.f32 %v6261_v60, %v6258_v54  ;;  %v2536_v31 = vmul.f32 %v6266_v62, %v6186_v32  ;;  %v6311_v56 = vpop.f32.mrf.mxu1  ;;  %v1826_v46 = vmul.f32 1.442695, %v1706_v9  ;;  %v4446_v9 = vld [vmem:[%s4886_s30 + $0xf8] sm:$0xff] }
 0x270   : > { %v3469_v50 = vadd.f32 %v3405_v5, %v2957_v10  ;;  %v1514_v5 = vsub.f32 %v5527_v1, %v6249_v45  ;;  %v6277_v10 = vpop.eup %4212  ;;  %4218 = vpow2.f32 %v1824_v57  ;;  %v2088_v1 = vmul.f32 %v6266_v62, %v6182_v39  ;;  %v4442_v57 = vld [vmem:[%s4886_s30 + $0xf0] sm:$0xff] }
 0x271   : > { %2285 = vperm.xlu1 %3838, %v2071_v11   ;;  %v6284_v36 = vpop.eup %4214  ;;  %v1442_v12 = vmul.f32 1.442695, %v1322_v22  ;;  %v1897_v38 = vadd.f32 %v6277_v10, %v6273_v24  ;;  %v6309_v45 = vpop.f32.mrf.mxu0 }
 0x272   : > { %3533 = vst [vmem:[%s5404_s13 + $0xd8] sm:$0xff] %v3469_v50  ;;  %2365 = vperm.xlu2 %3839, %v2087_v29   ;;  %v4441_v50 = vld [vmem:[%s5040_s5 + $0xe8] sm:$0xff]  ;;  %v4217_v17 = vpop.eup %4216  ;;  %v1634_v63 = vmul.f32 1.442695, %v1514_v5  ;;  %v1945_v39 = vadd.f32 %v6284_v36, %v1881_v25  ;;  %v4444_v5 = vld [vmem:[%s5040_s5 + $0xf0] sm:$0xff] }
 0x273   : > { %v2241_v35 = vpop.permute.xlu1 %2240  ;;  %4220 = vpow2.f32 %v1442_v12 }
 0x274   : > { %v2446_v7 = vmul.f32 %v4437_v4, %v2241_v35  ;;  %v6254_v42 = vpop.permute.xlu2 %2703  ;;  %v2072_v4 = vmul.f32 %v4217_v17, %v6204_v43  ;;  %4222 = vpow2.f32 %v1634_v63  ;;  %v6315_v43 = vmax.f32 %v1195_v49, %v6301_v44 }
 0x275   : > { %3245 = vperm.xlu0 %3837, %v3031_v28   ;;  %v1410_v28 = vmul.f32 1.442695, %v1306_v59  ;;  %4224 = vrcp.f32 %v1945_v39 }
 0x276   : > { %v2958_v40 = vadd.f32 %v2894_v37, %v2446_v7  ;;  %v1602_v37 = vmul.f32 1.442695, %v1498_v53  ;;  %v6305_v7 = vpop.eup %4218  ;;  %v1323_v25 = vsub.f32 %v5248_v41, %v6315_v43  ;;  %v1515_v41 = vsub.f32 %v5549_v15, %v6315_v43 }
 0x277   : > { %v2694_v55 = vpop.permute.xlu0 %2693  ;;  %v1961_v32 = vadd.f32 %v6305_v7, %v1897_v38  ;;  %4226 = vpow2.f32 %v1410_v28  ;;  %v4445_v38 = vld [vmem:[%s4894_s10 + $0xf8] sm:$0xff] }
 0x278   : > { %v3470_v58 = vadd.f32 %v3406_v2, %v2958_v40  ;;  %v2895_v47 = vmul.f32 %v4439_v18, %v2694_v55  ;;  %v1794_v2 = vmul.f32 1.442695, %v1690_v34  ;;  %v2520_v40 = vmul.f32 %v4217_v17, %v6210_v30 }
 0x279   : > { %3325 = vperm.xlu1 %3838, %v3047_v48   ;;  %4228 = vpow2.f32 %v1602_v37  ;;  %v4443_v48 = vld [vmem:[%s4894_s10 + $0xf0] sm:$0xff]  ;;  %v1179_v18 = vmax.f32 %v6309_v45, %v6311_v56  ;;  %v3408_v30 = vmul.f32 %v4444_v5, %v6216_v23  ;;  %v1444_v63 = vmul.f32 1.442695, %v1323_v25 }
 0x27a   : > { %3534 = vst [vmem:[%s5404_s13 + $0xe0] sm:$0xff] %v3470_v58  ;;  %2733 = vperm.xlu2 %3839, %v2519_v6   ;;  %v2959_v11 = vadd.f32 %v2895_v47, %v2447_v52  ;;  %v6324_v47 = vpop.f32.mrf.mxu2  ;;  %v6326_v6 = vpop.eup %4220  ;;  %4230 = vrcp.f32 %v1961_v32  ;;  %v2897_v15 = vmul.f32 %v4445_v38, %v6254_v42 }
 0x27b   : > { %v3206_v26 = vpop.permute.xlu1 %3205  ;;  %v6330_v52 = vpop.eup %4222  ;;  %4232 = vpow2.f32 %v1826_v46  ;;  %v6340_v23 = vmax.f32 %v1179_v18, %v6324_v47  ;;  %v1707_v46 = vsub.f32 %v6301_v44, %v6315_v43 }
 0x27c   : > { %v3407_v51 = vmul.f32 %v4441_v50, %v3206_v26  ;;  %v6291_v29 = vpop.permute.xlu2 %2260  ;;  %v6335_v26 = vpop.eup %4224  ;;  %4234 = vpow2.f32 %v1794_v2 }
 0x27d   : > { %2370 = vperm.xlu0 %3837, %v2088_v1   ;;  %v3032_v1 = vmul.f32 %v4217_v17, %v6228_v3  ;;  %v6342_v53 = vpop.eup %4226  ;;  %v1898_v3 = vadd.f32 %v6330_v52, %v6326_v6  ;;  %v1307_v28 = vsub.f32 %v6309_v45, %v6340_v23  ;;  %v6362_v34 = vpop.f32.mrf.mxu1  ;;  %v1499_v45 = vsub.f32 %v6311_v56, %v6340_v23 }
 0x27e   : > { %v3471_v33 = vadd.f32 %v3407_v51, %v2959_v11  ;;  %v3048_v11 = vmul.f32 %v6266_v62, %v6218_v61  ;;  %v2073_v61 = vmul.f32 %v6335_v26, %v6258_v54  ;;  %v6353_v51 = vpop.f32.mrf.mxu0  ;;  %v1636_v54 = vmul.f32 1.442695, %v1515_v41 }
 0x27f   : > { %v2251_v35 = vpop.permute.xlu0 %2250  ;;  %v6346_v50 = vpop.eup %4228  ;;  %4236 = vpow2.f32 %v1444_v63  ;;  %v1604_v44 = vmul.f32 1.442695, %v1499_v45  ;;  %v1828_v43 = vmul.f32 1.442695, %v1707_v46  ;;  %v2521_v38 = vmul.f32 %v6335_v26, %v6261_v60 }
 0x280   : > { %3535 = vst [vmem:[%s5404_s13 + $0xe8] sm:$0xff] %v3471_v33  ;;  %v2448_v21 = vmul.f32 %v4442_v57, %v2251_v35  ;;  %v4231_v17 = vpop.eup %4230  ;;  %4238 = vpow2.f32 %v1636_v54  ;;  %v3033_v54 = vmul.f32 %v6335_v26, %v6284_v36 }
 0x281   : > { %2818 = vperm.xlu1 %3838, %v2536_v31   ;;  %v6364_v35 = vpop.eup %4232  ;;  %v1882_v31 = vadd.f32 %v6346_v50, %v6342_v53  ;;  %v3049_v18 = vmul.f32 %v4231_v17, %v6305_v7 }
 0x282   : > { %2290 = vperm.xlu2 %3839, %v2072_v4   ;;  %v6368_v37 = vpop.eup %4234  ;;  %v1962_v42 = vadd.f32 %v6364_v35, %v1898_v3  ;;  %v4447_v4 = vld [vmem:[%s5040_s5 + $0xf8] sm:$0xff] }
 0x283   : > { %v2699_v55 = vpop.permute.xlu1 %2698  ;;  %v1946_v56 = vadd.f32 %v6368_v37, %v1882_v31 }
 0x284   : > { %v2896_v22 = vmul.f32 %v4443_v48, %v2699_v55  ;;  %v6320_v58 = vpop.permute.xlu2 %3300  ;;  %v1180_v55 = vmax.f32 %v6353_v51, %v6362_v34  ;;  %v2537_v48 = vmul.f32 %v4231_v17, %v6277_v10  ;;  %4240 = vrcp.f32 %v1962_v42  ;;  %v4452_v42 = vld [vmem:[%s4886_s30 + $0x100] sm:$0xff] }
 0x285   : > { %2738 = vperm.xlu0 %3837, %v2520_v40   ;;  %v2089_v40 = vmul.f32 %v4231_v17, %v6273_v24  ;;  %v1691_v24 = vsub.f32 %v6324_v47, %v6340_v23  ;;  %v1196_v47 = vmax.f32 %v5261_v19, %v5573_v20  ;;  %v6398_v7 = vpop.eup %4236  ;;  %v2450_v60 = vmul.f32 %v4452_v42, %v6291_v29  ;;  %v4456_v42 = vld [vmem:[%s5040_s5 + $0x188] sm:$0xff] }
 0x286   : > { %v2960_v13 = vadd.f32 %v2896_v22, %v2448_v21  ;;  %v1412_v21 = vmul.f32 1.442695, %v1307_v28  ;;  %v6380_v22 = vpop.f32.mrf.mxu2 }
 0x287   : > { %v3216_v59 = vpop.permute.xlu0 %3215  ;;  %v6388_v10 = vmax.f32 %v1180_v55, %v6380_v22  ;;  %v1796_v41 = vmul.f32 1.442695, %v1691_v24 }
 0x288   : > { %v3472_v12 = vadd.f32 %v3408_v30, %v2960_v13  ;;  %v3409_v49 = vmul.f32 %v4447_v4, %v3216_v59  ;;  %v6390_v30 = vpop.f32.mrf.mxu3  ;;  %v4448_v13 = vld [vmem:[%s4886_s30 + $0x180] sm:$0xff]  ;;  %4242 = vpow2.f32 %v1412_v21 }
 0x289   : > { %3250 = vperm.xlu1 %3838, %v3032_v1   ;;  %v4449_v59 = vld [vmem:[%s4894_s10 + $0x180] sm:$0xff]  ;;  %4244 = vrcp.f32 %v1946_v56  ;;  %v1308_v63 = vsub.f32 %v6353_v51, %v6388_v10  ;;  %v1500_v28 = vsub.f32 %v6362_v34, %v6388_v10  ;;  %v1692_v29 = vsub.f32 %v6380_v22, %v6388_v10 }
 0x28a   : > { %3536 = vst [vmem:[%s5404_s13 + $0xf0] sm:$0xff] %v3472_v12  ;;  %3330 = vperm.xlu2 %3839, %v3048_v11   ;;  %v4450_v11 = vld [vmem:[%s5040_s5 + $0x180] sm:$0xff]  ;;  %4246 = vpow2.f32 %v1604_v44 }
 0x28b   : > { %v2256_v62 = vpop.permute.xlu1 %2255  ;;  %v3426_v23 = vmul.f32 %v4450_v11, %v6320_v58  ;;  %4248 = vpow2.f32 %v1828_v43  ;;  %v1606_v46 = vmul.f32 1.442695, %v1500_v28  ;;  %v6449_v43 = vpop.f32.mrf.mxu1 }
 0x28c   : > { %v2449_v39 = vmul.f32 %v4446_v9, %v2256_v62  ;;  %v6358_v33 = vpop.permute.xlu2 %2793  ;;  %v6405_v62 = vmax.f32 %v1196_v47, %v6390_v30  ;;  %v4451_v9 = vld [vmem:[%s4894_s10 + $0x100] sm:$0xff]  ;;  %4250 = vpow2.f32 %v1796_v41  ;;  %v4454_v41 = vld [vmem:[%s4894_s10 + $0x188] sm:$0xff] }
 0x28d   : > { %2295 = vperm.xlu0 %3837, %v2073_v61   ;;  %v6402_v61 = vpop.eup %4238 }
 0x28e   : > { %v2961_v32 = vadd.f32 %v2897_v15, %v2449_v39  ;;  %v6411_v15 = vpop.eup %4240  ;;  %v1899_v51 = vadd.f32 %v6402_v61, %v6398_v7  ;;  %v1324_v34 = vsub.f32 %v5261_v19, %v6405_v62  ;;  %v1516_v19 = vsub.f32 %v5573_v20, %v6405_v62 }
 0x28f   : > { %v2341_v2 = vpop.permute.xlu0 %2340  ;;  %v6418_v31 = vpop.eup %4242  ;;  %v2538_v36 = vmul.f32 %v6411_v15, %v6330_v52  ;;  %v2090_v10 = vmul.f32 %v6411_v15, %v6326_v6  ;;  %v3050_v28 = vmul.f32 %v6411_v15, %v6364_v35 }
 0x290   : > { %v3473_v57 = vadd.f32 %v3409_v49, %v2961_v32  ;;  %v2466_v25 = vmul.f32 %v4448_v13, %v2341_v2  ;;  %v6425_v4 = vpop.eup %4244  ;;  %v1414_v49 = vmul.f32 1.442695, %v1308_v63  ;;  %v4453_v2 = vld [vmem:[%s5040_s5 + $0x100] sm:$0xff]  ;;  %v1446_v56 = vmul.f32 1.442695, %v1324_v34  ;;  %v6453_v20 = vpop.f32.mrf.mxu3 }
 0x291   : > { %2375 = vperm.xlu1 %3838, %v2089_v40   ;;  %v6431_v32 = vpop.eup %4246  ;;  %v2074_v24 = vmul.f32 %v6425_v4, %v6342_v53  ;;  %v1197_v13 = vmax.f32 %v5275_v16, %v5595_v27  ;;  %v1708_v53 = vsub.f32 %v6390_v30, %v6405_v62  ;;  %v3034_v47 = vmul.f32 %v6425_v4, %v6368_v37  ;;  %v4455_v30 = vld [vmem:[%s4886_s30 + $0x188] sm:$0xff] }
 0x292   : > { %3537 = vst [vmem:[%s5404_s13 + $0xf8] sm:$0xff] %v3473_v57  ;;  %2823 = vperm.xlu2 %3839, %v2537_v48   ;;  %v6438_v57 = vpop.eup %4248  ;;  %v6443_v48 = vpop.f32.mrf.mxu0  ;;  %v1883_v22 = vadd.f32 %v6431_v32, %v6418_v31  ;;  %4252 = vpow2.f32 %v1414_v49  ;;  %v2522_v34 = vmul.f32 %v6425_v4, %v6346_v50 }
 0x293   : > { %v2789_v5 = vpop.permute.xlu1 %2788  ;;  %v1963_v52 = vadd.f32 %v6438_v57, %v1899_v51  ;;  %4254 = vpow2.f32 %v1606_v46 }
 0x294   : > { %v2914_v1 = vmul.f32 %v4449_v59, %v2789_v5  ;;  %v6394_v12 = vpop.permute.xlu2 %3225  ;;  %v1798_v5 = vmul.f32 1.442695, %v1692_v29  ;;  %v1181_v59 = vmax.f32 %v6443_v48, %v6449_v43  ;;  %v4457_v29 = vld [vmem:[%s4886_s30 + $0x108] sm:$0xff] }
 0x295   : > { %3335 = vperm.xlu0 %3837, %v3049_v18   ;;  %v6451_v18 = vpop.eup %4250  ;;  %4256 = vrcp.f32 %v1963_v52 }
 0x296   : > { %v2978_v3 = vadd.f32 %v2914_v1, %v2466_v25  ;;  %v1638_v25 = vmul.f32 1.442695, %v1516_v19  ;;  %4258 = vpow2.f32 %v1446_v56  ;;  %v6465_v1 = vmax.f32 %v1197_v13, %v6453_v20 }
 0x297   : > { %v2709_v17 = vpop.permute.xlu0 %2708  ;;  %v1947_v6 = vadd.f32 %v6451_v18, %v1883_v22  ;;  %4260 = vpow2.f32 %v1798_v5 }
 0x298   : > { %v3490_v58 = vadd.f32 %v3426_v23, %v2978_v3  ;;  %v2898_v39 = vmul.f32 %v4451_v9, %v2709_v17  ;;  %v6470_v23 = vpop.f32.mrf.mxu2  ;;  %v2915_v3 = vmul.f32 %v4454_v41, %v6358_v33  ;;  %v6477_v63 = vpop.eup %4252  ;;  %4262 = vpow2.f32 %v1638_v25 }
 0x299   : > { %2743 = vperm.xlu1 %3838, %v2521_v38   ;;  %v6479_v38 = vpop.eup %4254  ;;  %v1245_v37 = vmax.f32 %v1181_v59, %v6470_v23  ;;  %v1830_v9 = vmul.f32 1.442695, %v1708_v53  ;;  %4264 = vrcp.f32 %v1947_v6  ;;  %v1517_v51 = vsub.f32 %v5595_v27, %v6465_v1 }
 0x29a   : > { %3554 = vst [vmem:[%s5404_s13 + $0x180] sm:$0xff] %v3490_v58  ;;  %3255 = vperm.xlu2 %3839, %v3033_v54   ;;  %v2962_v45 = vadd.f32 %v2898_v39, %v2450_v60  ;;  %v1325_v39 = vsub.f32 %v5275_v16, %v6465_v1  ;;  %v1884_v16 = vadd.f32 %v6479_v38, %v6477_v63 }
 0x29b   : > { %v3221_v26 = vpop.permute.xlu1 %3220  ;;  %v6486_v54 = vpop.eup %4256  ;;  %4266 = vpow2.f32 %v1830_v9  ;;  %v1501_v50 = vsub.f32 %v6449_v43, %v1245_v37  ;;  %v1640_v46 = vmul.f32 1.442695, %v1517_v51 }
 0x29c   : > { %v3410_v40 = vmul.f32 %v4453_v2, %v3221_v26  ;;  %v6436_v55 = vpop.permute.xlu2 %2350  ;;  %v6493_v49 = vpop.eup %4258  ;;  %v1448_v26 = vmul.f32 1.442695, %v1325_v39  ;;  %v2091_v4 = vmul.f32 %v6486_v54, %v6398_v7  ;;  %v4459_v7 = vld [vmem:[%s5040_s5 + $0x108] sm:$0xff] }
 0x29d   : > { %2828 = vperm.xlu0 %3837, %v2538_v36   ;;  %v6497_v35 = vpop.eup %4260  ;;  %v1309_v36 = vsub.f32 %v6443_v48, %v1245_v37  ;;  %v1709_v48 = vsub.f32 %v6453_v20, %v6465_v1  ;;  %v1608_v5 = vmul.f32 1.442695, %v1501_v50  ;;  %v2539_v20 = vmul.f32 %v6486_v54, %v6402_v61  ;;  %v6525_v6 = vpop.f32.mrf.mxu0 }
 0x29e   : > { %v3474_v21 = vadd.f32 %v3410_v40, %v2962_v45  ;;  %v6500_v27 = vpop.eup %4262  ;;  %v4458_v40 = vld [vmem:[%s4894_s10 + $0x108] sm:$0xff]  ;;  %v1948_v56 = vadd.f32 %v6497_v35, %v1884_v16  ;;  %4268 = vpow2.f32 %v1448_v26  ;;  %v4463_v26 = vld [vmem:[%s5040_s5 + $0x110] sm:$0xff] }
 0x29f   : > { %v2266_v44 = vpop.permute.xlu0 %2265  ;;  %v1900_v22 = vadd.f32 %v6500_v27, %v6493_v49  ;;  %v1416_v43 = vmul.f32 1.442695, %v1309_v36  ;;  %4270 = vpow2.f32 %v1640_v46  ;;  %v1832_v1 = vmul.f32 1.442695, %v1709_v48 }
 0x2a0   : > { %3538 = vst [vmem:[%s5404_s13 + $0x100] sm:$0xff] %v3474_v21  ;;  %v2451_v2 = vmul.f32 %v4457_v29, %v2266_v44  ;;  %v4265_v21 = vpop.eup %4264  ;;  %4272 = vrcp.f32 %v1948_v56  ;;  %v4464_v29 = vld [vmem:[%s4886_s30 + $0x190] sm:$0xff] }
 0x2a1   : > { %2300 = vperm.xlu1 %3838, %v2074_v24   ;;  %v3411_v24 = vmul.f32 %v4459_v7, %v6394_v12  ;;  %v2075_v53 = vmul.f32 %v4265_v21, %v6418_v31  ;;  %v6521_v59 = vpop.eup %4266  ;;  %v6523_v12 = vpop.f32.mrf.mxu3  ;;  %4274 = vpow2.f32 %v1416_v43  ;;  %v4465_v7 = vld [vmem:[%s5040_s5 + $0x190] sm:$0xff] }
 0x2a2   : > { %2380 = vperm.xlu2 %3839, %v2090_v10   ;;  %v1693_v10 = vsub.f32 %v6470_v23, %v1245_v37  ;;  %v1964_v61 = vadd.f32 %v6521_v59, %v1900_v22  ;;  %v6531_v31 = vpop.f32.mrf.mxu1  ;;  %4276 = vpow2.f32 %v1608_v5  ;;  %v2523_v23 = vmul.f32 %v4265_v21, %v6431_v32  ;;  %v6548_v51 = vpop.f32.mrf.mxu2 }
 0x2a3   : > { %v2346_v11 = vpop.permute.xlu1 %2345  ;;  %4278 = vpow2.f32 %v1832_v1  ;;  %v1182_v32 = vmax.f32 %v6525_v6, %v6531_v31 }
 0x2a4   : > { %v2467_v62 = vmul.f32 %v4455_v30, %v2346_v11  ;;  %v6475_v17 = vpop.permute.xlu2 %2718  ;;  %v1800_v11 = vmul.f32 1.442695, %v1693_v10  ;;  %v4460_v30 = vld [vmem:[%s4894_s10 + $0x110] sm:$0xff]  ;;  %v6542_v39 = vpop.eup %4268  ;;  %4280 = vrcp.f32 %v1964_v61 }
 0x2a5   : > { %3260 = vperm.xlu0 %3837, %v3034_v47   ;;  %v1198_v47 = vmax.f32 %v5290_v14, %v5616_v0 }
 0x2a6   : > { %v2979_v58 = vadd.f32 %v2915_v3, %v2467_v62  ;;  %v2900_v62 = vmul.f32 %v4460_v30, %v6475_v17  ;;  %4282 = vpow2.f32 %v1800_v11 }
 0x2a7   : > { %v3306_v33 = vpop.permute.xlu0 %3305  ;;  %v6535_v3 = vmax.f32 %v1198_v47, %v6523_v12 }
 0x2a8   : > { %v3427_v60 = vmul.f32 %v4456_v42, %v3306_v33  ;;  %v6546_v33 = vpop.eup %4270 }
 0x2a9   : > { %3340 = vperm.xlu1 %3838, %v3050_v28   ;;  %v6550_v17 = vpop.eup %4272  ;;  %v1326_v16 = vsub.f32 %v5290_v14, %v6535_v3  ;;  %v1518_v46 = vsub.f32 %v5616_v0, %v6535_v3  ;;  %v1901_v14 = vadd.f32 %v6546_v33, %v6542_v39 }
 0x2aa   : > { %v3491_v15 = vadd.f32 %v3427_v60, %v2979_v58  ;;  %2748 = vperm.xlu2 %3839, %v2522_v34   ;;  %v4461_v58 = vld [vmem:[%s4886_s30 + $0x110] sm:$0xff]  ;;  %v3035_v60 = vmul.f32 %v4265_v21, %v6451_v18  ;;  %v6553_v34 = vpop.eup %4274  ;;  %v1246_v18 = vmax.f32 %v1182_v32, %v6548_v51  ;;  %v6582_v43 = vpop.f32.mrf.mxu1 }
 0x2ab   : > { %v2714_v45 = vpop.permute.xlu1 %2713  ;;  %v1450_v48 = vmul.f32 1.442695, %v1326_v16 }
 0x2ac   : > { %3555 = vst [vmem:[%s5404_s13 + $0x188] sm:$0xff] %v3491_v15  ;;  %v2899_v19 = vmul.f32 %v4458_v40, %v2714_v45  ;;  %v6508_v52 = vpop.permute.xlu2 %2275  ;;  %v4462_v15 = vld [vmem:[%s4894_s10 + $0x190] sm:$0xff]  ;;  %v6561_v45 = vpop.eup %4276  ;;  %v1310_v5 = vsub.f32 %v6525_v6, %v1246_v18 }
 0x2ad   : > { %2385 = vperm.xlu0 %3837, %v2091_v4   ;;  %v3051_v4 = vmul.f32 %v6486_v54, %v6438_v57  ;;  %v2076_v57 = vmul.f32 %v6550_v17, %v6477_v63  ;;  %v6574_v0 = vpop.f32.mrf.mxu0  ;;  %v1885_v56 = vadd.f32 %v6561_v45, %v6553_v34  ;;  %v1642_v63 = vmul.f32 1.442695, %v1518_v46 }
 0x2ae   : > { %v2963_v44 = vadd.f32 %v2899_v19, %v2451_v2  ;;  %v2468_v2 = vmul.f32 %v4464_v29, %v6436_v55  ;;  %v6570_v19 = vpop.eup %4278  ;;  %v1183_v61 = vmax.f32 %v6574_v0, %v6582_v43  ;;  %4284 = vpow2.f32 %v1450_v48  ;;  %v7005_v48 = vld [vmem:[#allocation15_spill] sm:$0xff] }
 0x2af   : > { %v2799_v13 = vpop.permute.xlu0 %2798  ;;  %v4281_v21 = vpop.eup %4280  ;;  %v1965_v10 = vadd.f32 %v6570_v19, %v1901_v14  ;;  %4286 = vpow2.f32 %v1642_v63 }
 0x2b0   : > { %v3475_v25 = vadd.f32 %v3411_v24, %v2963_v44  ;;  %v2916_v36 = vmul.f32 %v4462_v15, %v2799_v13  ;;  %v6584_v44 = vpop.eup %4282  ;;  %v6588_v13 = vpop.f32.mrf.mxu3  ;;  %v2092_v47 = vmul.f32 %v4281_v21, %v6493_v49  ;;  %v2540_v6 = vmul.f32 %v4281_v21, %v6500_v27 }
 0x2b1   : > { %2833 = vperm.xlu1 %3838, %v2539_v20   ;;  %v1949_v11 = vadd.f32 %v6584_v44, %v1885_v56  ;;  %4288 = vrcp.f32 %v1965_v10  ;;  %v1694_v49 = vsub.f32 %v6548_v51, %v1246_v18 }
 0x2b2   : > { %3539 = vst [vmem:[%s5404_s13 + $0x108] sm:$0xff] %v3475_v25  ;;  %2305 = vperm.xlu2 %3839, %v2075_v53   ;;  %v2980_v22 = vadd.f32 %v2916_v36, %v2468_v2  ;;  %v1502_v25 = vsub.f32 %v6531_v31, %v1246_v18  ;;  %v1710_v53 = vsub.f32 %v6523_v12, %v6535_v3  ;;  %v1418_v31 = vmul.f32 1.442695, %v1310_v5  ;;  %v4469_v2 = vld [vmem:[%s4894_s10 + $0x118] sm:$0xff] }
 0x2b3   : > { %v2271_v41 = vpop.permute.xlu1 %2270  ;;  %4290 = vrcp.f32 %v1949_v11  ;;  %v1802_v36 = vmul.f32 1.442695, %v1694_v49  ;;  %v2524_v18 = vmul.f32 %v6550_v17, %v6479_v38 }
 0x2b4   : > { %v2452_v37 = vmul.f32 %v4461_v58, %v2271_v41  ;;  %v6540_v9 = vpop.permute.xlu2 %3315  ;;  %v1610_v12 = vmul.f32 1.442695, %v1502_v25  ;;  %v7003_v41 = vld [vmem:[#allocation14_spill] sm:$0xff]  ;;  %v1834_v30 = vmul.f32 1.442695, %v1710_v53  ;;  %4292 = vpow2.f32 %v1418_v31  ;;  %v6615_v16 = vpop.eup %4284 }
 0x2b5   : > { %2753 = vperm.xlu0 %3837, %v2523_v23   ;;  %v6599_v23 = vpop.f32.mrf.mxu2  ;;  %v1199_v3 = vmax.f32 %v7003_v41, %v5638_v8 }
 0x2b6   : > { %v2964_v28 = vadd.f32 %v2900_v62, %v2452_v37  ;;  %v3052_v62 = vmul.f32 %v4281_v21, %v6521_v59  ;;  %v6606_v27 = vmax.f32 %v1183_v61, %v6599_v23  ;;  %v4466_v37 = vld [vmem:[%s4886_s30 + $0x198] sm:$0xff]  ;;  %4294 = vpow2.f32 %v1610_v12 }
 0x2b7   : > { %v3231_v42 = vpop.permute.xlu0 %3230  ;;  %v6613_v51 = vmax.f32 %v1199_v3, %v6588_v13  ;;  %v4468_v59 = vld [vmem:[%s5040_s5 + $0x198] sm:$0xff]  ;;  %4296 = vpow2.f32 %v1834_v30 }
 0x2b8   : > { %v3412_v50 = vmul.f32 %v4463_v26, %v3231_v42  ;;  %v3429_v15 = vmul.f32 %v4468_v59, %v6540_v9  ;;  %v1311_v46 = vsub.f32 %v6574_v0, %v6606_v27  ;;  %v6627_v29 = vpop.f32.mrf.mxu3  ;;  %v7004_v21 = vld [vmem:[#allocation17_spill] sm:$0xff]  ;;  %4298 = vpow2.f32 %v1802_v36  ;;  %v6670_v3 = vpop.f32.mrf.mxu1  ;;  %v4472_v36 = vld [vmem:[%s4894_s10 + $0x1a0] sm:$0xff] }
 0x2b9   : > { %3265 = vperm.xlu1 %3838, %v3035_v60   ;;  %v1200_v0 = vmax.f32 %v7005_v48, %v7004_v21  ;;  %v1327_v38 = vsub.f32 %v7003_v41, %v6613_v51  ;;  %v1695_v53 = vsub.f32 %v6599_v23, %v6606_v27 }
 0x2ba   : > { %v3476_v40 = vadd.f32 %v3412_v50, %v2964_v28  ;;  %3345 = vperm.xlu2 %3839, %v3051_v4   ;;  %v4467_v28 = vld [vmem:[%s4894_s10 + $0x198] sm:$0xff]  ;;  %v6619_v50 = vpop.eup %4286  ;;  %v1420_v63 = vmul.f32 1.442695, %v1311_v46 }
 0x2bb   : > { %v3311_v54 = vpop.permute.xlu1 %3310  ;;  %v6625_v14 = vpop.eup %4288  ;;  %v1452_v11 = vmul.f32 1.442695, %v1327_v38  ;;  %v7006_v38 = vld [vmem:[#allocation18_spill] sm:$0xff] }
 0x2bc   : > { %3540 = vst [vmem:[%s5404_s13 + $0x110] sm:$0xff] %v3476_v40  ;;  %v3428_v24 = vmul.f32 %v4465_v7, %v3311_v54  ;;  %v6580_v55 = vpop.permute.xlu2 %2808  ;;  %v3036_v54 = vmul.f32 %v6550_v17, %v6497_v35  ;;  %v6638_v56 = vpop.eup %4290  ;;  %v4470_v7 = vld [vmem:[%s4886_s30 + $0x118] sm:$0xff]  ;;  %v1519_v17 = vsub.f32 %v5638_v8, %v6613_v51  ;;  %v2541_v5 = vmul.f32 %v6625_v14, %v6546_v33 }
 0x2bd   : > { %2310 = vperm.xlu0 %3837, %v2076_v57   ;;  %v1503_v57 = vsub.f32 %v6582_v43, %v6606_v27  ;;  %v6645_v35 = vpop.eup %4292  ;;  %v6650_v43 = vmax.f32 %v1200_v0, %v6627_v29  ;;  %4300 = vpow2.f32 %v1420_v63  ;;  %v2077_v41 = vmul.f32 %v6638_v56, %v6553_v34  ;;  %v6688_v59 = vpop.f32.mrf.mxu2 }
 0x2be   : > { %v3492_v20 = vadd.f32 %v3428_v24, %v2980_v22  ;;  %v1902_v22 = vadd.f32 %v6619_v50, %v6615_v16  ;;  %v2453_v24 = vmul.f32 %v4470_v7, %v6508_v52  ;;  %v1644_v12 = vmul.f32 1.442695, %v1519_v17 }
 0x2bf   : > { %v2356_v1 = vpop.permute.xlu0 %2355  ;;  %v1612_v52 = vmul.f32 1.442695, %v1503_v57  ;;  %v2093_v27 = vmul.f32 %v6625_v14, %v6542_v39  ;;  %v1711_v34 = vsub.f32 %v6588_v13, %v6613_v51  ;;  %v3037_v39 = vmul.f32 %v6638_v56, %v6584_v44 }
 0x2c0   : > { %3556 = vst [vmem:[%s5404_s13 + $0x190] sm:$0xff] %v3492_v20  ;;  %v2469_v32 = vmul.f32 %v4466_v37, %v2356_v1  ;;  %v6654_v20 = vpop.eup %4294  ;;  %v4471_v1 = vld [vmem:[%s5040_s5 + $0x118] sm:$0xff]  ;;  %v6664_v31 = vpop.f32.mrf.mxu0  ;;  %v1520_v37 = vsub.f32 %v7004_v21, %v6650_v43  ;;  %v2525_v63 = vmul.f32 %v6638_v56, %v6561_v45 }
 0x2c1   : > { %2390 = vperm.xlu1 %3838, %v2092_v47   ;;  %v6661_v8 = vpop.eup %4296  ;;  %v1886_v49 = vadd.f32 %v6654_v20, %v6645_v35  ;;  %4302 = vpow2.f32 %v1612_v52  ;;  %v1836_v44 = vmul.f32 1.442695, %v1711_v34 }
 0x2c2   : > { %2838 = vperm.xlu2 %3839, %v2540_v6   ;;  %v1966_v6 = vadd.f32 %v6661_v8, %v1902_v22  ;;  %v6672_v30 = vpop.eup %4298  ;;  %4304 = vpow2.f32 %v1452_v11  ;;  %v7007_v22 = vld [vmem:[#allocation16_spill] sm:$0xff] }
 0x2c3   : > { %v2804_v58 = vpop.permute.xlu1 %2803  ;;  %v6695_v46 = vpop.eup %4300  ;;  %v1201_v7 = vmax.f32 %v7007_v22, %v7006_v38 }
 0x2c4   : > { %v2917_v42 = vmul.f32 %v4467_v28, %v2804_v58  ;;  %v6610_v60 = vpop.permute.xlu2 %3240  ;;  %v1804_v58 = vmul.f32 1.442695, %v1695_v53  ;;  %4306 = vrcp.f32 %v1966_v6  ;;  %v1950_v28 = vadd.f32 %v6672_v30, %v1886_v49  ;;  %v4475_v53 = vld [vmem:[%s4886_s30 + $0x120] sm:$0xff] }
 0x2c5   : > { %3350 = vperm.xlu0 %3837, %v3052_v62   ;;  %v1328_v62 = vsub.f32 %v7005_v48, %v6650_v43  ;;  %4308 = vpow2.f32 %v1644_v12  ;;  %v3053_v48 = vmul.f32 %v6625_v14, %v6570_v19 }
 0x2c6   : > { %v2981_v26 = vadd.f32 %v2917_v42, %v2469_v32  ;;  %v1184_v32 = vmax.f32 %v6664_v31, %v6670_v3  ;;  %4310 = vpow2.f32 %v1804_v58 }
 0x2c7   : > { %v2724_v4 = vpop.permute.xlu0 %2723  ;;  %4312 = vrcp.f32 %v1950_v28 }
 0x2c8   : > { %v3493_v9 = vadd.f32 %v3429_v15, %v2981_v26  ;;  %v2901_v40 = vmul.f32 %v4469_v2, %v2724_v4  ;;  %v1454_v15 = vmul.f32 1.442695, %v1328_v62  ;;  %v2918_v26 = vmul.f32 %v4472_v36, %v6580_v55  ;;  %v4473_v4 = vld [vmem:[%s4886_s30 + $0x1a0] sm:$0xff]  ;;  %v6740_v49 = vpop.f32.mrf.mxu0 }
 0x2c9   : > { %2758 = vperm.xlu1 %3838, %v2524_v18   ;;  %v1646_v18 = vmul.f32 1.442695, %v1520_v37  ;;  %v1712_v55 = vsub.f32 %v6627_v29, %v6650_v43 }
 0x2ca   : > { %3557 = vst [vmem:[%s5404_s13 + $0x198] sm:$0xff] %v3493_v9  ;;  %3270 = vperm.xlu2 %3839, %v3036_v54   ;;  %v2965_v25 = vadd.f32 %v2901_v40, %v2453_v24  ;;  %v6697_v9 = vpop.eup %4302  ;;  %v6700_v40 = vmax.f32 %v1184_v32, %v6688_v59  ;;  %v6706_v54 = vpop.f32.mrf.mxu3  ;;  %4314 = vpow2.f32 %v1454_v15  ;;  %v4474_v24 = vld [vmem:[%s5040_s5 + $0x1a0] sm:$0xff] }
 0x2cb   : > { %v3236_v10 = vpop.permute.xlu1 %3235  ;;  %v6702_v57 = vpop.eup %4304  ;;  %4316 = vpow2.f32 %v1646_v18  ;;  %v1887_v19 = vadd.f32 %v6697_v9, %v6695_v46  ;;  %v6724_v43 = vmax.f32 %v1201_v7, %v6706_v54  ;;  %v1838_v45 = vmul.f32 1.442695, %v1712_v55  ;;  %v4479_v55 = vld [vmem:[%s4886_s30 + $0x128] sm:$0xff] }
 0x2cc   : > { %v3413_v47 = vmul.f32 %v4471_v1, %v3236_v10  ;;  %v6659_v61 = vpop.permute.xlu2 %2365  ;;  %v6710_v0 = vpop.eup %4306  ;;  %4318 = vpow2.f32 %v1836_v44  ;;  %v1312_v10 = vsub.f32 %v6664_v31, %v6700_v40  ;;  %v1504_v56 = vsub.f32 %v6670_v3, %v6700_v40  ;;  %v4477_v3 = vld [vmem:[%s5040_s5 + $0x120] sm:$0xff] }
 0x2cd   : > { %2843 = vperm.xlu0 %3837, %v2541_v5   ;;  %v6717_v29 = vpop.eup %4308  ;;  %v3414_v62 = vmul.f32 %v4477_v3, %v6610_v60  ;;  %4320 = vpow2.f32 %v1838_v45  ;;  %v1696_v32 = vsub.f32 %v6688_v59, %v6700_v40  ;;  %v6764_v59 = vpop.f32.mrf.mxu2 }
 0x2ce   : > { %v3477_v33 = vadd.f32 %v3413_v47, %v2965_v25  ;;  %v6721_v14 = vpop.eup %4310  ;;  %v2094_v25 = vmul.f32 %v6710_v0, %v6615_v16  ;;  %v4476_v47 = vld [vmem:[%s4894_s10 + $0x120] sm:$0xff]  ;;  %v1903_v31 = vadd.f32 %v6717_v29, %v6702_v57  ;;  %v1422_v58 = vmul.f32 1.442695, %v1312_v10  ;;  %v4480_v10 = vld [vmem:[%s4894_s10 + $0x1a8] sm:$0xff] }
 0x2cf   : > { %v2281_v23 = vpop.permute.xlu0 %2280  ;;  %v1951_v12 = vadd.f32 %v6721_v14, %v1887_v19  ;;  %v1614_v34 = vmul.f32 1.442695, %v1504_v56  ;;  %v4481_v56 = vld [vmem:[%s5040_s5 + $0x128] sm:$0xff] }
 0x2d0   : > { %3541 = vst [vmem:[%s5404_s13 + $0x118] sm:$0xff] %v3477_v33  ;;  %v2454_v1 = vmul.f32 %v4475_v53, %v2281_v23  ;;  %v4313_v33 = vpop.eup %4312  ;;  %v1329_v23 = vsub.f32 %v7007_v22, %v6724_v43  ;;  %v3054_v53 = vmul.f32 %v6710_v0, %v6661_v8 }
 0x2d1   : > { %2315 = vperm.xlu1 %3838, %v2077_v41   ;;  %v6742_v41 = vpop.f32.mrf.mxu1  ;;  %v6744_v16 = vpop.eup %4314  ;;  %v2078_v36 = vmul.f32 %v4313_v33, %v6645_v35  ;;  %4322 = vrcp.f32 %v1951_v12  ;;  %v1806_v35 = vmul.f32 1.442695, %v1696_v32  ;;  %v2526_v18 = vmul.f32 %v4313_v33, %v6654_v20 }
 0x2d2   : > { %2395 = vperm.xlu2 %3839, %v2093_v27   ;;  %v6750_v37 = vpop.eup %4316  ;;  %v1185_v60 = vmax.f32 %v6740_v49, %v6742_v41  ;;  %4324 = vpow2.f32 %v1422_v58  ;;  %v3038_v19 = vmul.f32 %v4313_v33, %v6672_v30  ;;  %v4482_v30 = vld [vmem:[%s4886_s30 + $0x1a8] sm:$0xff] }
 0x2d3   : > { %v2361_v42 = vpop.permute.xlu1 %2360  ;;  %4326 = vpow2.f32 %v1614_v34 }
 0x2d4   : > { %v2470_v13 = vmul.f32 %v4473_v4, %v2361_v42  ;;  %v6693_v51 = vpop.permute.xlu2 %2733  ;;  %v6756_v42 = vpop.eup %4318  ;;  %v1521_v4 = vsub.f32 %v7006_v38, %v6724_v43  ;;  %v1249_v38 = vmax.f32 %v1185_v60, %v6764_v59 }
 0x2d5   : > { %3275 = vperm.xlu0 %3837, %v3037_v39   ;;  %v2542_v39 = vmul.f32 %v6710_v0, %v6619_v50  ;;  %v1904_v50 = vadd.f32 %v6750_v37, %v6744_v16  ;;  %v6776_v22 = vpop.eup %4320 }
 0x2d6   : > { %v2982_v2 = vadd.f32 %v2918_v26, %v2470_v13  ;;  %v1967_v26 = vadd.f32 %v6756_v42, %v1903_v31  ;;  %v1456_v13 = vmul.f32 1.442695, %v1329_v23  ;;  %v1648_v7 = vmul.f32 1.442695, %v1521_v4  ;;  %v4483_v23 = vld [vmem:[%s5040_s5 + $0x1a8] sm:$0xff] }
 0x2d7   : > { %v3321_v21 = vpop.permute.xlu0 %3320 }
 0x2d8   : > { %v3430_v17 = vmul.f32 %v4474_v24, %v3321_v21  ;;  %4328 = vrcp.f32 %v1967_v26  ;;  %v1968_v24 = vadd.f32 %v6776_v22, %v1904_v50 }
 0x2d9   : > { %3355 = vperm.xlu1 %3838, %v3053_v48   ;;  %4330 = vpow2.f32 %v1456_v13  ;;  %v4485_v13 = vld [vmem:[%s4894_s10 + $0x1b0] sm:$0xff] }
 0x2da   : > { %v3494_v5 = vadd.f32 %v3430_v17, %v2982_v2  ;;  %2763 = vperm.xlu2 %3839, %v2525_v63   ;;  %v4478_v2 = vld [vmem:[%s4894_s10 + $0x128] sm:$0xff]  ;;  %v6779_v17 = vpop.eup %4322  ;;  %4332 = vpow2.f32 %v1806_v35 }
 0x2db   : > { %v2729_v52 = vpop.permute.xlu1 %2728  ;;  %v2903_v40 = vmul.f32 %v4478_v2, %v6693_v51  ;;  %v1713_v51 = vsub.f32 %v6706_v54, %v6724_v43  ;;  %4334 = vpow2.f32 %v1648_v7  ;;  %v1505_v54 = vsub.f32 %v6742_v41, %v1249_v38 }
 0x2dc   : > { %3558 = vst [vmem:[%s5404_s13 + $0x1a0] sm:$0xff] %v3494_v5  ;;  %v2902_v11 = vmul.f32 %v4476_v47, %v2729_v52  ;;  %v6735_v6 = vpop.permute.xlu2 %2290  ;;  %v6784_v5 = vpop.eup %4324  ;;  %v1313_v52 = vsub.f32 %v6740_v49, %v1249_v38  ;;  %4336 = vrcp.f32 %v1968_v24  ;;  %v2471_v43 = vmul.f32 %v4482_v30, %v6659_v61 }
 0x2dd   : > { %2400 = vperm.xlu0 %3837, %v2094_v25   ;;  %v1840_v33 = vmul.f32 1.442695, %v1713_v51  ;;  %v2079_v8 = vmul.f32 %v6779_v17, %v6695_v46  ;;  %v1616_v58 = vmul.f32 1.442695, %v1505_v54  ;;  %v2527_v7 = vmul.f32 %v6779_v17, %v6697_v9 }
 0x2de   : > { %v2966_v27 = vadd.f32 %v2902_v11, %v2454_v1  ;;  %v6791_v1 = vpop.eup %4326  ;;  %v1424_v41 = vmul.f32 1.442695, %v1313_v52 }
 0x2df   : > { %v2814_v28 = vpop.permute.xlu0 %2813  ;;  %v6796_v11 = vpop.eup %4328  ;;  %v1888_v12 = vadd.f32 %v6791_v1, %v6784_v5  ;;  %4338 = vpow2.f32 %v1840_v33 }
 0x2e0   : > { %v3478_v15 = vadd.f32 %v3414_v62, %v2966_v27  ;;  %v2919_v45 = vmul.f32 %v4480_v10, %v2814_v28  ;;  %v6800_v31 = vpop.eup %4330  ;;  %v1697_v27 = vsub.f32 %v6764_v59, %v1249_v38  ;;  %v2095_v28 = vmul.f32 %v6796_v11, %v6702_v57  ;;  %v4484_v59 = vld [vmem:[%s4886_s30 + $0x1b0] sm:$0xff] }
 0x2e1   : > { %2848 = vperm.xlu1 %3838, %v2542_v39   ;;  %v4333_v62 = vpop.eup %4332  ;;  %4340 = vpow2.f32 %v1424_v41  ;;  %v4488_v10 = vld [vmem:[%s4886_s30 + $0x130] sm:$0xff]  ;;  %v4491_v41 = vld [vmem:[%s4886_s30 + $0x1b8] sm:$0xff] }
 0x2e2   : > { %3542 = vst [vmem:[%s5404_s13 + $0x120] sm:$0xff] %v3478_v15  ;;  %2320 = vperm.xlu2 %3839, %v2078_v36   ;;  %v2983_v49 = vadd.f32 %v2919_v45, %v2471_v43  ;;  %v6809_v34 = vpop.eup %4334  ;;  %v1952_v15 = vadd.f32 %v4333_v62, %v1888_v12  ;;  %v2543_v36 = vmul.f32 %v6796_v11, %v6717_v29  ;;  %4342 = vpow2.f32 %v1616_v58  ;;  %v4490_v12 = vld [vmem:[%s4894_s10 + $0x1b8] sm:$0xff] }
 0x2e3   : > { %v2286_v44 = vpop.permute.xlu1 %2285  ;;  %v6813_v39 = vpop.eup %4336  ;;  %v1808_v60 = vmul.f32 1.442695, %v1697_v27  ;;  %v1905_v26 = vadd.f32 %v6809_v34, %v6800_v31  ;;  %v2456_v45 = vmul.f32 %v4488_v10, %v6735_v6  ;;  %v4492_v27 = vld [vmem:[%s5040_s5 + $0x1b8] sm:$0xff] }
 0x2e4   : > { %v2455_v21 = vmul.f32 %v4479_v55, %v2286_v44  ;;  %v6773_v48 = vpop.permute.xlu2 %3330  ;;  %v2544_v57 = vmul.f32 %v6813_v39, %v6750_v37  ;;  %4344 = vrcp.f32 %v1952_v15  ;;  %v2096_v33 = vmul.f32 %v6813_v39, %v6744_v16  ;;  %v4493_v15 = vld [vmem:[%s4886_s30 + $0x138] sm:$0xff] }
 0x2e5   : > { %2768 = vperm.xlu0 %3837, %v2526_v18   ;;  %v6826_v29 = vpop.eup %4338  ;;  %4346 = vpow2.f32 %v1808_v60  ;;  %v4494_v60 = vld [vmem:[%s4894_s10 + $0x138] sm:$0xff] }
 0x2e6   : > { %v2967_v20 = vadd.f32 %v2903_v40, %v2455_v21  ;;  %v1969_v2 = vadd.f32 %v6826_v29, %v1905_v26  ;;  %v4486_v40 = vld [vmem:[%s5040_s5 + $0x1b0] sm:$0xff] }
 0x2e7   : > { %v3246_v63 = vpop.permute.xlu0 %3245  ;;  %v6828_v44 = vpop.eup %4340  ;;  %v3432_v37 = vmul.f32 %v4486_v40, %v6773_v48 }
 0x2e8   : > { %v3415_v25 = vmul.f32 %v4481_v56, %v3246_v63  ;;  %v4343_v21 = vpop.eup %4342  ;;  %v3039_v63 = vmul.f32 %v6779_v17, %v6721_v14  ;;  %4348 = vrcp.f32 %v1969_v2  ;;  %v3055_v2 = vmul.f32 %v6796_v11, %v6756_v42 }
 0x2e9   : > { %3280 = vperm.xlu1 %3838, %v3038_v19   ;;  %v1889_v48 = vadd.f32 %v4343_v21, %v6828_v44 }
 0x2ea   : > { %v3479_v47 = vadd.f32 %v3415_v25, %v2967_v20  ;;  %3360 = vperm.xlu2 %3839, %v3054_v53   ;;  %v4487_v20 = vld [vmem:[%s4894_s10 + $0x130] sm:$0xff]  ;;  %v4345_v19 = vpop.eup %4344 }
 0x2eb   : > { %v3326_v0 = vpop.permute.xlu1 %3325  ;;  %v4347_v56 = vpop.eup %4346  ;;  %v3040_v9 = vmul.f32 %v4345_v19, %v4333_v62  ;;  %v4489_v53 = vld [vmem:[%s5040_s5 + $0x130] sm:$0xff]  ;;  %v2080_v6 = vmul.f32 %v4345_v19, %v6784_v5 }
 0x2ec   : > { %3543 = vst [vmem:[%s5404_s13 + $0x128] sm:$0xff] %v3479_v47  ;;  %v3431_v61 = vmul.f32 %v4483_v23, %v3326_v0  ;;  %v6806_v3 = vpop.permute.xlu2 %2823  ;;  %v1953_v14 = vadd.f32 %v4347_v56, %v1889_v48 }
 0x2ed   : > { %2325 = vperm.xlu0 %3837, %v2079_v8  }
 0x2ee   : > { %v3495_v46 = vadd.f32 %v3431_v61, %v2983_v49  ;;  %v4349_v47 = vpop.eup %4348  ;;  %4350 = vrcp.f32 %v1953_v14  ;;  %v2921_v49 = vmul.f32 %v4490_v12, %v6806_v3 }
 0x2ef   : > { %v2371_v32 = vpop.permute.xlu0 %2370  ;;  %v2097_v8 = vmul.f32 %v4349_v47, %v6800_v31  ;;  %v2545_v16 = vmul.f32 %v4349_v47, %v6809_v34  ;;  %v2528_v31 = vmul.f32 %v4345_v19, %v6791_v1  ;;  %v4495_v34 = vld [vmem:[%s5040_s5 + $0x138] sm:$0xff]  ;;  %v3057_v11 = vmul.f32 %v4349_v47, %v6826_v29  ;;  %v4500_v19 = vld [vmem:[%s4886_s30 + $0x1c0] sm:$0xff] }
 0x2f0   : > { %3559 = vst [vmem:[%s5404_s13 + $0x1a8] sm:$0xff] %v3495_v46  ;;  %v2472_v50 = vmul.f32 %v4484_v59, %v2371_v32 }
 0x2f1   : > { %2405 = vperm.xlu1 %3838, %v2095_v28  }
 0x2f2   : > { %2853 = vperm.xlu2 %3839, %v2543_v36  }
 0x2f3   : > { %v2819_v4 = vpop.permute.xlu1 %2818 }
 0x2f4   : > { %v2920_v35 = vmul.f32 %v4485_v13, %v2819_v4  ;;  %v6824_v18 = vpop.permute.xlu2 %3255  ;;  %v4351_v58 = vpop.eup %4350 }
 0x2f5   : > { %2858 = vperm.xlu0 %3837, %v2544_v57   ;;  %v2529_v3 = vmul.f32 %v4351_v58, %v4343_v21  ;;  %v3417_v4 = vmul.f32 %v4495_v34, %v6824_v18  ;;  %v4497_v21 = vld [vmem:[%s4886_s30 + $0x140] sm:$0xff] }
 0x2f6   : > { %v2984_v55 = vadd.f32 %v2920_v35, %v2472_v50  ;;  %v3041_v50 = vmul.f32 %v4351_v58, %v4347_v56  ;;  %v2081_v35 = vmul.f32 %v4351_v58, %v6828_v44  ;;  %v3056_v44 = vmul.f32 %v6813_v39, %v6776_v22  ;;  %v4501_v22 = vld [vmem:[%s5040_s5 + $0x1c0] sm:$0xff] }
 0x2f7   : > { %v2739_v38 = vpop.permute.xlu0 %2738 }
 0x2f8   : > { %v3496_v24 = vadd.f32 %v3432_v37, %v2984_v55  ;;  %v2904_v51 = vmul.f32 %v4487_v20, %v2739_v38  ;;  %v4496_v37 = vld [vmem:[%s4894_s10 + $0x140] sm:$0xff] }
 0x2f9   : > { %2773 = vperm.xlu1 %3838, %v2527_v7   ;;  %v4498_v20 = vld [vmem:[%s4894_s10 + $0x1c0] sm:$0xff] }
 0x2fa   : > { %3560 = vst [vmem:[%s5404_s13 + $0x1b0] sm:$0xff] %v3496_v24  ;;  %3285 = vperm.xlu2 %3839, %v3039_v63   ;;  %v2968_v52 = vadd.f32 %v2904_v51, %v2456_v45  ;;  %v4499_v63 = vld [vmem:[%s5040_s5 + $0x140] sm:$0xff] }
 0x2fb   : > { %v3251_v25 = vpop.permute.xlu1 %3250 }
 0x2fc   : > { %v3416_v54 = vmul.f32 %v4489_v53, %v3251_v25  ;;  %v6843_v30 = vpop.permute.xlu2 %2380  ;;  %v4502_v53 = vld [vmem:[%s4886_s30 + $0x1c8] sm:$0xff] }
 0x2fd   : > { %3290 = vperm.xlu0 %3837, %v3040_v9   ;;  %v2474_v10 = vmul.f32 %v4500_v19, %v6843_v30  ;;  %v4503_v30 = vld [vmem:[%s4894_s10 + $0x1c8] sm:$0xff]  ;;  %v4517_v19 = vld [vmem:[%s5040_s5 + $0x158] sm:$0xff] }
 0x2fe   : > { %v3480_v17 = vadd.f32 %v3416_v54, %v2968_v52 }
 0x2ff   : > { %v2296_v43 = vpop.permute.xlu0 %2295 }
 0x300   : > { %3544 = vst [vmem:[%s5404_s13 + $0x130] sm:$0xff] %v3480_v17  ;;  %v2457_v36 = vmul.f32 %v4493_v15, %v2296_v43  ;;  %v4504_v43 = vld [vmem:[%s5040_s5 + $0x1c8] sm:$0xff] }
 0x301   : > { %2330 = vperm.xlu1 %3838, %v2080_v6  }
 0x302   : > { %2410 = vperm.xlu2 %3839, %v2096_v33  }
 0x303   : > { %v2376_v0 = vpop.permute.xlu1 %2375 }
 0x304   : > { %v2473_v23 = vmul.f32 %v4491_v41, %v2376_v0  ;;  %v2749_v61 = vpop.permute.xlu2 %2748  ;;  %v4505_v0 = vld [vmem:[%s4894_s10 + $0x148] sm:$0xff] }
 0x305   : > { %2415 = vperm.xlu0 %3837, %v2097_v8   ;;  %v2906_v55 = vmul.f32 %v4496_v37, %v2749_v61 }
 0x306   : > { %v2985_v5 = vadd.f32 %v2921_v49, %v2473_v23  ;;  %v4506_v49 = vld [vmem:[%s4886_s30 + $0x148] sm:$0xff] }
 0x307   : > { %v3336_v62 = vpop.permute.xlu0 %3335 }
 0x308   : > { %v3433_v46 = vmul.f32 %v4492_v27, %v3336_v62 }
 0x309   : > { %2863 = vperm.xlu1 %3838, %v2545_v16  }
 0x30a   : > { %v3497_v32 = vadd.f32 %v3433_v46, %v2985_v5  ;;  %2778 = vperm.xlu2 %3839, %v2528_v31   ;;  %v4507_v5 = vld [vmem:[%s5040_s5 + $0x148] sm:$0xff]  ;;  %v4508_v31 = vld [vmem:[%s4894_s10 + $0x1d0] sm:$0xff] }
 0x30b   : > { %v2744_v28 = vpop.permute.xlu1 %2743 }
 0x30c   : > { %3561 = vst [vmem:[%s5404_s13 + $0x1b8] sm:$0xff] %v3497_v32  ;;  %v2905_v26 = vmul.f32 %v4494_v60, %v2744_v28  ;;  %v2306_v57 = vpop.permute.xlu2 %2305 }
 0x30d   : > { %2783 = vperm.xlu0 %3837, %v2529_v3   ;;  %v2459_v41 = vmul.f32 %v4506_v49, %v2306_v57  ;;  %v4509_v3 = vld [vmem:[%s4886_s30 + $0x1d0] sm:$0xff]  ;;  %v4523_v49 = vld [vmem:[%s4894_s10 + $0x160] sm:$0xff] }
 0x30e   : > { %v2969_v59 = vadd.f32 %v2905_v26, %v2457_v36  ;;  %v4510_v26 = vld [vmem:[%s5040_s5 + $0x1d0] sm:$0xff] }
 0x30f   : > { %v2829_v1 = vpop.permute.xlu0 %2828 }
 0x310   : > { %v3481_v13 = vadd.f32 %v3417_v4, %v2969_v59  ;;  %v2922_v51 = vmul.f32 %v4498_v20, %v2829_v1  ;;  %v4511_v59 = vld [vmem:[%s4886_s30 + $0x150] sm:$0xff] }
 0x311   : > { %3295 = vperm.xlu1 %3838, %v3041_v50   ;;  %v4512_v50 = vld [vmem:[%s4894_s10 + $0x150] sm:$0xff] }
 0x312   : > { %3545 = vst [vmem:[%s5404_s13 + $0x138] sm:$0xff] %v3481_v13  ;;  %2335 = vperm.xlu2 %3839, %v2081_v35   ;;  %v2986_v56 = vadd.f32 %v2922_v51, %v2474_v10 }
 0x313   : > { %v2301_v40 = vpop.permute.xlu1 %2300 }
 0x314   : > { %v2458_v18 = vmul.f32 %v4497_v21, %v2301_v40  ;;  %v3346_v38 = vpop.permute.xlu2 %3345 }
 0x315   : > { %3365 = vperm.xlu0 %3837, %v3055_v2   ;;  %v3435_v6 = vmul.f32 %v4504_v43, %v3346_v38  ;;  %v4513_v2 = vld [vmem:[%s5040_s5 + $0x150] sm:$0xff]  ;;  %v4514_v38 = vld [vmem:[%s4894_s10 + $0x158] sm:$0xff] }
 0x316   : > { %v2970_v7 = vadd.f32 %v2906_v55, %v2458_v18 }
 0x317   : > { %v3261_v24 = vpop.permute.xlu0 %3260 }
 0x318   : > { %v3418_v42 = vmul.f32 %v4499_v63, %v3261_v24  ;;  %v4515_v24 = vld [vmem:[%s4886_s30 + $0x158] sm:$0xff] }
 0x319   : > { %3370 = vperm.xlu1 %3838, %v3056_v44  }
 0x31a   : > { %v3482_v45 = vadd.f32 %v3418_v42, %v2970_v7  ;;  %3375 = vperm.xlu2 %3839, %v3057_v11   ;;  %v4516_v42 = vld [vmem:[%s4894_s10 + $0x1d8] sm:$0xff] }
 0x31b   : > { %v3341_v48 = vpop.permute.xlu1 %3340 }
 0x31c   : > { %3546 = vst [vmem:[%s5404_s13 + $0x140] sm:$0xff] %v3482_v45  ;;  %v3434_v39 = vmul.f32 %v4501_v22, %v3341_v48  ;;  %v2839_v9 = vpop.permute.xlu2 %2838  ;;  %v4518_v45 = vld [vmem:[%s4886_s30 + $0x1d8] sm:$0xff] }
 0x31d   : > { %v2924_v32 = vmul.f32 %v4508_v31, %v2839_v9  ;;  %v4519_v9 = vld [vmem:[%s5040_s5 + $0x1d8] sm:$0xff] }
 0x31e   : > { %v3498_v25 = vadd.f32 %v3434_v39, %v2986_v56 }
 0x31f   : > { %v2386_v52 = vpop.permute.xlu0 %2385 }
 0x320   : > { %3562 = vst [vmem:[%s5404_s13 + $0x1c0] sm:$0xff] %v3498_v25  ;;  %v2475_v54 = vmul.f32 %v4502_v53, %v2386_v52 }
 0x323   : > { %v2834_v29 = vpop.permute.xlu1 %2833 }
 0x324   : > { %v2923_v14 = vmul.f32 %v4503_v30, %v2834_v29  ;;  %v3271_v17 = vpop.permute.xlu2 %3270  ;;  %v4520_v30 = vld [vmem:[%s4886_s30 + $0x1e0] sm:$0xff] }
 0x325   : > { %v3420_v40 = vmul.f32 %v4513_v2, %v3271_v17  ;;  %v4521_v17 = vld [vmem:[%s4894_s10 + $0x1e0] sm:$0xff]  ;;  %v4529_v2 = vld [vmem:[%s4894_s10 + $0x170] sm:$0xff] }
 0x326   : > { %v2987_v47 = vadd.f32 %v2923_v14, %v2475_v54 }
 0x327   : > { %v2754_v33 = vpop.permute.xlu0 %2753 }
 0x328   : > { %v3499_v8 = vadd.f32 %v3435_v6, %v2987_v47  ;;  %v2907_v12 = vmul.f32 %v4505_v0, %v2754_v33  ;;  %v4522_v47 = vld [vmem:[%s5040_s5 + $0x1e0] sm:$0xff] }
 0x32a   : > { %3563 = vst [vmem:[%s5404_s13 + $0x1c8] sm:$0xff] %v3499_v8  ;;  %v2971_v61 = vadd.f32 %v2907_v12, %v2459_v41 }
 0x32b   : > { %v3266_v23 = vpop.permute.xlu1 %3265 }
 0x32c   : > { %v3419_v62 = vmul.f32 %v4507_v5, %v3266_v23  ;;  %v2396_v16 = vpop.permute.xlu2 %2395  ;;  %v4524_v23 = vld [vmem:[%s4886_s30 + $0x160] sm:$0xff] }
 0x32d   : > { %v2477_v48 = vmul.f32 %v4518_v45, %v2396_v16  ;;  %v4525_v16 = vld [vmem:[%s5040_s5 + $0x160] sm:$0xff] }
 0x32e   : > { %v3483_v58 = vadd.f32 %v3419_v62, %v2971_v61 }
 0x32f   : > { %v2311_v27 = vpop.permute.xlu0 %2310 }
 0x330   : > { %3547 = vst [vmem:[%s5404_s13 + $0x148] sm:$0xff] %v3483_v58  ;;  %v2460_v1 = vmul.f32 %v4511_v59, %v2311_v27 }
 0x333   : > { %v2391_v46 = vpop.permute.xlu1 %2390 }
 0x334   : > { %v2476_v28 = vmul.f32 %v4509_v3, %v2391_v46  ;;  %v2764_v15 = vpop.permute.xlu2 %2763 }
 0x335   : > { %v2909_v7 = vmul.f32 %v4514_v38, %v2764_v15 }
 0x336   : > { %v2988_v36 = vadd.f32 %v2924_v32, %v2476_v28 }
 0x337   : > { %v3351_v60 = vpop.permute.xlu0 %3350 }
 0x338   : > { %v3436_v57 = vmul.f32 %v4510_v26, %v3351_v60  ;;  %v4527_v26 = vld [vmem:[%s4894_s10 + $0x168] sm:$0xff] }
 0x33a   : > { %v3500_v34 = vadd.f32 %v3436_v57, %v2988_v36  ;;  %v4526_v36 = vld [vmem:[%s4886_s30 + $0x168] sm:$0xff] }
 0x33b   : > { %v2759_v4 = vpop.permute.xlu1 %2758 }
 0x33c   : > { %3564 = vst [vmem:[%s5404_s13 + $0x1d0] sm:$0xff] %v3500_v34  ;;  %v2908_v13 = vmul.f32 %v4512_v50, %v2759_v4  ;;  %v2321_v35 = vpop.permute.xlu2 %2320  ;;  %v4528_v34 = vld [vmem:[%s5040_s5 + $0x168] sm:$0xff] }
 0x33d   : > { %v2462_v61 = vmul.f32 %v4524_v23, %v2321_v35  ;;  %v4542_v23 = vld [vmem:[%s4886_s30 + $0x1f0] sm:$0xff] }
 0x33e   : > { %v2972_v37 = vadd.f32 %v2908_v13, %v2460_v1 }
 0x33f   : > { %v2844_v55 = vpop.permute.xlu0 %2843 }
 0x340   : > { %v3484_v21 = vadd.f32 %v3420_v40, %v2972_v37  ;;  %v2925_v11 = vmul.f32 %v4516_v42, %v2844_v55  ;;  %v4530_v37 = vld [vmem:[%s4886_s30 + $0x170] sm:$0xff]  ;;  %v4533_v42 = vld [vmem:[%s4894_s10 + $0x1f8] sm:$0xff] }
 0x342   : > { %3548 = vst [vmem:[%s5404_s13 + $0x150] sm:$0xff] %v3484_v21  ;;  %v2989_v39 = vadd.f32 %v2925_v11, %v2477_v48  ;;  %v4531_v21 = vld [vmem:[%s5040_s5 + $0x170] sm:$0xff] }
 0x343   : > { %v2316_v18 = vpop.permute.xlu1 %2315 }
 0x344   : > { %v2461_v44 = vmul.f32 %v4515_v24, %v2316_v18  ;;  %v3361_v20 = vpop.permute.xlu2 %3360 }
 0x345   : > { %v3438_v33 = vmul.f32 %v4522_v47, %v3361_v20 }
 0x346   : > { %v2973_v51 = vadd.f32 %v2909_v7, %v2461_v44 }
 0x347   : > { %v3276_v63 = vpop.permute.xlu0 %3275 }
 0x348   : > { %v3421_v10 = vmul.f32 %v4517_v19, %v3276_v63  ;;  %v4534_v19 = vld [vmem:[%s5040_s5 + $0x1f8] sm:$0xff] }
 0x34a   : > { %v3485_v56 = vadd.f32 %v3421_v10, %v2973_v51  ;;  %v4532_v51 = vld [vmem:[%s4886_s30 + $0x1f8] sm:$0xff] }
 0x34b   : > { %v3356_v22 = vpop.permute.xlu1 %3355 }
 0x34c   : > { %3549 = vst [vmem:[%s5404_s13 + $0x158] sm:$0xff] %v3485_v56  ;;  %v3437_v25 = vmul.f32 %v4519_v9, %v3356_v22  ;;  %v6900_v52 = vpop.permute.xlu2 %2853  ;;  %v4535_v22 = vld [vmem:[%s4894_s10 + $0x178] sm:$0xff] }
 0x34d   : > { %v4536_v9 = vld [vmem:[%s4886_s30 + $0x178] sm:$0xff] }
 0x34e   : > { %v3501_v29 = vadd.f32 %v3437_v25, %v2989_v39 }
 0x34f   : > { %v2401_v53 = vpop.permute.xlu0 %2400 }
 0x350   : > { %3565 = vst [vmem:[%s5404_s13 + $0x1d8] sm:$0xff] %v3501_v29  ;;  %v2478_v14 = vmul.f32 %v4520_v30, %v2401_v53  ;;  %v4537_v53 = vld [vmem:[%s4886_s30 + $0x1e8] sm:$0xff] }
 0x353   : > { %v2849_v54 = vpop.permute.xlu1 %2848 }
 0x354   : > { %v2926_v43 = vmul.f32 %v4521_v17, %v2849_v54  ;;  %v3286_v6 = vpop.permute.xlu2 %3285 }
 0x355   : > { %v3423_v4 = vmul.f32 %v4528_v34, %v3286_v6 }
 0x356   : > { %v2990_v8 = vadd.f32 %v2926_v43, %v2478_v14  ;;  %v4538_v14 = vld [vmem:[%s5040_s5 + $0x178] sm:$0xff]  ;;  %v4539_v43 = vld [vmem:[%s4894_s10 + $0x1e8] sm:$0xff] }
 0x357   : > { %v2769_v0 = vpop.permute.xlu0 %2768  ;;  %v2927_v6 = vmul.f32 %v4539_v43, %v6900_v52 }
 0x358   : > { %v3502_v12 = vadd.f32 %v3438_v33, %v2990_v8  ;;  %v2910_v41 = vmul.f32 %v4523_v49, %v2769_v0  ;;  %v4540_v0 = vld [vmem:[%s4894_s10 + $0x1f0] sm:$0xff]  ;;  %v4541_v49 = vld [vmem:[%s5040_s5 + $0x1e8] sm:$0xff]  ;;  %s3571_s10 = scalar_lea.sflag [#allocation4], %s4879_s1 }
 0x35a   : > { %3566 = vst [vmem:[%s5404_s13 + $0x1e0] sm:$0xff] %v3502_v12  ;;  %v2974_v62 = vadd.f32 %v2910_v41, %v2462_v61 }
 0x35b   : > { %v3281_v5 = vpop.permute.xlu1 %3280 }
 0x35c   : > { %v3422_v58 = vmul.f32 %v4525_v16, %v3281_v5  ;;  %v6910_v27 = vpop.permute.xlu2 %2410  ;;  %v4543_v16 = vld [vmem:[%s5040_s5 + $0x1f0] sm:$0xff] }
 0x35d   : > { %v2480_v61 = vmul.f32 %v4542_v23, %v6910_v27 }
 0x35e   : > { %v3486_v46 = vadd.f32 %v3422_v58, %v2974_v62 }
 0x35f   : > { %v2326_v31 = vpop.permute.xlu0 %2325 }
 0x360   : > { %3550 = vst [vmem:[%s5404_s13 + $0x160] sm:$0xff] %v3486_v46  ;;  %v2463_v60 = vmul.f32 %v4526_v36, %v2326_v31 }
 0x363   : > { %v2406_v32 = vpop.permute.xlu1 %2405 }
 0x364   : > { %v2779_v28 = vpop.permute.xlu2 %2778  ;;  %v2479_v54 = vmul.f32 %v4537_v53, %v2406_v32 }
 0x365   : > { %v2912_v40 = vmul.f32 %v4529_v2, %v2779_v28 }
 0x366   : > { %v2991_v8 = vadd.f32 %v2927_v6, %v2479_v54 }
 0x367   : > { %v2859_v3 = vpop.permute.xlu0 %2858 }
 0x368   : > { %v2928_v12 = vmul.f32 %v4540_v0, %v2859_v3 }
 0x36a   : > { %v2992_v62 = vadd.f32 %v2928_v12, %v2480_v61 }
 0x36b   : > { %v2774_v15 = vpop.permute.xlu1 %2773 }
 0x36c   : > { %v2911_v57 = vmul.f32 %v4527_v26, %v2774_v15  ;;  %v2336_v13 = vpop.permute.xlu2 %2335 }
 0x36d   : > { %v2465_v25 = vmul.f32 %v4536_v9, %v2336_v13 }
 0x36e   : > { %v2975_v59 = vadd.f32 %v2911_v57, %v2463_v60 }
 0x36f   : > { %v3291_v1 = vpop.permute.xlu0 %3290 }
 0x370   : > { %v3487_v50 = vadd.f32 %v3423_v4, %v2975_v59  ;;  %v3424_v18 = vmul.f32 %v4531_v21, %v3291_v1 }
 0x372   : > { %3551 = vst [vmem:[%s5404_s13 + $0x168] sm:$0xff] %v3487_v50 }
 0x373   : > { %v2331_v35 = vpop.permute.xlu1 %2330 }
 0x374   : > { %v2464_v55 = vmul.f32 %v4530_v37, %v2331_v35  ;;  %v3376_v44 = vpop.permute.xlu2 %3375 }
 0x375   : > { %v3441_v10 = vmul.f32 %v4534_v19, %v3376_v44 }
 0x376   : > { %v2976_v38 = vadd.f32 %v2912_v40, %v2464_v55 }
 0x377   : > { %v2416_v7 = vpop.permute.xlu0 %2415 }
 0x378   : > { %v3488_v24 = vadd.f32 %v3424_v18, %v2976_v38  ;;  %v2481_v63 = vmul.f32 %v4532_v51, %v2416_v7 }
 0x37a   : > { %3552 = vst [vmem:[%s5404_s13 + $0x170] sm:$0xff] %v3488_v24 }
 0x37b   : > { %v2864_v20 = vpop.permute.xlu1 %2863 }
 0x37c   : > { %v2929_v11 = vmul.f32 %v4533_v42, %v2864_v20 }
 0x37e   : > { %v2993_v45 = vadd.f32 %v2929_v11, %v2481_v63 }
 0x37f   : > { %v2784_v48 = vpop.permute.xlu0 %2783 }
 0x380   : > { %v3505_v56 = vadd.f32 %v3441_v10, %v2993_v45  ;;  %v2913_v39 = vmul.f32 %v4535_v22, %v2784_v48 }
 0x382   : > { %3569 = vst [vmem:[%s5404_s13 + $0x1f8] sm:$0xff] %v3505_v56  ;;  %v2977_v30 = vadd.f32 %v2913_v39, %v2465_v25 }
 0x383   : > { %v3296_v29 = vpop.permute.xlu1 %3295 }
 0x384   : > { %v3425_v17 = vmul.f32 %v4538_v14, %v3296_v29 }
 0x386   : > { %v3489_v47 = vadd.f32 %v3425_v17, %v2977_v30 }
 0x387   : > { %v3366_v33 = vpop.permute.xlu0 %3365 }
 0x388   : > { %3553 = vst [vmem:[%s5404_s13 + $0x178] sm:$0xff] %v3489_v47  ;;  %v3439_v41 = vmul.f32 %v4541_v49, %v3366_v33 }
 0x38a   : > { %v3503_v52 = vadd.f32 %v3439_v41, %v2991_v8 }
 0x38b   : > { %v3371_v5 = vpop.permute.xlu1 %3370 }
 0x38c   : > { %3567 = vst [vmem:[%s5404_s13 + $0x1e8] sm:$0xff] %v3503_v52  ;;  %v3440_v58 = vmul.f32 %v4543_v16, %v3371_v5 }
 0x38e   : > { %v3504_v46 = vadd.f32 %v3440_v58, %v2992_v62 }
 0x390   : > { %3568 = vst [vmem:[%s5404_s13 + $0x1f0] sm:$0xff] %v3504_v46 }
 0x391   : > { %4661 = shalt.err (!%p4658_p7)
}
 0x392   : > { %s4709_s1 = smov 128   ;;  %s4710_s22 = smov 8  }
 0x393   : > { %3782 = dma.vmem_to_hbm [thread:$0]  (%p4782_p11), %s3584_s19, 8192, %s3586_s12, %s3571_s10, %s4709_s1, %s4709_s1, %s4710_s22  }
 0x394 PF: > { %s3600_s2 = sand.u32 1, %s4692_s15   ;;  %p3795_p0 = pnand %p3704_p9, %p4786_p12 }
 0x395   : > { %s3601_s7 = scalar_lea.sflag [#allocation4], %s3600_s2 }
 0x396   : > { %p3796_p8 = pneg %p3795_p0 }
 0x398   : > { %4687 = dma.done.wait (%p3796_p8), %s3601_s7, 8192  }
 0x399   : > { %4689 = vsyncadd (%p3796_p8), %s3601_s7, 4294959104  ;;  %s7008_s9 = sld [smem:[#allocation12_spill]]  ;;  %p20_p10 = scmp.ge.s32.totalorder %s4761_s21, 4  }
 0x39a   : > { %s7009_s17 = sld [smem:[#allocation13_spill]]  ;;  %s7010_s15 = smov %s4696_s16 }
 0x39b   : > { %s7012_s18 = smov %s4761_s21  ;;  %22 = sbr.rel (!%p20_p10) target bundleno = 10 (0xa), region = 105 }
 0x39f   : > { %s7011_s16 = smov %s7008_s9 }
 0x3a0   :  { %3607 = vsyncpa [#allocation3], 1 }
 0x3a1   :  { %3609 = vsyncpa [#allocation3 + $0x1], 1 }
 0x3a2   :  { %3610 = vsyncpa [#allocation6], 1 }
 0x3a3   :  { %3612 = vsyncpa [#allocation6 + $0x1], 1 }
 0x3a4   :  { %3613 = vsyncpa [#allocation4], 1 }
 0x3a5   :  { %3615 = vsyncpa [#allocation4 + $0x1], 1 }

</bundles_post_ra>
